<compile_context>
chip_gen: v7x
topology: tpu7x:2x2x1
jax: 0.10.0
libtpu: 0.0.40
codegen_flags: <defaults>
</compile_context>

<pallas_src>
import functools

import numpy as np

import jax
import jax.numpy as jnp
from jax.experimental import pallas as pl
from jax.experimental.pallas import tpu as pltpu

_VMEM_LIMIT = 16 * 1024 * 1024                    # working set is ~2 MiB
_CONV_SPECS = [(5, 1, 2), (3, 2, 2), (3, 1, 1)]   # (kernel, dilation, repl. pad)


# -----------------------------------------------------------------------------
# Pallas kernels
# -----------------------------------------------------------------------------
def _groupnorm_kernel(x_ref, y_ref, mean_ref, std_ref, *, n):
    # NOTE: no epsilon, matching the PyTorch module exactly; a zero-variance
    # group therefore produces inf/NaN (same behaviour as torch).
    x = x_ref[...]
    mean = jnp.mean(x, axis=-1, keepdims=True)
    d = x - mean
    var = jnp.sum(d * d, axis=-1, keepdims=True) / (n - 1.0)   # unbiased (torch.std)
    std = jnp.sqrt(var)
    y_ref[...] = d * pl.reciprocal(std)
    mean_ref[...] = mean
    std_ref[...] = std


def _gru_layer_kernel(xcol_ref, prev_ref, wconv_ref, bconv_ref, wgate_ref,
                      wo2_ref, bg_ref, ns_ref, *, C):
    """Fused conv (one K-packed dot) + ReLU + GRU cell, channels-on-sublanes.

    xcol : (k*k*Cin, Lb) bf16  im2col'd replication-padded input columns
    prev : (C, Lb)       f32   previous hidden state
    wconv: (C, k*k*Cin)  bf16
    bconv: (C, 1)        f32
    wgate: (3C, 2C)      bf16  rows = [update | reset | out], cols = [cell | prev]
    wo2  : (C, C)        bf16  out-gate weight acting on prev*reset
    bg   : (3C, 1)       f32
    ns   : (C, Lb)       f32   new state (aliases the prev block in HBM)
    """
    conv = jnp.dot(wconv_ref[...], xcol_ref[...],
                   preferred_element_type=jnp.float32)               # (C, Lb)
    cell = jnp.maximum(conv + bconv_ref[...], 0.0)
    prev = prev_ref[...]

    # One merged gate dot (K = 2C) instead of separate cell/prev dots.
    stacked = jnp.concatenate([cell.astype(jnp.bfloat16),
                               prev.astype(jnp.bfloat16)], axis=0)   # (2C, Lb)
    g = jnp.dot(wgate_ref[...], stacked,
                preferred_element_type=jnp.float32) + bg_ref[...]    # (3C, Lb)

    update = jax.nn.sigmoid(g[:C])            # sublane slices, 8-aligned offsets
    reset = jax.nn.sigmoid(g[C:2 * C])
    cand = jnp.dot(wo2_ref[...], (prev * reset).astype(jnp.bfloat16),
                   preferred_element_type=jnp.float32)
    delta = jnp.tanh(g[2 * C:] + cand)

    ns_ref[...] = (prev * (1.0 - update) + delta * update).astype(ns_ref.dtype)


def _out_conv_kernel(xcol_ref, scale_ref, shift_ref, wconv_ref, out_ref):
    """Final conv fused with the group un-norm (scale/shift absorb bias, mean, std)."""
    conv = jnp.dot(wconv_ref[...], xcol_ref[...],
                   preferred_element_type=jnp.float32)
    out_ref[...] = (conv * scale_ref[...] + shift_ref[...]).astype(out_ref.dtype)


# -----------------------------------------------------------------------------
# Wrappers
# -----------------------------------------------------------------------------
def _lane_split(total_lanes):
    """2 'parallel' lane-blocks (one per TensorCore) on v7x, 1 block otherwise."""
    kind = ""
    try:
        kind = jax.devices()[0].device_kind.lower()
    except Exception:
        pass
    if "v7" in kind and total_lanes % 256 == 0:
        return 2
    return 1


def groupnorm_pallas(x_nchw, num_groups):
    B, C, H, W = x_nchw.shape
    n = (C // num_groups) * H * W
    x2 = x_nchw.reshape(B * num_groups, n)
    y2, mean, std = pl.pallas_call(
        functools.partial(_groupnorm_kernel, n=float(n)),
        out_shape=(jax.ShapeDtypeStruct((B * num_groups, n), x2.dtype),
                   jax.ShapeDtypeStruct((B * num_groups, 1), x2.dtype),
                   jax.ShapeDtypeStruct((B * num_groups, 1), x2.dtype)),
        compiler_params=pltpu.CompilerParams(vmem_limit_bytes=_VMEM_LIMIT),
    )(x2)
    return y2.reshape(B, C, H, W), mean, std


def _im2col_T(x_cbhw, k, dil, pad):
    """Replication-padded im2col, channels-on-sublanes.

    x_cbhw: (Cin, B, H, W); returns (k*k*Cin, B*H*W) with row order (ky, kx, ci)
    matching the flat conv-weight layout.
    """
    Cin, B, H, W = x_cbhw.shape
    # 'Same'-size condition of ReplicationPad2d(pad) + VALID dilated conv.
    assert (k - 1) * dil == 2 * pad, "conv spec is not output-size preserving"
    xp = jnp.pad(x_cbhw, ((0, 0), (0, 0), (pad, pad), (pad, pad)), mode="edge")
    taps = [xp[:, :, ky * dil:ky * dil + H, kx * dil:kx * dil + W]
            for ky in range(k) for kx in range(k)]
    return jnp.stack(taps, axis=0).reshape(k * k * Cin, B * H * W)


def gru_layer_pallas(xcolT, prevT, wconvT, bconv, wgateT, wo2T, bg, *, nsplit):
    Kc, L = xcolT.shape
    C = prevT.shape[0]
    lb = L // nsplit
    return pl.pallas_call(
        functools.partial(_gru_layer_kernel, C=C),
        out_shape=jax.ShapeDtypeStruct((C, L), jnp.float32),
        grid=(nsplit,),
        in_specs=[pl.BlockSpec((Kc, lb), lambda i: (0, i)),
                  pl.BlockSpec((C, lb), lambda i: (0, i)),
                  pl.BlockSpec((C, Kc), lambda i: (0, 0)),
                  pl.BlockSpec((C, 1), lambda i: (0, 0)),
                  pl.BlockSpec((3 * C, 2 * C), lambda i: (0, 0)),
                  pl.BlockSpec((C, C), lambda i: (0, 0)),
                  pl.BlockSpec((3 * C, 1), lambda i: (0, 0))],
        out_specs=pl.BlockSpec((C, lb), lambda i: (0, i)),
        # prev-state block -> new-state block.  prevT is a per-step temporary
        # (transpose of the caller's state), so the in-place overwrite is safe.
        input_output_aliases={1: 0},
        compiler_params=pltpu.CompilerParams(
            dimension_semantics=("parallel",),
            vmem_limit_bytes=_VMEM_LIMIT),
    )(xcolT, prevT, wconvT, bconv, wgateT, wo2T, bg)


def out_conv_pallas(xcolT, scaleT, shiftT, wconvT, *, nsplit):
    Kc, L = xcolT.shape
    Cout = wconvT.shape[0]
    lb = L // nsplit
    return pl.pallas_call(
        _out_conv_kernel,
        out_shape=jax.ShapeDtypeStruct((Cout, L), jnp.float32),
        grid=(nsplit,),
        in_specs=[pl.BlockSpec((Kc, lb), lambda i: (0, i)),
                  pl.BlockSpec((Cout, lb), lambda i: (0, i)),
                  pl.BlockSpec((Cout, lb), lambda i: (0, i)),
                  pl.BlockSpec((Cout, Kc), lambda i: (0, 0))],
        out_specs=pl.BlockSpec((Cout, lb), lambda i: (0, i)),
        compiler_params=pltpu.CompilerParams(
            dimension_semantics=("parallel",),
            vmem_limit_bytes=_VMEM_LIMIT),
    )(xcolT, scaleT, shiftT, wconvT)


# -----------------------------------------------------------------------------
# Weight packing (hoisted out of the per-timestep forward)
# -----------------------------------------------------------------------------
def pack_params(params, num_layers=2):
    packed = {}
    for i in range(num_layers + 1):
        packed[f"conv{i}_wT"] = params[f"conv{i}_w"].T.astype(jnp.bfloat16)  # (Cout, Kc)
        packed[f"conv{i}_b"] = params[f"conv{i}_b"].reshape(-1, 1)           # (Cout, 1)
    for l in range(num_layers):
        C = params[f"wz1_{l}"].shape[0]
        rows = [jnp.concatenate([params[f"wz1_{l}"].T, params[f"wz2_{l}"].T], axis=1),
                jnp.concatenate([params[f"wr1_{l}"].T, params[f"wr2_{l}"].T], axis=1),
                jnp.concatenate([params[f"wo1_{l}"].T,
                                 jnp.zeros((C, C), jnp.float32)], axis=1)]
        packed[f"wgateT_{l}"] = jnp.concatenate(rows, axis=0).astype(jnp.bfloat16)  # (3C,2C)
        packed[f"wo2T_{l}"] = params[f"wo2_{l}"].T.astype(jnp.bfloat16)             # (C,C)
        packed[f"bg_{l}"] = jnp.concatenate([params[f"bz_{l}"], params[f"br_{l}"],
                                             params[f"bo_{l}"]]).reshape(-1, 1)     # (3C,1)
    return packed


# -----------------------------------------------------------------------------
# Full NormConv2dGRU forward (defaults: num_layers=2, gru_kernel_size=1,
# dense_connect=0, replication_padding=True, instance_norm=False)
# -----------------------------------------------------------------------------
def norm_conv2d_gru_forward(x, prev_state, packed, *, hidden_channels,
                            num_layers=2, norm_groups=2):
    B, Cin, H, W = x.shape
    C = hidden_channels
    L = B * H * W
    nsplit = _lane_split(L)

    # group norm (Pallas reduction kernel); mean/std reused by the fused un-norm.
    xn, mean, std = groupnorm_pallas(x, norm_groups)

    # Channels-on-sublanes layout: lanes = B*H*W (lane-dense), channels on
    # sublanes (gate slices fall on 8-aligned sublane offsets).
    cur = jnp.transpose(xn, (1, 0, 2, 3)).astype(jnp.bfloat16)    # (Cin, B, H, W)
    prev_all = jnp.transpose(prev_state, (4, 1, 0, 2, 3))         # (Lyr, C, B, H, W)

    new_states = []
    for idx in range(num_layers):
        k, dil, pad = _CONV_SPECS[idx]
        xcol = _im2col_T(cur, k, dil, pad)                        # (k*k*Cin, L) bf16
        prev_l = prev_all[idx].reshape(C, L)
        ns = gru_layer_pallas(xcol, prev_l,
                              packed[f"conv{idx}_wT"], packed[f"conv{idx}_b"],
                              packed[f"wgateT_{idx}"], packed[f"wo2T_{idx}"],
                              packed[f"bg_{idx}"], nsplit=nsplit)  # (C, L) f32
        new_states.append(ns)
        # ReLU'd state feeds the next conv (bf16 halves the im2col HBM traffic).
        cur = jnp.maximum(ns, 0.0).astype(jnp.bfloat16).reshape(C, B, H, W)

    # final conv with the group un-norm fused in.
    k, dil, pad = _CONV_SPECS[num_layers]
    bconv = packed[f"conv{num_layers}_b"]                         # (Cout, 1) f32
    Cout = bconv.shape[0]
    xcol = _im2col_T(cur, k, dil, pad)

    cpg = Cout // norm_groups
    std_bc = jnp.repeat(std.reshape(B, norm_groups), cpg, axis=1).T    # (Cout, B)
    mean_bc = jnp.repeat(mean.reshape(B, norm_groups), cpg, axis=1).T  # (Cout, B)
    scaleT = jnp.broadcast_to(std_bc[:, :, None], (Cout, B, H * W)).reshape(Cout, L)
    shiftT = jnp.broadcast_to((mean_bc + bconv * std_bc)[:, :, None],
                              (Cout, B, H * W)).reshape(Cout, L)

    outT = out_conv_pallas(xcol, scaleT, shiftT, packed[f"conv{num_layers}_wT"],
                           nsplit=nsplit)                          # (Cout, L)

    out = jnp.transpose(outT.reshape(Cout, B, H, W), (1, 0, 2, 3))
    new_state = jnp.transpose(
        jnp.stack(new_states, 0).reshape(num_layers, C, B, H, W), (2, 1, 3, 4, 0))
    return out, new_state


# -----------------------------------------------------------------------------
# Deterministic parameter init (shapes per Conv2dGRU.__init__ with defaults)
# -----------------------------------------------------------------------------
def init_params(key, in_ch, hid_ch, out_ch, num_layers=2):
    params = {}
    keys = iter(jax.random.split(key, 64))

    def conv_w(k, cin, cout):
        # flat (k*k*cin, cout); row order matches the im2col taps: (ky, kx, ci)
        return 0.1 * jax.random.normal(next(keys), (k * k * cin, cout), jnp.float32)

    conv_defs = [(5, in_ch, hid_ch), (3, hid_ch, hid_ch), (3, hid_ch, out_ch)]
    for i, (k, cin, cout) in enumerate(conv_defs):
        params[f"conv{i}_w"] = conv_w(k, cin, cout)
        params[f"conv{i}_b"] = 0.01 * jax.random.normal(next(keys), (cout,), jnp.float32)

    for l in range(num_layers):
        for name in ("wz", "wr", "wo"):
            params[f"{name}1_{l}"] = 0.1 * jax.random.normal(
                next(keys), (hid_ch, hid_ch), jnp.float32)
            params[f"{name}2_{l}"] = 0.1 * jax.random.normal(
                next(keys), (hid_ch, hid_ch), jnp.float32)
        # orthogonal-init bias convention: update=0, reset=-1, out=0
        params[f"bz_{l}"] = jnp.zeros((hid_ch,), jnp.float32)
        params[f"br_{l}"] = -jnp.ones((hid_ch,), jnp.float32)
        params[f"bo_{l}"] = jnp.zeros((hid_ch,), jnp.float32)
    # TODO(synk): weights are deterministic-random, not truly orthogonal (forward
    # semantics do not depend on the init distribution).
    return params


# -----------------------------------------------------------------------------
# Pure-JAX f32 reference (for correctness check)
# -----------------------------------------------------------------------------
def ref_forward(x, prev_state, params, *, hidden_channels, num_layers=2, norm_groups=2):
    B, C, H, W = x.shape
    xr = x.reshape(B, norm_groups, -1)
    mean = xr.mean(-1, keepdims=True)
    std = jnp.std(xr, axis=-1, ddof=1, keepdims=True)
    cell = ((xr - mean) / std).reshape(B, C, H, W)

    def conv(xx, w_flat, b, k, dil, pad):
        cin = xx.shape[1]
        cout = w_flat.shape[-1]
        w = jnp.transpose(w_flat.reshape(k, k, cin, cout), (3, 2, 0, 1))  # OIHW
        xp = jnp.pad(xx, ((0, 0), (0, 0), (pad, pad), (pad, pad)), mode="edge")
        y = jax.lax.conv_general_dilated(
            xp, w, (1, 1), "VALID", rhs_dilation=(dil, dil),
            dimension_numbers=("NCHW", "OIHW", "NCHW"))
        return y + b[None, :, None, None]

    new_states = []
    for idx in range(num_layers):
        k, dil, pad = _CONV_SPECS[idx]
        cell = jax.nn.relu(conv(cell, params[f"conv{idx}_w"], params[f"conv{idx}_b"],
                                k, dil, pad))
        prev = prev_state[..., idx]

        def gate(w1, w2, b, a, p_):
            return (jnp.einsum("bchw,cd->bdhw", a, w1)
                    + jnp.einsum("bchw,cd->bdhw", p_, w2)
                    + b[None, :, None, None])

        update = jax.nn.sigmoid(gate(params[f"wz1_{idx}"], params[f"wz2_{idx}"],
                                     params[f"bz_{idx}"], cell, prev))
        reset = jax.nn.sigmoid(gate(params[f"wr1_{idx}"], params[f"wr2_{idx}"],
                                    params[f"br_{idx}"], cell, prev))
        delta = jnp.tanh(gate(params[f"wo1_{idx}"], params[f"wo2_{idx}"],
                              params[f"bo_{idx}"], cell, prev * reset))
        cell = prev * (1 - update) + delta * update
        new_states.append(cell)
        cell = jax.nn.relu(cell)

    k, dil, pad = _CONV_SPECS[num_layers]
    out = conv(cell, params[f"conv{num_layers}_w"], params[f"conv{num_layers}_b"],
               k, dil, pad)
    outr = out.reshape(B, norm_groups, -1)
    out = (outr * std + mean).reshape(B, out.shape[1], H, W)
    return out, jnp.stack(new_states, axis=-1)


# -----------------------------------------------------------------------------
if __name__ == "__main__":
    B, Cin, H, W = 2, 4, 16, 16
    hidden = 32
    num_layers = 2
    norm_groups = 2

    key = jax.random.PRNGKey(0)
    k_x, k_s, k_p = jax.random.split(key, 3)
    x = jax.random.normal(k_x, (B, Cin, H, W), jnp.float32)
    prev_state = jax.random.normal(k_s, (B, hidden, H, W, num_layers), jnp.float32)
    params = init_params(k_p, Cin, hidden, Cin, num_layers)
    packed = pack_params(params, num_layers)   # once, outside the per-timestep path

    fwd = jax.jit(functools.partial(norm_conv2d_gru_forward,
                                    hidden_channels=hidden,
                                    num_layers=num_layers,
                                    norm_groups=norm_groups))
    out, new_states = fwd(x, prev_state, packed)
    jax.block_until_ready((out, new_states))

    assert out.shape == (B, Cin, H, W)
    assert new_states.shape == (B, hidden, H, W, num_layers)

    ref_out, ref_states = ref_forward(x, prev_state, params,
                                      hidden_channels=hidden,
                                      num_layers=num_layers,
                                      norm_groups=norm_groups)
    # Tolerance loosened because MXU inputs are bf16 (f32 accumulation).
    # TODO(synk): bf16 error compounds over timesteps in a long GRU rollout.
    np.testing.assert_allclose(np.asarray(out), np.asarray(ref_out),
                               rtol=5e-2, atol=5e-2)
    np.testing.assert_allclose(np.asarray(new_states), np.asarray(ref_states),
                               rtol=5e-2, atol=5e-2)
    print("KERNEL_OK")
</pallas_src>

<mosaic_0001>
module attributes {stable_mosaic.version = 11 : i64} {
  func.func @_groupnorm_kernel(%arg0: memref<4x512xf32, #tpu.memory_space<vmem>>, %arg1: memref<4x512xf32, #tpu.memory_space<vmem>>, %arg2: memref<4x1xf32, #tpu.memory_space<vmem>>, %arg3: memref<4x1xf32, #tpu.memory_space<vmem>>) attributes {dimension_semantics = [], scalar_prefetch = 0 : i64, scratch_operands = 0 : i64, tpu.core_type = #tpu.core_type<tc>} {
    %c0 = arith.constant 0 : index
    %c0_0 = arith.constant 0 : index
    %0 = vector.load %arg0[%c0, %c0_0] : memref<4x512xf32, #tpu.memory_space<vmem>>, vector<4x512xf32>
    %cst = arith.constant dense<0.000000e+00> : vector<4xf32>
    %1 = vector.multi_reduction <add>, %0, %cst [1] : vector<4x512xf32> to vector<4xf32>
    %2 = vector.shape_cast %1 : vector<4xf32> to vector<4x1xf32>
    %cst_1 = arith.constant 5.120000e+02 : f32
    %3 = vector.broadcast %cst_1 : f32 to vector<4x1xf32>
    %4 = arith.divf %2, %3 : vector<4x1xf32>
    %5 = vector.broadcast %4 : vector<4x1xf32> to vector<4x512xf32>
    %6 = arith.subf %0, %5 : vector<4x512xf32>
    %7 = arith.mulf %6, %6 : vector<4x512xf32>
    %cst_2 = arith.constant dense<0.000000e+00> : vector<4xf32>
    %8 = vector.multi_reduction <add>, %7, %cst_2 [1] : vector<4x512xf32> to vector<4xf32>
    %9 = vector.shape_cast %8 : vector<4xf32> to vector<4x1xf32>
    %cst_3 = arith.constant 5.110000e+02 : f32
    %10 = vector.broadcast %cst_3 : f32 to vector<4x1xf32>
    %11 = arith.divf %9, %10 : vector<4x1xf32>
    %12 = math.sqrt %11 : vector<4x1xf32>
    %13 = tpu.reciprocal %12 : vector<4x1xf32> -> vector<4x1xf32>
    %14 = vector.broadcast %13 : vector<4x1xf32> to vector<4x512xf32>
    %15 = arith.mulf %6, %14 : vector<4x512xf32>
    %c0_4 = arith.constant 0 : index
    %c0_5 = arith.constant 0 : index
    %16 = vector.load %arg1[%c0_4, %c0_5] : memref<4x512xf32, #tpu.memory_space<vmem>>, vector<4x512xf32>
    tpu.vector_store %arg1[%c0_4, %c0_5], %15 {strides = array<i32>} : memref<4x512xf32, #tpu.memory_space<vmem>>, vector<4x512xf32>,
    %c0_6 = arith.constant 0 : index
    %c0_7 = arith.constant 0 : index
    %17 = vector.load %arg2[%c0_6, %c0_7] : memref<4x1xf32, #tpu.memory_space<vmem>>, vector<4x1xf32>
    tpu.vector_store %arg2[%c0_6, %c0_7], %4 {strides = array<i32>} : memref<4x1xf32, #tpu.memory_space<vmem>>, vector<4x1xf32>,
    %c0_8 = arith.constant 0 : index
    %c0_9 = arith.constant 0 : index
    %18 = vector.load %arg3[%c0_8, %c0_9] : memref<4x1xf32, #tpu.memory_space<vmem>>, vector<4x1xf32>
    tpu.vector_store %arg3[%c0_8, %c0_9], %12 {strides = array<i32>} : memref<4x1xf32, #tpu.memory_space<vmem>>, vector<4x1xf32>,
    return
  }
}

module attributes {stable_mosaic.version = 11 : i64} {
  func.func @_gru_layer_kernel(%arg0: i32, %arg1: memref<100x512xbf16, #tpu.memory_space<vmem>>, %arg2: memref<32x512xf32, #tpu.memory_space<vmem>>, %arg3: memref<32x100xbf16, #tpu.memory_space<vmem>>, %arg4: memref<32x1xf32, #tpu.memory_space<vmem>>, %arg5: memref<96x64xbf16, #tpu.memory_space<vmem>>, %arg6: memref<32x32xbf16, #tpu.memory_space<vmem>>, %arg7: memref<96x1xf32, #tpu.memory_space<vmem>>, %arg8: memref<32x512xf32, #tpu.memory_space<vmem>>) attributes {dimension_semantics = [#tpu.dimension_semantics<parallel>], iteration_bounds = array<i64: 1>, scalar_prefetch = 0 : i64, scratch_operands = 0 : i64, tpu.core_type = #tpu.core_type<tc>, window_params = [{transform_indices = @transform_0, window_bounds = array<i64: 100, 512>}, {transform_indices = @transform_1, window_bounds = array<i64: 32, 512>}, {pipeline_mode = #tpu.pipeline_mode<synchronous>, transform_indices = @transform_2, window_bounds = array<i64: 32, 100>}, {pipeline_mode = #tpu.pipeline_mode<synchronous>, transform_indices = @transform_3, window_bounds = array<i64: 32, 1>}, {pipeline_mode = #tpu.pipeline_mode<synchronous>, transform_indices = @transform_4, window_bounds = array<i64: 96, 64>}, {pipeline_mode = #tpu.pipeline_mode<synchronous>, transform_indices = @transform_5, window_bounds = array<i64: 32, 32>}, {pipeline_mode = #tpu.pipeline_mode<synchronous>, transform_indices = @transform_6, window_bounds = array<i64: 96, 1>}, {transform_indices = @transform_7, window_bounds = array<i64: 32, 512>}]} {
    %c0 = arith.constant 0 : index
    %c0_0 = arith.constant 0 : index
    %0 = vector.load %arg3[%c0, %c0_0] : memref<32x100xbf16, #tpu.memory_space<vmem>>, vector<32x100xbf16>
    %c0_1 = arith.constant 0 : index
    %c0_2 = arith.constant 0 : index
    %1 = vector.load %arg1[%c0_1, %c0_2] : memref<100x512xbf16, #tpu.memory_space<vmem>>, vector<100x512xbf16>
    %cst = arith.constant dense<0.000000e+00> : vector<32x512xf32>
    %2 = tpu.matmul %0, %1, %cst {dimension_numbers = #tpu.dot_dimension_numbers<[1], [0], [0], [1], [0, 0, 1, 1], [], []>} : vector<32x100xbf16>, vector<100x512xbf16>, vector<32x512xf32> -> vector<32x512xf32>
    %c0_3 = arith.constant 0 : index
    %c0_4 = arith.constant 0 : index
    %3 = vector.load %arg4[%c0_3, %c0_4] : memref<32x1xf32, #tpu.memory_space<vmem>>, vector<32x1xf32>
    %4 = vector.broadcast %3 : vector<32x1xf32> to vector<32x512xf32>
    %5 = arith.addf %2, %4 : vector<32x512xf32>
    %cst_5 = arith.constant 0.000000e+00 : f32
    %6 = vector.broadcast %cst_5 : f32 to vector<32x512xf32>
    %7 = arith.maximumf %5, %6 : vector<32x512xf32>
    %c0_6 = arith.constant 0 : index
    %c0_7 = arith.constant 0 : index
    %8 = vector.load %arg2[%c0_6, %c0_7] : memref<32x512xf32, #tpu.memory_space<vmem>>, vector<32x512xf32>
    %9 = arith.truncf %7 : vector<32x512xf32> to vector<32x512xbf16>
    %10 = arith.truncf %8 : vector<32x512xf32> to vector<32x512xbf16>
    %11 = tpu.concatenate %9, %10 in 0 : vector<32x512xbf16>, vector<32x512xbf16> -> vector<64x512xbf16>
    %c0_8 = arith.constant 0 : index
    %c0_9 = arith.constant 0 : index
    %12 = vector.load %arg5[%c0_8, %c0_9] : memref<96x64xbf16, #tpu.memory_space<vmem>>, vector<96x64xbf16>
    %cst_10 = arith.constant dense<0.000000e+00> : vector<96x512xf32>
    %13 = tpu.matmul %12, %11, %cst_10 {dimension_numbers = #tpu.dot_dimension_numbers<[1], [0], [0], [1], [0, 0, 1, 1], [], []>} : vector<96x64xbf16>, vector<64x512xbf16>, vector<96x512xf32> -> vector<96x512xf32>
    %c0_11 = arith.constant 0 : index
    %c0_12 = arith.constant 0 : index
    %14 = vector.load %arg7[%c0_11, %c0_12] : memref<96x1xf32, #tpu.memory_space<vmem>>, vector<96x1xf32>
    %15 = vector.broadcast %14 : vector<96x1xf32> to vector<96x512xf32>
    %16 = arith.addf %13, %15 : vector<96x512xf32>
    %17 = vector.extract_strided_slice %16 {offsets = [0, 0], sizes = [32, 512], strides = [1, 1]} : vector<96x512xf32> to vector<32x512xf32>
    %18 = arith.negf %17 : vector<32x512xf32>
    %19 = math.exp %18 : vector<32x512xf32>
    %cst_13 = arith.constant 1.000000e+00 : f32
    %20 = vector.broadcast %cst_13 : f32 to vector<32x512xf32>
    %21 = arith.addf %20, %19 : vector<32x512xf32>
    %22 = arith.divf %20, %21 : vector<32x512xf32>
    %23 = vector.extract_strided_slice %16 {offsets = [32, 0], sizes = [32, 512], strides = [1, 1]} : vector<96x512xf32> to vector<32x512xf32>
    %24 = arith.negf %23 : vector<32x512xf32>
    %25 = math.exp %24 : vector<32x512xf32>
    %cst_14 = arith.constant 1.000000e+00 : f32
    %26 = vector.broadcast %cst_14 : f32 to vector<32x512xf32>
    %27 = arith.addf %26, %25 : vector<32x512xf32>
    %28 = arith.divf %26, %27 : vector<32x512xf32>
    %c0_15 = arith.constant 0 : index
    %c0_16 = arith.constant 0 : index
    %29 = vector.load %arg6[%c0_15, %c0_16] : memref<32x32xbf16, #tpu.memory_space<vmem>>, vector<32x32xbf16>
    %30 = arith.mulf %8, %28 : vector<32x512xf32>
    %31 = arith.truncf %30 : vector<32x512xf32> to vector<32x512xbf16>
    %cst_17 = arith.constant dense<0.000000e+00> : vector<32x512xf32>
    %32 = tpu.matmul %29, %31, %cst_17 {dimension_numbers = #tpu.dot_dimension_numbers<[1], [0], [0], [1], [0, 0, 1, 1], [], []>} : vector<32x32xbf16>, vector<32x512xbf16>, vector<32x512xf32> -> vector<32x512xf32>
    %33 = vector.extract_strided_slice %16 {offsets = [64, 0], sizes = [32, 512], strides = [1, 1]} : vector<96x512xf32> to vector<32x512xf32>
    %34 = arith.addf %33, %32 : vector<32x512xf32>
    %35 = math.tanh %34 : vector<32x512xf32>
    %cst_18 = arith.constant 1.000000e+00 : f32
    %36 = vector.broadcast %cst_18 : f32 to vector<32x512xf32>
    %37 = arith.subf %36, %22 : vector<32x512xf32>
    %38 = arith.mulf %8, %37 : vector<32x512xf32>
    %39 = arith.mulf %35, %22 : vector<32x512xf32>
    %40 = arith.addf %38, %39 : vector<32x512xf32>
    %c0_19 = arith.constant 0 : index
    %c0_20 = arith.constant 0 : index
    %41 = vector.load %arg8[%c0_19, %c0_20] : memref<32x512xf32, #tpu.memory_space<vmem>>, vector<32x512xf32>
    tpu.vector_store %arg8[%c0_19, %c0_20], %40 {strides = array<i32>} : memref<32x512xf32, #tpu.memory_space<vmem>>, vector<32x512xf32>,
    return
  }
  func.func @transform_0(%arg0: i32) -> (i32, i32) {
    %c0_i32 = arith.constant 0 : i32
    %c0_i32_0 = arith.constant 0 : i32
    return %c0_i32, %arg0 : i32, i32
  }
  func.func @transform_1(%arg0: i32) -> (i32, i32) {
    %c0_i32 = arith.constant 0 : i32
    %c0_i32_0 = arith.constant 0 : i32
    return %c0_i32, %arg0 : i32, i32
  }
  func.func @transform_2(%arg0: i32) -> (i32, i32) {
    %c0_i32 = arith.constant 0 : i32
    %c0_i32_0 = arith.constant 0 : i32
    %c0_i32_1 = arith.constant 0 : i32
    return %c0_i32, %c0_i32_0 : i32, i32
  }
  func.func @transform_3(%arg0: i32) -> (i32, i32) {
    %c0_i32 = arith.constant 0 : i32
    %c0_i32_0 = arith.constant 0 : i32
    %c0_i32_1 = arith.constant 0 : i32
    return %c0_i32, %c0_i32_0 : i32, i32
  }
  func.func @transform_4(%arg0: i32) -> (i32, i32) {
    %c0_i32 = arith.constant 0 : i32
    %c0_i32_0 = arith.constant 0 : i32
    %c0_i32_1 = arith.constant 0 : i32
    return %c0_i32, %c0_i32_0 : i32, i32
  }
  func.func @transform_5(%arg0: i32) -> (i32, i32) {
    %c0_i32 = arith.constant 0 : i32
    %c0_i32_0 = arith.constant 0 : i32
    %c0_i32_1 = arith.constant 0 : i32
    return %c0_i32, %c0_i32_0 : i32, i32
  }
  func.func @transform_6(%arg0: i32) -> (i32, i32) {
    %c0_i32 = arith.constant 0 : i32
    %c0_i32_0 = arith.constant 0 : i32
    %c0_i32_1 = arith.constant 0 : i32
    return %c0_i32, %c0_i32_0 : i32, i32
  }
  func.func @transform_7(%arg0: i32) -> (i32, i32) {
    %c0_i32 = arith.constant 0 : i32
    %c0_i32_0 = arith.constant 0 : i32
    return %c0_i32, %arg0 : i32, i32
  }
}

module attributes {stable_mosaic.version = 11 : i64} {
  func.func @_gru_layer_kernel(%arg0: i32, %arg1: memref<288x512xbf16, #tpu.memory_space<vmem>>, %arg2: memref<32x512xf32, #tpu.memory_space<vmem>>, %arg3: memref<32x288xbf16, #tpu.memory_space<vmem>>, %arg4: memref<32x1xf32, #tpu.memory_space<vmem>>, %arg5: memref<96x64xbf16, #tpu.memory_space<vmem>>, %arg6: memref<32x32xbf16, #tpu.memory_space<vmem>>, %arg7: memref<96x1xf32, #tpu.memory_space<vmem>>, %arg8: memref<32x512xf32, #tpu.memory_space<vmem>>) attributes {dimension_semantics = [#tpu.dimension_semantics<parallel>], iteration_bounds = array<i64: 1>, scalar_prefetch = 0 : i64, scratch_operands = 0 : i64, tpu.core_type = #tpu.core_type<tc>, window_params = [{transform_indices = @transform_0, window_bounds = array<i64: 288, 512>}, {transform_indices = @transform_1, window_bounds = array<i64: 32, 512>}, {pipeline_mode = #tpu.pipeline_mode<synchronous>, transform_indices = @transform_2, window_bounds = array<i64: 32, 288>}, {pipeline_mode = #tpu.pipeline_mode<synchronous>, transform_indices = @transform_3, window_bounds = array<i64: 32, 1>}, {pipeline_mode = #tpu.pipeline_mode<synchronous>, transform_indices = @transform_4, window_bounds = array<i64: 96, 64>}, {pipeline_mode = #tpu.pipeline_mode<synchronous>, transform_indices = @transform_5, window_bounds = array<i64: 32, 32>}, {pipeline_mode = #tpu.pipeline_mode<synchronous>, transform_indices = @transform_6, window_bounds = array<i64: 96, 1>}, {transform_indices = @transform_7, window_bounds = array<i64: 32, 512>}]} {
    %c0 = arith.constant 0 : index
    %c0_0 = arith.constant 0 : index
    %0 = vector.load %arg3[%c0, %c0_0] : memref<32x288xbf16, #tpu.memory_space<vmem>>, vector<32x288xbf16>
    %c0_1 = arith.constant 0 : index
    %c0_2 = arith.constant 0 : index
    %1 = vector.load %arg1[%c0_1, %c0_2] : memref<288x512xbf16, #tpu.memory_space<vmem>>, vector<288x512xbf16>
    %cst = arith.constant dense<0.000000e+00> : vector<32x512xf32>
    %2 = tpu.matmul %0, %1, %cst {dimension_numbers = #tpu.dot_dimension_numbers<[1], [0], [0], [1], [0, 0, 1, 1], [], []>} : vector<32x288xbf16>, vector<288x512xbf16>, vector<32x512xf32> -> vector<32x512xf32>
    %c0_3 = arith.constant 0 : index
    %c0_4 = arith.constant 0 : index
    %3 = vector.load %arg4[%c0_3, %c0_4] : memref<32x1xf32, #tpu.memory_space<vmem>>, vector<32x1xf32>
    %4 = vector.broadcast %3 : vector<32x1xf32> to vector<32x512xf32>
    %5 = arith.addf %2, %4 : vector<32x512xf32>
    %cst_5 = arith.constant 0.000000e+00 : f32
    %6 = vector.broadcast %cst_5 : f32 to vector<32x512xf32>
    %7 = arith.maximumf %5, %6 : vector<32x512xf32>
    %c0_6 = arith.constant 0 : index
    %c0_7 = arith.constant 0 : index
    %8 = vector.load %arg2[%c0_6, %c0_7] : memref<32x512xf32, #tpu.memory_space<vmem>>, vector<32x512xf32>
    %9 = arith.truncf %7 : vector<32x512xf32> to vector<32x512xbf16>
    %10 = arith.truncf %8 : vector<32x512xf32> to vector<32x512xbf16>
    %11 = tpu.concatenate %9, %10 in 0 : vector<32x512xbf16>, vector<32x512xbf16> -> vector<64x512xbf16>
    %c0_8 = arith.constant 0 : index
    %c0_9 = arith.constant 0 : index
    %12 = vector.load %arg5[%c0_8, %c0_9] : memref<96x64xbf16, #tpu.memory_space<vmem>>, vector<96x64xbf16>
    %cst_10 = arith.constant dense<0.000000e+00> : vector<96x512xf32>
    %13 = tpu.matmul %12, %11, %cst_10 {dimension_numbers = #tpu.dot_dimension_numbers<[1], [0], [0], [1], [0, 0, 1, 1], [], []>} : vector<96x64xbf16>, vector<64x512xbf16>, vector<96x512xf32> -> vector<96x512xf32>
    %c0_11 = arith.constant 0 : index
    %c0_12 = arith.constant 0 : index
    %14 = vector.load %arg7[%c0_11, %c0_12] : memref<96x1xf32, #tpu.memory_space<vmem>>, vector<96x1xf32>
    %15 = vector.broadcast %14 : vector<96x1xf32> to vector<96x512xf32>
    %16 = arith.addf %13, %15 : vector<96x512xf32>
    %17 = vector.extract_strided_slice %16 {offsets = [0, 0], sizes = [32, 512], strides = [1, 1]} : vector<96x512xf32> to vector<32x512xf32>
    %18 = arith.negf %17 : vector<32x512xf32>
    %19 = math.exp %18 : vector<32x512xf32>
    %cst_13 = arith.constant 1.000000e+00 : f32
    %20 = vector.broadcast %cst_13 : f32 to vector<32x512xf32>
    %21 = arith.addf %20, %19 : vector<32x512xf32>
    %22 = arith.divf %20, %21 : vector<32x512xf32>
    %23 = vector.extract_strided_slice %16 {offsets = [32, 0], sizes = [32, 512], strides = [1, 1]} : vector<96x512xf32> to vector<32x512xf32>
    %24 = arith.negf %23 : vector<32x512xf32>
    %25 = math.exp %24 : vector<32x512xf32>
    %cst_14 = arith.constant 1.000000e+00 : f32
    %26 = vector.broadcast %cst_14 : f32 to vector<32x512xf32>
    %27 = arith.addf %26, %25 : vector<32x512xf32>
    %28 = arith.divf %26, %27 : vector<32x512xf32>
    %c0_15 = arith.constant 0 : index
    %c0_16 = arith.constant 0 : index
    %29 = vector.load %arg6[%c0_15, %c0_16] : memref<32x32xbf16, #tpu.memory_space<vmem>>, vector<32x32xbf16>
    %30 = arith.mulf %8, %28 : vector<32x512xf32>
    %31 = arith.truncf %30 : vector<32x512xf32> to vector<32x512xbf16>
    %cst_17 = arith.constant dense<0.000000e+00> : vector<32x512xf32>
    %32 = tpu.matmul %29, %31, %cst_17 {dimension_numbers = #tpu.dot_dimension_numbers<[1], [0], [0], [1], [0, 0, 1, 1], [], []>} : vector<32x32xbf16>, vector<32x512xbf16>, vector<32x512xf32> -> vector<32x512xf32>
    %33 = vector.extract_strided_slice %16 {offsets = [64, 0], sizes = [32, 512], strides = [1, 1]} : vector<96x512xf32> to vector<32x512xf32>
    %34 = arith.addf %33, %32 : vector<32x512xf32>
    %35 = math.tanh %34 : vector<32x512xf32>
    %cst_18 = arith.constant 1.000000e+00 : f32
    %36 = vector.broadcast %cst_18 : f32 to vector<32x512xf32>
    %37 = arith.subf %36, %22 : vector<32x512xf32>
    %38 = arith.mulf %8, %37 : vector<32x512xf32>
    %39 = arith.mulf %35, %22 : vector<32x512xf32>
    %40 = arith.addf %38, %39 : vector<32x512xf32>
    %c0_19 = arith.constant 0 : index
    %c0_20 = arith.constant 0 : index
    %41 = vector.load %arg8[%c0_19, %c0_20] : memref<32x512xf32, #tpu.memory_space<vmem>>, vector<32x512xf32>
    tpu.vector_store %arg8[%c0_19, %c0_20], %40 {strides = array<i32>} : memref<32x512xf32, #tpu.memory_space<vmem>>, vector<32x512xf32>,
    return
  }
  func.func @transform_0(%arg0: i32) -> (i32, i32) {
    %c0_i32 = arith.constant 0 : i32
    %c0_i32_0 = arith.constant 0 : i32
    return %c0_i32, %arg0 : i32, i32
  }
  func.func @transform_1(%arg0: i32) -> (i32, i32) {
    %c0_i32 = arith.constant 0 : i32
    %c0_i32_0 = arith.constant 0 : i32
    return %c0_i32, %arg0 : i32, i32
  }
  func.func @transform_2(%arg0: i32) -> (i32, i32) {
    %c0_i32 = arith.constant 0 : i32
    %c0_i32_0 = arith.constant 0 : i32
    %c0_i32_1 = arith.constant 0 : i32
    return %c0_i32, %c0_i32_0 : i32, i32
  }
  func.func @transform_3(%arg0: i32) -> (i32, i32) {
    %c0_i32 = arith.constant 0 : i32
    %c0_i32_0 = arith.constant 0 : i32
    %c0_i32_1 = arith.constant 0 : i32
    return %c0_i32, %c0_i32_0 : i32, i32
  }
  func.func @transform_4(%arg0: i32) -> (i32, i32) {
    %c0_i32 = arith.constant 0 : i32
    %c0_i32_0 = arith.constant 0 : i32
    %c0_i32_1 = arith.constant 0 : i32
    return %c0_i32, %c0_i32_0 : i32, i32
  }
  func.func @transform_5(%arg0: i32) -> (i32, i32) {
    %c0_i32 = arith.constant 0 : i32
    %c0_i32_0 = arith.constant 0 : i32
    %c0_i32_1 = arith.constant 0 : i32
    return %c0_i32, %c0_i32_0 : i32, i32
  }
  func.func @transform_6(%arg0: i32) -> (i32, i32) {
    %c0_i32 = arith.constant 0 : i32
    %c0_i32_0 = arith.constant 0 : i32
    %c0_i32_1 = arith.constant 0 : i32
    return %c0_i32, %c0_i32_0 : i32, i32
  }
  func.func @transform_7(%arg0: i32) -> (i32, i32) {
    %c0_i32 = arith.constant 0 : i32
    %c0_i32_0 = arith.constant 0 : i32
    return %c0_i32, %arg0 : i32, i32
  }
}

module attributes {stable_mosaic.version = 11 : i64} {
  func.func @_out_conv_kernel(%arg0: i32, %arg1: memref<288x512xbf16, #tpu.memory_space<vmem>>, %arg2: memref<4x512xf32, #tpu.memory_space<vmem>>, %arg3: memref<4x512xf32, #tpu.memory_space<vmem>>, %arg4: memref<4x288xbf16, #tpu.memory_space<vmem>>, %arg5: memref<4x512xf32, #tpu.memory_space<vmem>>) attributes {dimension_semantics = [#tpu.dimension_semantics<parallel>], iteration_bounds = array<i64: 1>, scalar_prefetch = 0 : i64, scratch_operands = 0 : i64, tpu.core_type = #tpu.core_type<tc>, window_params = [{transform_indices = @transform_0, window_bounds = array<i64: 288, 512>}, {transform_indices = @transform_1, window_bounds = array<i64: 4, 512>}, {transform_indices = @transform_2, window_bounds = array<i64: 4, 512>}, {pipeline_mode = #tpu.pipeline_mode<synchronous>, transform_indices = @transform_3, window_bounds = array<i64: 4, 288>}, {transform_indices = @transform_4, window_bounds = array<i64: 4, 512>}]} {
    %c0 = arith.constant 0 : index
    %c0_0 = arith.constant 0 : index
    %0 = vector.load %arg4[%c0, %c0_0] : memref<4x288xbf16, #tpu.memory_space<vmem>>, vector<4x288xbf16>
    %c0_1 = arith.constant 0 : index
    %c0_2 = arith.constant 0 : index
    %1 = vector.load %arg1[%c0_1, %c0_2] : memref<288x512xbf16, #tpu.memory_space<vmem>>, vector<288x512xbf16>
    %cst = arith.constant dense<0.000000e+00> : vector<4x512xf32>
    %2 = tpu.matmul %0, %1, %cst {dimension_numbers = #tpu.dot_dimension_numbers<[1], [0], [0], [1], [0, 0, 1, 1], [], []>} : vector<4x288xbf16>, vector<288x512xbf16>, vector<4x512xf32> -> vector<4x512xf32>
    %c0_3 = arith.constant 0 : index
    %c0_4 = arith.constant 0 : index
    %3 = vector.load %arg2[%c0_3, %c0_4] : memref<4x512xf32, #tpu.memory_space<vmem>>, vector<4x512xf32>
    %4 = arith.mulf %2, %3 : vector<4x512xf32>
    %c0_5 = arith.constant 0 : index
    %c0_6 = arith.constant 0 : index
    %5 = vector.load %arg3[%c0_5, %c0_6] : memref<4x512xf32, #tpu.memory_space<vmem>>, vector<4x512xf32>
    %6 = arith.addf %4, %5 : vector<4x512xf32>
    %c0_7 = arith.constant 0 : index
    %c0_8 = arith.constant 0 : index
    %7 = vector.load %arg5[%c0_7, %c0_8] : memref<4x512xf32, #tpu.memory_space<vmem>>, vector<4x512xf32>
    tpu.vector_store %arg5[%c0_7, %c0_8], %6 {strides = array<i32>} : memref<4x512xf32, #tpu.memory_space<vmem>>, vector<4x512xf32>,
    return
  }
  func.func @transform_0(%arg0: i32) -> (i32, i32) {
    %c0_i32 = arith.constant 0 : i32
    %c0_i32_0 = arith.constant 0 : i32
    return %c0_i32, %arg0 : i32, i32
  }
  func.func @transform_1(%arg0: i32) -> (i32, i32) {
    %c0_i32 = arith.constant 0 : i32
    %c0_i32_0 = arith.constant 0 : i32
    return %c0_i32, %arg0 : i32, i32
  }
  func.func @transform_2(%arg0: i32) -> (i32, i32) {
    %c0_i32 = arith.constant 0 : i32
    %c0_i32_0 = arith.constant 0 : i32
    return %c0_i32, %arg0 : i32, i32
  }
  func.func @transform_3(%arg0: i32) -> (i32, i32) {
    %c0_i32 = arith.constant 0 : i32
    %c0_i32_0 = arith.constant 0 : i32
    %c0_i32_1 = arith.constant 0 : i32
    return %c0_i32, %c0_i32_0 : i32, i32
  }
  func.func @transform_4(%arg0: i32) -> (i32, i32) {
    %c0_i32 = arith.constant 0 : i32
    %c0_i32_0 = arith.constant 0 : i32
    return %c0_i32, %arg0 : i32, i32
  }
}

</mosaic_0001>

<bundles_post_ra>
// kernel: norm_conv2d_gru_forward.4
= control target key start
LH: loop header
LB: loop body
LE: loop exit
PB: predicated region body
PF: predicated region fallthrough
CT: control target
= control target key end

     0   :  { %vm19_vm0 = vcmask 1043456   ;;  %v104_v11 = vmov 839922192   ;;  %v35_v13 = vlaneseq  ;;  %vm82_vm1 = vcmask 3072   ;;  %s153_s0 = inlined_call_operand.vmem [shape: f32[4,512], index: 0, kind: input, shape index: {}]   ;;  %s154_s2 = inlined_call_operand.vmem [shape: f32[4,1], index: 2, kind: output, shape index: {1}]   ;;  %s155_s3 = inlined_call_operand.vmem [shape: f32[4,1], index: 3, kind: output, shape index: {2}]   ;;  %s156_s1 = inlined_call_operand.vmem [shape: f32[4,512], index: 1, kind: output, shape index: {0}]  }
   0x1   :  { %v11_v0 = vld [vmem:[%s153_s0] sm:$0xff]  ;;  %v12_v1 = vld [vmem:[%s153_s0 + $0x8] sm:$0xff]  ;;  %v33_v12 = vunpack.c.l.s4 %v104_v11 }
   0x2   :  { %v15_v2 = vcombine.high %v11_v0, %v11_v0  ;;  %v16_v3 = vcombine.high %v12_v1, %v12_v1  ;;  %v20_v4 = vsel %vm19_vm0, %v11_v0, 0.0  ;;  %v23_v6 = vsel %vm19_vm0, %v12_v1, 0.0 }
   0x3   :  { %v34_v14 = vunpack.c.0.s8 %v33_v12  ;;  %v36_v15 = vshrl.u32 %v35_v13, 7 }
   0x4   :  { %v21_v5 = vsel %vm19_vm0, %v15_v2, 0.0  ;;  %v25_v8 = vsel %vm19_vm0, %v16_v3, 0.0 }
   0x5   :  { %v22_v7 = vadd.f32 %v21_v5, %v20_v4  ;;  %v37_v16 = vsub.s32 %v34_v14, %v36_v15 }
   0x7   :  { %v24_v9 = vadd.f32 %v23_v6, %v22_v7 }
   0x9   :  { %v26_v10 = vadd.f32 %v25_v8, %v24_v9 }
   0xb   :  { %27 = vadd.xlane.f32.xlu0 %v26_v10 }
  0x98   :  { %v28_v17 = vpop.xlane.xlu0 %27 }
  0x99   :  { %v30_v18 = vmul.f32 0.001953125, %v28_v17 }
  0x9b   :  { %v38_v19 = vrot.slane %v30_v18, %v37_v16  ;;  %83 = vst.msk [vmem:[%s154_s2] sm:$0xf] %vm82_vm1, %v30_v18 }
  0x9d   :  { %v40_v20 = vsub.f32 %v11_v0, %v38_v19  ;;  %v41_v21 = vsub.f32 %v12_v1, %v38_v19 }
  0x9f   :  { %v42_v22 = vmul.f32 %v40_v20, %v40_v20  ;;  %v43_v23 = vmul.f32 %v41_v21, %v41_v21 }
  0xa1   :  { %v46_v24 = vcombine.high %v42_v22, %v42_v22  ;;  %v47_v25 = vcombine.high %v43_v23, %v43_v23  ;;  %v50_v26 = vsel %vm19_vm0, %v42_v22, 0.0  ;;  %v53_v29 = vsel %vm19_vm0, %v43_v23, 0.0 }
  0xa3   :  { %v51_v27 = vsel %vm19_vm0, %v46_v24, 0.0  ;;  %v55_v31 = vsel %vm19_vm0, %v47_v25, 0.0 }
  0xa4   :  { %v52_v28 = vadd.f32 %v51_v27, %v50_v26 }
  0xa6   :  { %v54_v30 = vadd.f32 %v53_v29, %v52_v28 }
  0xa8   :  { %v56_v32 = vadd.f32 %v55_v31, %v54_v30 }
  0xaa   :  { %57 = vadd.xlane.f32.xlu0 %v56_v32 }
 0x137   :  { %v58_v33 = vpop.xlane.xlu0 %57 }
 0x138   :  { %v60_v34 = vmul.f32 0.0019569471, %v58_v33 }
 0x13a   :  { %100 = vrsqrt.f32 %v60_v34  ;;  %vm63_vm2 = vcmp.eq.f32.partialorder %v60_v34, inf  ;;  %v66_v37 = vand.u32 2147483648, %v60_v34  ;;  %vm65_vm3 = vcmp.eq.f32.partialorder %v60_v34, 0.0 }
 0x144   :  { %v101_v35 = vpop.eup %100 }
 0x145   :  { %v62_v36 = vmul.f32 %v101_v35, %v60_v34 }
 0x147   :  { %v64_v38 = vsel %vm63_vm2, %v60_v34, %v62_v36 }
 0x148   :  { %v67_v39 = vsel %vm65_vm3, %v66_v37, %v64_v38 }
 0x149   :  { %102 = vrcp.f32 %v67_v39  ;;  %84 = vst.msk [vmem:[%s155_s3] sm:$0xf] %vm82_vm1, %v67_v39 }
 0x153   :  { %v103_v40 = vpop.eup %102 }
 0x154   :  { %v76_v41 = vrot.slane %v103_v40, %v37_v16 }
 0x156   :  { %v78_v42 = vmul.f32 %v76_v41, %v40_v20  ;;  %v79_v43 = vmul.f32 %v76_v41, %v41_v21 }
 0x158   :  { %80 = vst [vmem:[%s156_s1] sm:$0xff] %v78_v42  ;;  %81 = vst [vmem:[%s156_s1 + $0x8] sm:$0xff] %v79_v43 }

// kernel: norm_conv2d_gru_forward.5
= control target key start
LH: loop header
LB: loop body
LE: loop exit
PB: predicated region body
PF: predicated region fallthrough
CT: control target
= control target key end

     0   :  { %v2041_v1 = vmov 0   ;;  %vm228_vm0 = vcmask 1041408   ;;  %vm221_vm1 = vcmask 818176   ;;  %vm509_vm2 = vcmask 523264   ;;  %s2033_s0 = inlined_call_operand.vmem [shape: bf16[100,512], index: 0, kind: input, shape index: {}]   ;;  %s2034_s2 = inlined_call_operand.vmem [shape: bf16[32,100], index: 2, kind: input, shape index: {}]   ;;  %s2035_s3 = inlined_call_operand.vmem [shape: f32[32,1], index: 3, kind: input, shape index: {}]   ;;  %s2036_s6 = inlined_call_operand.vmem [shape: f32[96,1], index: 6, kind: input, shape index: {}]   ;;  %s2037_s4 = inlined_call_operand.vmem [shape: bf16[96,64], index: 4, kind: input, shape index: {}]   ;;  %s2038_s1 = inlined_call_operand.vmem [shape: f32[32,512], index: 1, kind: input, shape index: {}, may-alias: {1,7}]   ;;  %s2039_s5 = inlined_call_operand.vmem [shape: bf16[32,32], index: 5, kind: input, shape index: {}]   ;;  %s2040_s7 = inlined_call_operand.vmem [shape: f32[32,512], index: 7, kind: output, shape index: {}, may-alias: {1,7}]  }
   0x1   :  { %v1300_v0 = vld [vmem:[%s2033_s0 + $0x4] ss:$16 sps:$4 sm:$0xff]   ;;  %273 = vmatprep.mubr.bf16.mxu0 %v2041_v1  ;;  %326 = vmatprep.mubr.bf16.mxu1 %v2041_v1  ;;  %v1302_v2 = vld [vmem:[%s2033_s0 + $0xc] ss:$16 sps:$4 sm:$0xff]   ;;  %v1304_v3 = vld [vmem:[%s2033_s0] ss:$16 sps:$4 sm:$0xff]  }
   0x2   :  { %1298 = vset.pattern.permute.xlu0 %v2041_v1  ;;  %1299 = vset.pattern.permute.xlu1 %v2041_v1  ;;  %v1305_v4 = vld [vmem:[%s2033_s0 + $0x8] ss:$16 sps:$4 sm:$0xff]   ;;  %v1306_v5 = vld [vmem:[%s2033_s0 + $0x24] ss:$16 sps:$4 sm:$0xff]   ;;  %v1308_v6 = vld [vmem:[%s2033_s0 + $0x2c] ss:$16 sps:$4 sm:$0xff]  }
   0x3   :  { %241 = vmatprep.subr.bf16.mxu0 %v1300_v0  ;;  %294 = vmatprep.subr.bf16.mxu1 %v1302_v2  ;;  %v1310_v7 = vld [vmem:[%s2033_s0 + $0x20] ss:$16 sps:$4 sm:$0xff]   ;;  %v1311_v8 = vld [vmem:[%s2033_s0 + $0x28] ss:$16 sps:$4 sm:$0xff]   ;;  %v1312_v9 = vld [vmem:[%s2033_s0 + $0x44] ss:$16 sps:$4 sm:$0xff]  }
   0x4   :  { %242 = vmatpush1.bf16.msra.mxu0 %v1304_v3  ;;  %295 = vmatpush1.bf16.msra.mxu1 %v1305_v4  ;;  %v1314_v10 = vld [vmem:[%s2033_s0 + $0x4c] ss:$16 sps:$4 sm:$0xff]   ;;  %v1316_v11 = vld [vmem:[%s2033_s0 + $0x40] ss:$16 sps:$4 sm:$0xff]   ;;  %v1317_v12 = vld [vmem:[%s2033_s0 + $0x48] ss:$16 sps:$4 sm:$0xff]  }
   0x5   :  { %243 = vmatprep.subr.bf16.mxu0 %v1306_v5  ;;  %296 = vmatprep.subr.bf16.mxu1 %v1308_v6  ;;  %v1318_v13 = vld [vmem:[%s2033_s0 + $0x64] ss:$16 sps:$4 sm:$0xff]   ;;  %v1320_v14 = vld [vmem:[%s2033_s0 + $0x6c] ss:$16 sps:$4 sm:$0xff]   ;;  %v1322_v15 = vld [vmem:[%s2033_s0 + $0x60] ss:$16 sps:$4 sm:$0xff]  }
   0x6   :  { %v1323_v16 = vld [vmem:[%s2033_s0 + $0x68] ss:$16 sps:$4 sm:$0xff]   ;;  %v1324_v17 = vld [vmem:[%s2033_s0 + $0x84] ss:$16 sps:$4 sm:$0xff]   ;;  %v1326_v18 = vld [vmem:[%s2033_s0 + $0x8c] ss:$16 sps:$4 sm:$0xff]  }
   0x7   :  { %v1328_v19 = vld [vmem:[%s2033_s0 + $0x80] ss:$16 sps:$4 sm:$0xff]   ;;  %v1329_v20 = vld [vmem:[%s2033_s0 + $0x88] ss:$16 sps:$4 sm:$0xff]   ;;  %v1330_v21 = vld [vmem:[%s2033_s0 + $0xa4] ss:$16 sps:$4 sm:$0xff]  }
   0x8   :  { %244 = vmatpush1.bf16.msra.mxu0 %v1310_v7  ;;  %297 = vmatpush1.bf16.msra.mxu1 %v1311_v8  ;;  %v1332_v22 = vld [vmem:[%s2033_s0 + $0xac] ss:$16 sps:$4 sm:$0xff]   ;;  %v55_v23 = vld [vmem:[%s2033_s0 + $0xc0] sm:$0x33]  ;;  %v59_v26 = vld [vmem:[%s2035_s3 + $0x10] sm:$0xff]  ;;  %vm944_vm3 = vcmask 261120  }
   0x9   :  { %245 = vmatprep.subr.bf16.mxu0 %v1312_v9  ;;  %298 = vmatprep.subr.bf16.mxu1 %v1314_v10  ;;  %v56_v24 = vld [vmem:[%s2033_s0 + $0xc8] sm:$0x33]  ;;  %v57_v25 = vld [vmem:[%s2035_s3] sm:$0xff]  ;;  %v1200_v29 = vcombine.high %v55_v23, %v55_v23  ;;  %v1199_v32 = vcombine.low %v55_v23, %v55_v23  ;;  %v60_v34 = vld [vmem:[%s2035_s3 + $0x18] sm:$0xff] }
   0xa   :  { %63 = vperm.xlu0 %1298, %v57_v25   ;;  %v1334_v27 = vld [vmem:[%s2033_s0 + $0xa0] ss:$16 sps:$4 sm:$0xff]   ;;  %v1335_v28 = vld [vmem:[%s2033_s0 + $0xa8] ss:$16 sps:$4 sm:$0xff]   ;;  %v1202_v31 = vcombine.high %v56_v24, %v56_v24  ;;  %v1201_v33 = vcombine.low %v56_v24, %v56_v24  ;;  %73 = vperm.xlu1 %1299, %v59_v26  }
   0xb   :  { %v58_v30 = vld [vmem:[%s2035_s3 + $0x8] sm:$0xff]  ;;  %v411_v35 = vld [vmem:[%s2036_s6 + $0x20] sm:$0xff]  ;;  %v230_v36 = vsel %vm228_vm0, %v1199_v32, 0  ;;  %v413_v40 = vld [vmem:[%s2036_s6 + $0x30] sm:$0xff] }
   0xc   :  { %246 = vmatpush1.bf16.msra.mxu0 %v1316_v11  ;;  %299 = vmatpush1.bf16.msra.mxu1 %v1317_v12  ;;  %v236_v37 = vsel %vm228_vm0, %v1201_v33, 0  ;;  %v1340_v38 = vld [vmem:[%s2034_s2] sm:$0xff]   ;;  %v412_v39 = vld [vmem:[%s2036_s6 + $0x28] sm:$0xff]  ;;  %v414_v41 = vld [vmem:[%s2036_s6 + $0x38] sm:$0xff] }
   0xd   :  { %247 = vmatprep.subr.bf16.mxu0 %v1318_v13  ;;  %300 = vmatprep.subr.bf16.mxu1 %v1320_v14  ;;  %v407_v42 = vld [vmem:[%s2036_s6] sm:$0xff]  ;;  %v1341_v43 = vld [vmem:[%s2034_s2 + $0x8] sm:$0xff]   ;;  %v409_v45 = vld [vmem:[%s2036_s6 + $0x10] sm:$0xff] }
   0xe   :  { %68 = vperm.xlu0 %1298, %v58_v30   ;;  %78 = vperm.xlu1 %1299, %v60_v34   ;;  %v408_v44 = vld [vmem:[%s2036_s6 + $0x8] sm:$0xff]  ;;  %v410_v46 = vld [vmem:[%s2036_s6 + $0x18] sm:$0xff]  ;;  %v415_v47 = vld [vmem:[%s2036_s6 + $0x40] sm:$0xff] }
   0xf   :  { %v416_v48 = vld [vmem:[%s2036_s6 + $0x48] sm:$0xff]  ;;  %v417_v49 = vld [vmem:[%s2036_s6 + $0x50] sm:$0xff]  ;;  %v418_v50 = vld [vmem:[%s2036_s6 + $0x58] sm:$0xff] }
  0x10   :  { %248 = vmatpush1.bf16.msra.mxu0 %v1322_v15  ;;  %301 = vmatpush1.bf16.msra.mxu1 %v1323_v16 }
  0x11   :  { %249 = vmatprep.subr.bf16.mxu0 %v1324_v17  ;;  %302 = vmatprep.subr.bf16.mxu1 %v1326_v18 }
  0x12   :  { %441 = vperm.xlu0 %1298, %v411_v35   ;;  %446 = vperm.xlu1 %1299, %v412_v39  }
  0x14   :  { %250 = vmatpush1.bf16.msra.mxu0 %v1328_v19  ;;  %303 = vmatpush1.bf16.msra.mxu1 %v1329_v20 }
  0x15   :  { %251 = vmatprep.subr.bf16.mxu0 %v1330_v21  ;;  %304 = vmatprep.subr.bf16.mxu1 %v1332_v22 }
  0x16   :  { %451 = vperm.xlu0 %1298, %v413_v40   ;;  %456 = vperm.xlu1 %1299, %v414_v41  }
  0x18   :  { %252 = vmatpush1.bf16.msra.mxu0 %v1334_v27  ;;  %305 = vmatpush1.bf16.msra.mxu1 %v1335_v28 }
  0x19   :  { %1203 = vmatprep.subr.msk.bf16.mxu0 %vm228_vm0, %v1200_v29  ;;  %1206 = vmatprep.subr.msk.bf16.mxu1 %vm228_vm0, %v1202_v31 }
  0x1a   :  { %421 = vperm.xlu0 %1298, %v407_v42   ;;  %426 = vperm.xlu1 %1299, %v408_v44   ;;  %v1708_v42 = vld [vmem:[%s2038_s1 + $0x18] sm:$0xff] }
  0x1c   :  { %254 = vmatpush1.bf16.msra.mxu0 %v230_v36  ;;  %307 = vmatpush1.bf16.msra.mxu1 %v236_v37  ;;  %v1698_v36 = vld [vmem:[%s2038_s1 + $0x8] sm:$0xff] }
  0x1d   :  { %v1703_v37 = vld [vmem:[%s2038_s1 + $0x28] sm:$0xff] }
  0x1e   :  { %431 = vperm.xlu0 %1298, %v409_v45   ;;  %436 = vperm.xlu1 %1299, %v410_v46  }
  0x1f   :  { %1204 = vmatmul.mubr.msk.bf16.vlgmr.msra.gmra.mrb[0].mxu0 %vm221_vm1, %v1340_v38  ;;  %1207 = vmatmul.mubr.msk.bf16.vlgmr.msra.gmra.mrb[0].mxu1 %vm221_vm1, %v1340_v38 }
  0x20   :  { %283 = vmatprep.mubr.bf16.mxu0 %v2041_v1  ;;  %336 = vmatprep.mubr.bf16.mxu1 %v2041_v1 }
  0x22   :  { %461 = vperm.xlu0 %1298, %v415_v47   ;;  %466 = vperm.xlu1 %1299, %v416_v48  }
  0x26   :  { %471 = vperm.xlu0 %1298, %v417_v49   ;;  %476 = vperm.xlu1 %1299, %v418_v50   ;;  %v1718_v50 = vld [vmem:[%s2038_s1] sm:$0xff] }
  0x27   :  { %1205 = vmatmul.mubr.msk.bf16.gmra.mrb[4].mxu0 %vm221_vm1, %v1341_v43  ;;  %1208 = vmatmul.mubr.msk.bf16.gmra.mrb[4].mxu1 %vm221_vm1, %v1341_v43  ;;  %v1713_v43 = vld [vmem:[%s2038_s1 + $0x38] sm:$0xff] }
  0x28   :  { %560 = vmatprep.mubr.bf16.mxu0 %v2041_v1  ;;  %653 = vmatprep.mubr.bf16.mxu1 %v2041_v1 }
  0x89   :  { %v64_v51 = vpop.permute.xlu0 %63  ;;  %v74_v52 = vpop.permute.xlu1 %73 }
  0x8d   :  { %v69_v53 = vpop.permute.xlu0 %68  ;;  %v79_v15 = vpop.permute.xlu1 %78 }
  0xf2   :  { %v275_v54 = vpop.f32.mrb[0].mxu0  ;;  %v328_v55 = vpop.f32.mrb[0].mxu1 }
  0xf3   :  { %v276_v56 = vadd.f32 %v275_v54, %v64_v51  ;;  %v329_v57 = vadd.f32 %v328_v55, %v64_v51  ;;  %v277_v58 = vpop.f32.mrb[1].mxu0  ;;  %v330_v59 = vpop.f32.mrb[1].mxu1  ;;  %v388_v54 = vpack.c.bf16 %v1703_v37, %v1698_v36  ;;  %v390_v55 = vpack.c.bf16 %v1713_v43, %v1708_v42 }
  0xf4   :  { %v278_v60 = vadd.f32 %v277_v58, %v64_v51  ;;  %v331_v61 = vadd.f32 %v330_v59, %v64_v51  ;;  %v279_v62 = vpop.f32.mrb[2].mxu0  ;;  %v332_v63 = vpop.f32.mrb[2].mxu1  ;;  %v1723_v51 = vld [vmem:[%s2038_s1 + $0x20] sm:$0xff]  ;;  %v1742_v58 = vld [vmem:[%s2038_s1 + $0x48] sm:$0xff] }
  0xf5   :  { %v280_v0 = vadd.f32 %v279_v62, %v69_v53  ;;  %v333_v2 = vadd.f32 %v332_v63, %v69_v53  ;;  %v281_v3 = vpop.f32.mrb[3].mxu0  ;;  %v334_v4 = vpop.f32.mrb[3].mxu1  ;;  %v347_v7 = vmax.f32 %v276_v56, 0.0  ;;  %v349_v8 = vmax.f32 %v329_v57, 0.0  ;;  %v1732_v56 = vld [vmem:[%s2038_s1 + $0x10] sm:$0xff]  ;;  %v1747_v59 = vld [vmem:[%s2038_s1 + $0x68] sm:$0xff] }
  0xf6   :  { %v282_v5 = vadd.f32 %v281_v3, %v69_v53  ;;  %v335_v6 = vadd.f32 %v334_v4, %v69_v53  ;;  %v348_v11 = vmax.f32 %v278_v60, 0.0  ;;  %v350_v12 = vmax.f32 %v331_v61, 0.0  ;;  %v1737_v57 = vld [vmem:[%s2038_s1 + $0x30] sm:$0xff]  ;;  %v1752_v60 = vld [vmem:[%s2038_s1 + $0x58] sm:$0xff]  ;;  %v1775_v4 = vld [vmem:[%s2038_s1 + $0x60] sm:$0xff] }
  0xf7   :  { %v351_v9 = vmax.f32 %v280_v0, 0.0  ;;  %v353_v10 = vmax.f32 %v333_v2, 0.0  ;;  %v1757_v61 = vld [vmem:[%s2038_s1 + $0x78] sm:$0xff]  ;;  %v387_v62 = vpack.c.bf16 %v1723_v51, %v1718_v50  ;;  %v389_v63 = vpack.c.bf16 %v1737_v57, %v1732_v56  ;;  %v1766_v0 = vld [vmem:[%s2038_s1 + $0x40] sm:$0xff] }
  0xf8   :  { %v352_v13 = vmax.f32 %v282_v5, 0.0  ;;  %v354_v14 = vmax.f32 %v335_v6, 0.0  ;;  %v392_v2 = vpack.c.bf16 %v1747_v59, %v1742_v58  ;;  %v394_v3 = vpack.c.bf16 %v1757_v61, %v1752_v60  ;;  %v1780_v5 = vld [vmem:[%s2038_s1 + $0x50] sm:$0xff] }
  0xf9   :  { %v379_v16 = vpack.c.bf16 %v351_v9, %v347_v7  ;;  %v381_v17 = vpack.c.bf16 %v353_v10, %v349_v8  ;;  %v1785_v6 = vld [vmem:[%s2038_s1 + $0x70] sm:$0xff]  ;;  %v391_v7 = vpack.c.bf16 %v1775_v4, %v1766_v0  ;;  %v1342_v9 = vld [vmem:[%s2037_s4] sm:$0xff]   ;;  %v1343_v10 = vld [vmem:[%s2037_s4 + $0x8] sm:$0xff]  }
  0xfa   :  { %v380_v18 = vpack.c.bf16 %v352_v13, %v348_v11  ;;  %v382_v19 = vpack.c.bf16 %v354_v14, %v350_v12  ;;  %v285_v20 = vpop.f32.mrb[4].mxu0  ;;  %v338_v21 = vpop.f32.mrb[4].mxu1  ;;  %v393_v8 = vpack.c.bf16 %v1785_v6, %v1780_v5  ;;  %v1344_v11 = vld [vmem:[%s2037_s4 + $0x10] sm:$0xff]   ;;  %v1345_v12 = vld [vmem:[%s2037_s4 + $0x18] sm:$0xff]   ;;  %v1346_v13 = vld [vmem:[%s2037_s4 + $0x20] sm:$0xff]  }
  0xfb   :  { %v286_v22 = vadd.f32 %v285_v20, %v74_v52  ;;  %v339_v23 = vadd.f32 %v338_v21, %v74_v52  ;;  %v287_v24 = vpop.f32.mrb[5].mxu0  ;;  %v340_v25 = vpop.f32.mrb[5].mxu1  ;;  %v1347_v14 = vld [vmem:[%s2037_s4 + $0x28] sm:$0xff]  }
  0xfc   :  { %v288_v26 = vadd.f32 %v287_v24, %v74_v52  ;;  %v341_v27 = vadd.f32 %v340_v25, %v74_v52  ;;  %v289_v28 = vpop.f32.mrb[6].mxu0  ;;  %v342_v29 = vpop.f32.mrb[6].mxu1  ;;  %528 = vmatprep.subr.bf16.mxu0 %v380_v18  ;;  %621 = vmatprep.subr.bf16.mxu1 %v382_v19 }
  0xfd   :  { %v290_v30 = vadd.f32 %v289_v28, %v79_v15  ;;  %v343_v31 = vadd.f32 %v342_v29, %v79_v15  ;;  %v291_v32 = vpop.f32.mrb[7].mxu0  ;;  %v344_v33 = vpop.f32.mrb[7].mxu1  ;;  %529 = vmatpush1.bf16.msra.mxu0 %v379_v16  ;;  %622 = vmatpush1.bf16.msra.mxu1 %v381_v17  ;;  %v355_v38 = vmax.f32 %v286_v22, 0.0  ;;  %v357_v39 = vmax.f32 %v339_v23, 0.0 }
  0xfe   :  { %v292_v34 = vadd.f32 %v291_v32, %v79_v15  ;;  %v345_v35 = vadd.f32 %v344_v33, %v79_v15  ;;  %v356_v44 = vmax.f32 %v288_v26, 0.0  ;;  %v358_v45 = vmax.f32 %v341_v27, 0.0 }
  0xff   :  { %v359_v40 = vmax.f32 %v290_v30, 0.0  ;;  %v361_v41 = vmax.f32 %v343_v31, 0.0 }
 0x100   :  { %v360_v46 = vmax.f32 %v292_v34, 0.0  ;;  %v362_v47 = vmax.f32 %v345_v35, 0.0 }
 0x101   :  { %v383_v48 = vpack.c.bf16 %v359_v40, %v355_v38  ;;  %v385_v49 = vpack.c.bf16 %v361_v41, %v357_v39  ;;  %v442_v41 = vpop.permute.xlu0 %441 }
 0x102   :  { %v384_v52 = vpack.c.bf16 %v360_v46, %v356_v44  ;;  %v386_v53 = vpack.c.bf16 %v362_v47, %v358_v45 }
 0x104   :  { %530 = vmatprep.subr.bf16.mxu0 %v384_v52  ;;  %623 = vmatprep.subr.bf16.mxu1 %v386_v53 }
 0x105   :  { %531 = vmatpush1.bf16.msra.mxu0 %v383_v48  ;;  %624 = vmatpush1.bf16.msra.mxu1 %v385_v49 }
 0x106   :  { %532 = vmatprep.subr.bf16.mxu0 %v388_v54  ;;  %625 = vmatprep.subr.bf16.mxu1 %v390_v55 }
 0x109   :  { %533 = vmatpush1.bf16.msra.mxu0 %v387_v62  ;;  %626 = vmatpush1.bf16.msra.mxu1 %v389_v63  ;;  %v447_v63 = vpop.permute.xlu1 %446 }
 0x10a   :  { %534 = vmatprep.subr.bf16.mxu0 %v392_v2  ;;  %627 = vmatprep.subr.bf16.mxu1 %v394_v3 }
 0x10d   :  { %535 = vmatpush1.bf16.msra.mxu0 %v391_v7  ;;  %628 = vmatpush1.bf16.msra.mxu1 %v393_v8 }
 0x110   :  { %1215 = vmatmul.mubr.msk.bf16.vlgmr.msra.gmra.mrb[8].mxu0 %vm509_vm2, %v1342_v9  ;;  %1221 = vmatmul.mubr.msk.bf16.vlgmr.msra.gmra.mrb[8].mxu1 %vm509_vm2, %v1342_v9 }
 0x111   :  { %570 = vmatprep.mubr.bf16.mxu0 %v2041_v1  ;;  %663 = vmatprep.mubr.bf16.mxu1 %v2041_v1 }
 0x118   :  { %1216 = vmatmul.mubr.msk.bf16.gmra.mrb[12].mxu0 %vm509_vm2, %v1343_v10  ;;  %1222 = vmatmul.mubr.msk.bf16.gmra.mrb[12].mxu1 %vm509_vm2, %v1343_v10 }
 0x119   :  { %580 = vmatprep.mubr.bf16.mxu0 %v2041_v1  ;;  %673 = vmatprep.mubr.bf16.mxu1 %v2041_v1 }
 0x120   :  { %1217 = vmatmul.mubr.msk.bf16.gmra.mrb[16].mxu0 %vm509_vm2, %v1344_v11  ;;  %1223 = vmatmul.mubr.msk.bf16.gmra.mrb[16].mxu1 %vm509_vm2, %v1344_v11 }
 0x121   :  { %590 = vmatprep.mubr.bf16.mxu0 %v2041_v1  ;;  %683 = vmatprep.mubr.bf16.mxu1 %v2041_v1 }
 0x128   :  { %1218 = vmatmul.mubr.msk.bf16.gmra.mrb[20].mxu0 %vm509_vm2, %v1345_v12  ;;  %1224 = vmatmul.mubr.msk.bf16.gmra.mrb[20].mxu1 %vm509_vm2, %v1345_v12 }
 0x129   :  { %600 = vmatprep.mubr.bf16.mxu0 %v2041_v1  ;;  %693 = vmatprep.mubr.bf16.mxu1 %v2041_v1 }
 0x130   :  { %1219 = vmatmul.mubr.msk.bf16.gmra.mrb[24].mxu0 %vm509_vm2, %v1346_v13  ;;  %1225 = vmatmul.mubr.msk.bf16.gmra.mrb[24].mxu1 %vm509_vm2, %v1346_v13 }
 0x131   :  { %610 = vmatprep.mubr.bf16.mxu0 %v2041_v1  ;;  %703 = vmatprep.mubr.bf16.mxu1 %v2041_v1 }
 0x138   :  { %1220 = vmatmul.mubr.msk.bf16.gmra.mrb[28].mxu0 %vm509_vm2, %v1347_v14  ;;  %1226 = vmatmul.mubr.msk.bf16.gmra.mrb[28].mxu1 %vm509_vm2, %v1347_v14 }
 0x139   :  { %983 = vmatprep.mubr.bf16.mxu0 %v2041_v1  ;;  %1036 = vmatprep.mubr.bf16.mxu1 %v2041_v1  ;;  %v452_v1 = vpop.permute.xlu0 %451 }
 0x1e3   :  { %v1833_v15 = vpop.f32.mrb[8].mxu0  ;;  %v1835_v16 = vpop.f32.mrb[8].mxu1 }
 0x1e4   :  { %v1837_v17 = vpop.f32.mrb[9].mxu0  ;;  %v1839_v18 = vpop.f32.mrb[9].mxu1 }
 0x1e5   :  { %v1841_v19 = vpop.f32.mrb[10].mxu0  ;;  %v1843_v20 = vpop.f32.mrb[10].mxu1 }
 0x1e6   :  { %v1845_v21 = vpop.f32.mrb[11].mxu0  ;;  %v1847_v22 = vpop.f32.mrb[11].mxu1 }
 0x1eb   :  { %v1849_v23 = vpop.f32.mrb[12].mxu0  ;;  %v1851_v24 = vpop.f32.mrb[12].mxu1 }
 0x1ec   :  { %v1853_v25 = vpop.f32.mrb[13].mxu0  ;;  %v1855_v26 = vpop.f32.mrb[13].mxu1 }
 0x1ed   :  { %v1857_v27 = vpop.f32.mrb[14].mxu0  ;;  %v1859_v28 = vpop.f32.mrb[14].mxu1 }
 0x1ee   :  { %v1861_v29 = vpop.f32.mrb[15].mxu0  ;;  %v1863_v30 = vpop.f32.mrb[15].mxu1 }
 0x1ef   :  { %2043 = vst [vmem:[#allocation2_spill] sm:$0xff] %v1863_v30 }
 0x1f3   :  { %v582_v31 = vpop.f32.mrb[16].mxu0  ;;  %v675_v32 = vpop.f32.mrb[16].mxu1 }
 0x1f4   :  { %v584_v33 = vpop.f32.mrb[17].mxu0  ;;  %v677_v34 = vpop.f32.mrb[17].mxu1  ;;  %v583_v47 = vadd.f32 %v582_v31, %v442_v41  ;;  %v676_v52 = vadd.f32 %v675_v32, %v442_v41 }
 0x1f5   :  { %v586_v35 = vpop.f32.mrb[18].mxu0  ;;  %v679_v38 = vpop.f32.mrb[18].mxu1  ;;  %v585_v55 = vadd.f32 %v584_v33, %v442_v41  ;;  %v678_v2 = vadd.f32 %v677_v34, %v442_v41 }
 0x1f6   :  { %v588_v39 = vpop.f32.mrb[19].mxu0  ;;  %v681_v40 = vpop.f32.mrb[19].mxu1  ;;  %v1243_v3 = vmul.f32 -1.442695, %v583_v47  ;;  %v587_v7 = vadd.f32 %v586_v35, %v447_v63  ;;  %v1245_v8 = vmul.f32 -1.442695, %v676_v52  ;;  %v680_v9 = vadd.f32 %v679_v38, %v447_v63 }
 0x1f7   :  { %v1244_v10 = vmul.f32 -1.442695, %v585_v55  ;;  %v589_v11 = vadd.f32 %v588_v39, %v447_v63  ;;  %v1246_v12 = vmul.f32 -1.442695, %v678_v2  ;;  %v682_v13 = vadd.f32 %v681_v40, %v447_v63 }
 0x1f8   :  { %1350 = vpow2.f32 %v1243_v3  ;;  %v1247_v14 = vmul.f32 -1.442695, %v587_v7  ;;  %v1249_v31 = vmul.f32 -1.442695, %v680_v9 }
 0x1f9   :  { %1352 = vpow2.f32 %v1245_v8  ;;  %v1248_v32 = vmul.f32 -1.442695, %v589_v11  ;;  %v1250_v33 = vmul.f32 -1.442695, %v682_v13 }
 0x1fa   :  { %1354 = vpow2.f32 %v1244_v10 }
 0x1fb   :  { %v592_v44 = vpop.f32.mrb[20].mxu0  ;;  %v685_v45 = vpop.f32.mrb[20].mxu1  ;;  %1356 = vpow2.f32 %v1246_v12 }
 0x1fc   :  { %v594_v46 = vpop.f32.mrb[21].mxu0  ;;  %v687_v48 = vpop.f32.mrb[21].mxu1  ;;  %v593_v30 = vadd.f32 %v592_v44, %v452_v1  ;;  %1358 = vpow2.f32 %v1247_v14  ;;  %v686_v34 = vadd.f32 %v685_v45, %v452_v1 }
 0x1fd   :  { %v596_v49 = vpop.f32.mrb[22].mxu0  ;;  %v689_v53 = vpop.f32.mrb[22].mxu1  ;;  %1360 = vpow2.f32 %v1249_v31  ;;  %v595_v7 = vadd.f32 %v594_v46, %v452_v1  ;;  %v688_v10 = vadd.f32 %v687_v48, %v452_v1 }
 0x1fe   :  { %v598_v54 = vpop.f32.mrb[23].mxu0  ;;  %v691_v62 = vpop.f32.mrb[23].mxu1  ;;  %1362 = vpow2.f32 %v1248_v32  ;;  %v1251_v35 = vmul.f32 -1.442695, %v593_v30  ;;  %v1253_v38 = vmul.f32 -1.442695, %v686_v34 }
 0x1ff   :  { %1364 = vpow2.f32 %v1250_v33  ;;  %v457_v30 = vpop.permute.xlu1 %456  ;;  %v1252_v32 = vmul.f32 -1.442695, %v595_v7  ;;  %v1254_v34 = vmul.f32 -1.442695, %v688_v10 }
 0x200   :  { %1366 = vpow2.f32 %v1251_v35  ;;  %v597_v13 = vadd.f32 %v596_v49, %v457_v30  ;;  %v690_v31 = vadd.f32 %v689_v53, %v457_v30  ;;  %v599_v33 = vadd.f32 %v598_v54, %v457_v30 }
 0x201   :  { %1368 = vpow2.f32 %v1253_v38  ;;  %v692_v35 = vadd.f32 %v691_v62, %v457_v30 }
 0x202   :  { %v1351_v39 = vpop.eup %1350  ;;  %v1255_v46 = vmul.f32 -1.442695, %v597_v13  ;;  %v1256_v1 = vmul.f32 -1.442695, %v599_v33 }
 0x203   :  { %v1353_v41 = vpop.eup %1352  ;;  %v858_v40 = vadd.f32 1.0, %v1351_v39 }
 0x204   :  { %v1355_v47 = vpop.eup %1354  ;;  %v860_v52 = vadd.f32 1.0, %v1353_v41  ;;  %v1257_v41 = vmul.f32 -1.442695, %v690_v31 }
 0x205   :  { %v1357_v55 = vpop.eup %1356  ;;  %1370 = vrcp.f32 %v858_v40  ;;  %v859_v63 = vadd.f32 1.0, %v1355_v47  ;;  %v1258_v47 = vmul.f32 -1.442695, %v692_v35 }
 0x206   :  { %v1359_v2 = vpop.eup %1358  ;;  %1372 = vrcp.f32 %v860_v52  ;;  %v861_v44 = vadd.f32 1.0, %v1357_v55 }
 0x207   :  { %v1361_v3 = vpop.eup %1360  ;;  %1374 = vrcp.f32 %v859_v63  ;;  %v862_v45 = vadd.f32 1.0, %v1359_v2 }
 0x208   :  { %v1363_v8 = vpop.eup %1362  ;;  %1376 = vrcp.f32 %v861_v44  ;;  %v864_v9 = vadd.f32 1.0, %v1361_v3 }
 0x209   :  { %v1365_v11 = vpop.eup %1364  ;;  %1378 = vrcp.f32 %v862_v45  ;;  %v863_v12 = vadd.f32 1.0, %v1363_v8 }
 0x20a   :  { %1380 = vrcp.f32 %v864_v9  ;;  %v865_v14 = vadd.f32 1.0, %v1365_v11  ;;  %v1367_v38 = vpop.eup %1366 }
 0x20b   :  { %1382 = vrcp.f32 %v863_v12  ;;  %v1369_v39 = vpop.eup %1368  ;;  %v866_v45 = vadd.f32 1.0, %v1367_v38 }
 0x20c   :  { %1384 = vrcp.f32 %v865_v14  ;;  %v868_v9 = vadd.f32 1.0, %v1369_v39 }
 0x20d   :  { %1386 = vpow2.f32 %v1252_v32 }
 0x20e   :  { %1388 = vpow2.f32 %v1254_v34 }
 0x20f   :  { %v1371_v40 = vpop.eup %1370  ;;  %1390 = vpow2.f32 %v1255_v46 }
 0x210   :  { %v1373_v48 = vpop.eup %1372  ;;  %1392 = vpow2.f32 %v1257_v41  ;;  %v910_v62 = vmul.f32 %v1371_v40, %v1718_v50 }
 0x211   :  { %v1375_v49 = vpop.eup %1374  ;;  %1394 = vpow2.f32 %v1256_v1  ;;  %v912_v2 = vmul.f32 %v1373_v48, %v1732_v56 }
 0x212   :  { %v1377_v52 = vpop.eup %1376  ;;  %1396 = vpow2.f32 %v1258_v47  ;;  %v911_v7 = vmul.f32 %v1375_v49, %v1698_v36 }
 0x213   :  { %v1379_v53 = vpop.eup %1378  ;;  %v913_v10 = vmul.f32 %v1377_v52, %v1708_v42  ;;  %1398 = vrcp.f32 %v866_v45 }
 0x214   :  { %v1381_v54 = vpop.eup %1380  ;;  %v914_v55 = vmul.f32 %v1379_v53, %v1723_v51  ;;  %1400 = vrcp.f32 %v868_v9 }
 0x215   :  { %v1383_v63 = vpop.eup %1382  ;;  %v916_v44 = vmul.f32 %v1381_v54, %v1737_v57 }
 0x216   :  { %v1385_v3 = vpop.eup %1384  ;;  %v915_v8 = vmul.f32 %v1383_v63, %v1703_v37  ;;  %v926_v30 = vpack.c.bf16 %v914_v55, %v910_v62 }
 0x217   :  { %v917_v11 = vmul.f32 %v1385_v3, %v1713_v43  ;;  %v928_v12 = vpack.c.bf16 %v916_v44, %v912_v2  ;;  %v1387_v14 = vpop.eup %1386 }
 0x218   :  { %v927_v13 = vpack.c.bf16 %v915_v8, %v911_v7  ;;  %v1389_v32 = vpop.eup %1388  ;;  %v867_v33 = vadd.f32 1.0, %v1387_v14  ;;  %v1348_v14 = vld [vmem:[%s2039_s5] sm:$0xff]  }
 0x219   :  { %v929_v31 = vpack.c.bf16 %v917_v11, %v913_v10  ;;  %v1391_v34 = vpop.eup %1390  ;;  %v869_v35 = vadd.f32 1.0, %v1389_v32  ;;  %v1349_v32 = vld [vmem:[%s2039_s5 + $0x8] sm:$0xff]  }
 0x21a   :  { %951 = vmatprep.subr.bf16.mxu0 %v927_v13  ;;  %v1393_v38 = vpop.eup %1392  ;;  %1402 = vrcp.f32 %v867_v33  ;;  %v870_v46 = vadd.f32 1.0, %v1391_v34  ;;  %v422_v33 = vpop.permute.xlu0 %421 }
 0x21b   :  { %1004 = vmatprep.subr.bf16.mxu1 %v929_v31  ;;  %952 = vmatpush1.bf16.msra.mxu0 %v926_v30  ;;  %v1395_v39 = vpop.eup %1394  ;;  %1404 = vrcp.f32 %v869_v35  ;;  %v872_v41 = vadd.f32 1.0, %v1393_v38  ;;  %v2044_v31 = vmov 0   ;;  %v563_v34 = vadd.f32 %v1833_v15, %v422_v33 }
 0x21c   :  { %1005 = vmatpush1.bf16.msra.mxu1 %v928_v12  ;;  %v1397_v40 = vpop.eup %1396  ;;  %1406 = vrcp.f32 %v870_v46  ;;  %v871_v1 = vadd.f32 1.0, %v1395_v39  ;;  %v656_v35 = vadd.f32 %v1835_v16, %v422_v33  ;;  %v565_v38 = vadd.f32 %v1837_v17, %v422_v33  ;;  %v427_v46 = vpop.permute.xlu1 %426 }
 0x21d   :  { %1408 = vrcp.f32 %v872_v41  ;;  %v873_v48 = vadd.f32 1.0, %v1397_v40  ;;  %v1399_v47 = vpop.eup %1398  ;;  %v658_v39 = vadd.f32 %v1839_v18, %v422_v33  ;;  %v1227_v41 = vmul.f32 -1.442695, %v563_v34 }
 0x21e   :  { %1410 = vrcp.f32 %v871_v1  ;;  %v1401_v49 = vpop.eup %1400  ;;  %v918_v55 = vmul.f32 %v1399_v47, %v1766_v0  ;;  %v567_v40 = vadd.f32 %v1841_v19, %v427_v46  ;;  %v1229_v1 = vmul.f32 -1.442695, %v656_v35 }
 0x21f   :  { %1412 = vrcp.f32 %v873_v48  ;;  %v920_v44 = vmul.f32 %v1401_v49, %v1780_v5  ;;  %v660_v48 = vadd.f32 %v1843_v20, %v427_v46  ;;  %v1228_v47 = vmul.f32 -1.442695, %v565_v38 }
 0x220   :  { %v569_v49 = vadd.f32 %v1845_v21, %v427_v46  ;;  %v662_v15 = vadd.f32 %v1847_v22, %v427_v46  ;;  %1414 = vpow2.f32 %v1227_v41  ;;  %v1231_v16 = vmul.f32 -1.442695, %v567_v40  ;;  %v437_v20 = vpop.permute.xlu1 %436 }
 0x221   :  { %1416 = vpow2.f32 %v1229_v1  ;;  %v577_v22 = vadd.f32 %v1857_v27, %v437_v20 }
 0x222   :  { %1418 = vpow2.f32 %v1228_v47  ;;  %v1232_v19 = vmul.f32 -1.442695, %v569_v49 }
 0x224   :  { %v1403_v52 = vpop.eup %1402 }
 0x225   :  { %v1405_v53 = vpop.eup %1404  ;;  %v919_v7 = vmul.f32 %v1403_v52, %v1742_v58  ;;  %v432_v52 = vpop.permute.xlu0 %431 }
 0x226   :  { %v1407_v54 = vpop.eup %1406  ;;  %v921_v9 = vmul.f32 %v1405_v53, %v1752_v60  ;;  %v1230_v53 = vmul.f32 -1.442695, %v658_v39  ;;  %v573_v17 = vadd.f32 %v1849_v23, %v432_v52  ;;  %v666_v18 = vadd.f32 %v1851_v24, %v432_v52 }
 0x227   :  { %v1409_v62 = vpop.eup %1408  ;;  %v922_v63 = vmul.f32 %v1407_v54, %v1775_v4  ;;  %v1233_v54 = vmul.f32 -1.442695, %v660_v48  ;;  %v668_v21 = vadd.f32 %v1855_v26, %v432_v52  ;;  %v670_v23 = vadd.f32 %v1859_v28, %v437_v20 }
 0x228   :  { %v1411_v2 = vpop.eup %1410  ;;  %v924_v3 = vmul.f32 %v1409_v62, %v1785_v6  ;;  %v575_v62 = vadd.f32 %v1853_v25, %v432_v52  ;;  %1420 = vpow2.f32 %v1230_v53  ;;  %v579_v24 = vadd.f32 %v1861_v29, %v437_v20  ;;  %v2045_v25 = vld [vmem:[#allocation2_spill] sm:$0xff] }
 0x229   :  { %v1413_v45 = vpop.eup %1412  ;;  %v923_v8 = vmul.f32 %v1411_v2, %v1747_v59  ;;  %v930_v30 = vpack.c.bf16 %v922_v63, %v918_v55  ;;  %v1234_v55 = vmul.f32 -1.442695, %v662_v15  ;;  %1422 = vpow2.f32 %v1231_v16 }
 0x22a   :  { %v925_v10 = vmul.f32 %v1413_v45, %v1757_v61  ;;  %v932_v11 = vpack.c.bf16 %v924_v3, %v920_v44  ;;  %v1235_v63 = vmul.f32 -1.442695, %v573_v17  ;;  %1424 = vpow2.f32 %v1233_v54 }
 0x22b   :  { %v931_v12 = vpack.c.bf16 %v923_v8, %v919_v7  ;;  %v1237_v2 = vmul.f32 -1.442695, %v666_v18  ;;  %1426 = vpow2.f32 %v1232_v19  ;;  %v1236_v44 = vmul.f32 -1.442695, %v575_v62  ;;  %v1415_v8 = vpop.eup %1414 }
 0x22c   :  { %v933_v13 = vpack.c.bf16 %v925_v10, %v921_v9  ;;  %1428 = vpow2.f32 %v1234_v55  ;;  %v1238_v3 = vmul.f32 -1.442695, %v668_v21  ;;  %v672_v45 = vadd.f32 %v2045_v25, %v437_v20  ;;  %v1417_v27 = vpop.eup %1416 }
 0x22d   :  { %953 = vmatprep.subr.bf16.mxu0 %v931_v12  ;;  %1430 = vpow2.f32 %v1235_v63  ;;  %v1239_v7 = vmul.f32 -1.442695, %v577_v22  ;;  %v1241_v26 = vmul.f32 -1.442695, %v670_v23  ;;  %v1419_v10 = vpop.eup %1418  ;;  %v764_v12 = vadd.f32 1.0, %v1417_v27  ;;  %v462_v63 = vpop.permute.xlu0 %461 }
 0x22e   :  { %1006 = vmatprep.subr.bf16.mxu1 %v933_v13  ;;  %954 = vmatpush1.bf16.msra.mxu0 %v930_v30  ;;  %1432 = vpow2.f32 %v1237_v2  ;;  %v1240_v30 = vmul.f32 -1.442695, %v579_v24  ;;  %v1242_v9 = vmul.f32 -1.442695, %v672_v45  ;;  %v467_v2 = vpop.permute.xlu1 %466 }
 0x22f   :  { %1007 = vmatpush1.bf16.msra.mxu1 %v932_v11  ;;  %1434 = vpow2.f32 %v1236_v44  ;;  %v762_v11 = vadd.f32 1.0, %v1415_v8 }
 0x230   :  { %1436 = vpow2.f32 %v1238_v3 }
 0x231   :  { %1261 = vmatmul.mubr.msk.bf16.vlgmr.msra.gmra.mrb[24].mxu0 %vm944_vm3, %v1348_v14  ;;  %1438 = vpow2.f32 %v1239_v7 }
 0x232   :  { %1263 = vmatmul.mubr.msk.bf16.vlgmr.msra.gmra.mrb[24].mxu1 %vm944_vm3, %v1348_v14  ;;  %993 = vmatprep.mubr.bf16.mxu0 %v2044_v31  ;;  %v1421_v28 = vpop.eup %1420  ;;  %1440 = vpow2.f32 %v1241_v26  ;;  %v763_v14 = vadd.f32 1.0, %v1419_v10 }
 0x233   :  { %1046 = vmatprep.mubr.bf16.mxu1 %v2044_v31  ;;  %v1423_v29 = vpop.eup %1422  ;;  %1442 = vpow2.f32 %v1240_v30 }
 0x234   :  { %v1425_v13 = vpop.eup %1424  ;;  %1444 = vpow2.f32 %v1242_v9  ;;  %v766_v34 = vadd.f32 1.0, %v1423_v29 }
 0x235   :  { %v1427_v31 = vpop.eup %1426  ;;  %1446 = vrcp.f32 %v762_v11  ;;  %v768_v38 = vadd.f32 1.0, %v1425_v13 }
 0x236   :  { %v1429_v33 = vpop.eup %1428  ;;  %1448 = vrcp.f32 %v764_v12  ;;  %v767_v39 = vadd.f32 1.0, %v1427_v31 }
 0x237   :  { %v1431_v35 = vpop.eup %1430  ;;  %1450 = vrcp.f32 %v763_v14  ;;  %v769_v40 = vadd.f32 1.0, %v1429_v33 }
 0x238   :  { %v1433_v46 = vpop.eup %1432  ;;  %v770_v48 = vadd.f32 1.0, %v1431_v35  ;;  %v472_v35 = vpop.permute.xlu0 %471 }
 0x239   :  { %1262 = vmatmul.mubr.msk.bf16.gmra.mrb[28].mxu0 %vm944_vm3, %v1349_v32  ;;  %v1435_v41 = vpop.eup %1434  ;;  %v772_v49 = vadd.f32 1.0, %v1433_v46  ;;  %v477_v46 = vpop.permute.xlu1 %476 }
 0x23a   :  { %1264 = vmatmul.mubr.msk.bf16.gmra.mrb[28].mxu1 %vm944_vm3, %v1349_v32  ;;  %v765_v32 = vadd.f32 1.0, %v1421_v28  ;;  %v1437_v1 = vpop.eup %1436  ;;  %v771_v53 = vadd.f32 1.0, %v1435_v41 }
 0x23b   :  { %v1439_v47 = vpop.eup %1438  ;;  %v773_v16 = vadd.f32 1.0, %v1437_v1 }
 0x23c   :  { %1452 = vrcp.f32 %v765_v32  ;;  %v1441_v52 = vpop.eup %1440  ;;  %v774_v54 = vadd.f32 1.0, %v1439_v47 }
 0x23d   :  { %1454 = vrcp.f32 %v766_v34  ;;  %v1443_v15 = vpop.eup %1442  ;;  %v776_v18 = vadd.f32 1.0, %v1441_v52 }
 0x23e   :  { %1456 = vrcp.f32 %v768_v38  ;;  %v1445_v17 = vpop.eup %1444  ;;  %v775_v62 = vadd.f32 1.0, %v1443_v15 }
 0x23f   :  { %1458 = vrcp.f32 %v767_v39  ;;  %v1905_v19 = vpop.eup %1446  ;;  %v777_v55 = vadd.f32 1.0, %v1445_v17 }
 0x240   :  { %1460 = vrcp.f32 %v769_v40  ;;  %v1907_v20 = vpop.eup %1448  ;;  %v1089_v39 = vsub.f32 1.0, %v1905_v19 }
 0x241   :  { %1462 = vrcp.f32 %v770_v48  ;;  %v1909_v21 = vpop.eup %1450  ;;  %v1091_v1 = vsub.f32 1.0, %v1907_v20 }
 0x242   :  { %1464 = vrcp.f32 %v772_v49 }
 0x243   :  { %1466 = vrcp.f32 %v771_v53  ;;  %v1090_v53 = vsub.f32 1.0, %v1909_v21 }
 0x244   :  { %1468 = vrcp.f32 %v773_v16 }
 0x245   :  { %1470 = vrcp.f32 %v774_v54 }
 0x246   :  { %v1911_v22 = vpop.eup %1452  ;;  %1472 = vrcp.f32 %v776_v18 }
 0x247   :  { %v1913_v44 = vpop.eup %1454  ;;  %1474 = vrcp.f32 %v775_v62  ;;  %v1092_v62 = vsub.f32 1.0, %v1911_v22 }
 0x248   :  { %v1915_v45 = vpop.eup %1456  ;;  %1476 = vrcp.f32 %v777_v55 }
 0x249   :  { %v1917_v27 = vpop.eup %1458 }
 0x24a   :  { %v1919_v29 = vpop.eup %1460 }
 0x24b   :  { %v1921_v14 = vpop.eup %1462 }
 0x24c   :  { %v1923_v32 = vpop.eup %1464 }
 0x24d   :  { %v1925_v34 = vpop.eup %1466 }
 0x24e   :  { %v1927_v38 = vpop.eup %1468 }
 0x24f   :  { %v1930_v40 = vpop.eup %1470 }
 0x250   :  { %v1933_v52 = vpop.eup %1472 }
 0x251   :  { %v1936_v18 = vpop.eup %1474 }
 0x304   :  { %v985_v23 = vpop.f32.mrb[24].mxu0 }
 0x305   :  { %v1265_v24 = vadd.f32 %v985_v23, %v462_v63  ;;  %v1038_v3 = vpop.f32.mrb[24].mxu1  ;;  %v987_v25 = vpop.f32.mrb[25].mxu0 }
 0x306   :  { %v1273_v7 = vadd.f32 %v1038_v3, %v462_v63  ;;  %v1266_v26 = vadd.f32 %v987_v25, %v462_v63  ;;  %v1040_v8 = vpop.f32.mrb[25].mxu1  ;;  %v989_v30 = vpop.f32.mrb[26].mxu0  ;;  %v1093_v3 = vsub.f32 1.0, %v1913_v44  ;;  %v1105_v25 = vmul.f32 %v1089_v39, %v1718_v50 }
 0x307   :  { %1478 = vtanh.f32 %v1265_v24  ;;  %v1274_v9 = vadd.f32 %v1040_v8, %v462_v63  ;;  %v1267_v10 = vadd.f32 %v989_v30, %v467_v2  ;;  %v1042_v28 = vpop.f32.mrb[26].mxu1  ;;  %v991_v11 = vpop.f32.mrb[27].mxu0  ;;  %v1095_v30 = vsub.f32 1.0, %v1915_v45 }
 0x308   :  { %1480 = vtanh.f32 %v1273_v7  ;;  %v1275_v12 = vadd.f32 %v1042_v28, %v467_v2  ;;  %v1044_v13 = vpop.f32.mrb[27].mxu1  ;;  %v1268_v31 = vadd.f32 %v991_v11, %v467_v2  ;;  %v1939_v24 = vpop.eup %1476  ;;  %v1094_v50 = vsub.f32 1.0, %v1917_v27 }
 0x309   :  { %1482 = vtanh.f32 %v1266_v26  ;;  %v1276_v33 = vadd.f32 %v1044_v13, %v467_v2 }
 0x30a   :  { %1484 = vtanh.f32 %v1274_v9  ;;  %v1107_v9 = vmul.f32 %v1091_v1, %v1732_v56  ;;  %v1109_v1 = vmul.f32 %v1093_v3, %v1723_v51  ;;  %v1101_v3 = vsub.f32 1.0, %v1930_v40 }
 0x30b   :  { %1486 = vtanh.f32 %v1267_v10 }
 0x30c   :  { %1488 = vtanh.f32 %v1275_v12  ;;  %v995_v41 = vpop.f32.mrb[28].mxu0  ;;  %v1106_v12 = vmul.f32 %v1090_v53, %v1698_v36  ;;  %v1096_v36 = vsub.f32 1.0, %v1919_v29  ;;  %v1111_v53 = vmul.f32 %v1095_v30, %v1737_v57 }
 0x30d   :  { %1490 = vtanh.f32 %v1268_v31  ;;  %v1269_v48 = vadd.f32 %v995_v41, %v472_v35  ;;  %v1048_v47 = vpop.f32.mrb[28].mxu1  ;;  %v997_v49 = vpop.f32.mrb[29].mxu0 }
 0x30e   :  { %1492 = vtanh.f32 %v1276_v33  ;;  %v1277_v15 = vadd.f32 %v1048_v47, %v472_v35  ;;  %v1270_v16 = vadd.f32 %v997_v49, %v472_v35  ;;  %v1050_v17 = vpop.f32.mrb[29].mxu1  ;;  %v999_v54 = vpop.f32.mrb[30].mxu0  ;;  %v1099_v49 = vsub.f32 1.0, %v1923_v32 }
 0x30f   :  { %1494 = vtanh.f32 %v1269_v48  ;;  %v1278_v55 = vadd.f32 %v1050_v17, %v472_v35  ;;  %v1271_v63 = vadd.f32 %v999_v54, %v477_v46  ;;  %v1052_v2 = vpop.f32.mrb[30].mxu1  ;;  %v1001_v23 = vpop.f32.mrb[31].mxu0  ;;  %v1108_v35 = vmul.f32 %v1092_v62, %v1708_v42 }
 0x310   :  { %1496 = vtanh.f32 %v1277_v15  ;;  %v1279_v7 = vadd.f32 %v1052_v2, %v477_v46  ;;  %v1054_v26 = vpop.f32.mrb[31].mxu1  ;;  %v1272_v10 = vadd.f32 %v1001_v23, %v477_v46  ;;  %v1098_v17 = vsub.f32 1.0, %v1925_v34 }
 0x311   :  { %v1479_v8 = vpop.eup %1478  ;;  %1498 = vtanh.f32 %v1270_v16  ;;  %v1280_v13 = vadd.f32 %v1054_v26, %v477_v46  ;;  %v1110_v54 = vmul.f32 %v1094_v50, %v1703_v37  ;;  %v1103_v26 = vsub.f32 1.0, %v1933_v52 }
 0x312   :  { %v1481_v28 = vpop.eup %1480  ;;  %v1121_v11 = vmul.f32 %v1479_v8, %v1905_v19  ;;  %1500 = vtanh.f32 %v1278_v55 }
 0x313   :  { %v1483_v31 = vpop.eup %1482  ;;  %v1123_v33 = vmul.f32 %v1481_v28, %v1907_v20  ;;  %1502 = vtanh.f32 %v1271_v63  ;;  %v1097_v20 = vsub.f32 1.0, %v1921_v14  ;;  %v1100_v63 = vsub.f32 1.0, %v1927_v38 }
 0x314   :  { %v1485_v39 = vpop.eup %1484  ;;  %v1137_v41 = vadd.f32 %v1121_v11, %v1105_v25  ;;  %v1122_v56 = vmul.f32 %v1483_v31, %v1909_v21  ;;  %1504 = vtanh.f32 %v1279_v7  ;;  %v1104_v11 = vsub.f32 1.0, %v1939_v24 }
 0x315   :  { %v1487_v19 = vpop.eup %1486  ;;  %v1139_v48 = vadd.f32 %v1123_v33, %v1107_v9  ;;  %v1124_v46 = vmul.f32 %v1485_v39, %v1911_v22  ;;  %1506 = vtanh.f32 %v1272_v10  ;;  %v1102_v9 = vsub.f32 1.0, %v1936_v18 }
 0x316   :  { %v1489_v47 = vpop.eup %1488  ;;  %1153 = vst [vmem:[%s2040_s7] sm:$0xff] %v1137_v41  ;;  %v1138_v42 = vadd.f32 %v1122_v56, %v1106_v12  ;;  %v1125_v21 = vmul.f32 %v1487_v19, %v1913_v44  ;;  %1508 = vtanh.f32 %v1280_v13  ;;  %v1120_v56 = vmul.f32 %v1104_v11, %v1757_v61 }
 0x317   :  { %v1491_v51 = vpop.eup %1490  ;;  %1155 = vst [vmem:[%s2040_s7 + $0x10] sm:$0xff] %v1139_v48  ;;  %v1140_v22 = vadd.f32 %v1124_v46, %v1108_v35  ;;  %v1127_v15 = vmul.f32 %v1489_v47, %v1915_v45  ;;  %v1112_v45 = vmul.f32 %v1096_v36, %v1713_v43 }
 0x318   :  { %v1493_v16 = vpop.eup %1492  ;;  %1154 = vst [vmem:[%s2040_s7 + $0x8] sm:$0xff] %v1138_v42  ;;  %v1141_v44 = vadd.f32 %v1125_v21, %v1109_v1  ;;  %v1126_v62 = vmul.f32 %v1491_v51, %v1917_v27  ;;  %v1113_v27 = vmul.f32 %v1097_v20, %v1766_v0 }
 0x319   :  { %v1495_v55 = vpop.eup %1494  ;;  %1156 = vst [vmem:[%s2040_s7 + $0x18] sm:$0xff] %v1140_v22  ;;  %v1143_v57 = vadd.f32 %v1127_v15, %v1111_v53  ;;  %v1128_v2 = vmul.f32 %v1493_v16, %v1919_v29  ;;  %v1115_v29 = vmul.f32 %v1099_v49, %v1780_v5 }
 0x31a   :  { %v1497_v23 = vpop.eup %1496  ;;  %1157 = vst [vmem:[%s2040_s7 + $0x20] sm:$0xff] %v1141_v44  ;;  %v1142_v37 = vadd.f32 %v1126_v62, %v1110_v54  ;;  %v1129_v25 = vmul.f32 %v1495_v55, %v1921_v14  ;;  %v1114_v14 = vmul.f32 %v1098_v17, %v1742_v58 }
 0x31b   :  { %v1499_v7 = vpop.eup %1498  ;;  %1159 = vst [vmem:[%s2040_s7 + $0x30] sm:$0xff] %v1143_v57  ;;  %v1144_v43 = vadd.f32 %v1128_v2, %v1112_v45  ;;  %v1131_v8 = vmul.f32 %v1497_v23, %v1923_v32  ;;  %v1116_v32 = vmul.f32 %v1100_v63, %v1752_v60  ;;  %v1119_v60 = vmul.f32 %v1103_v26, %v1785_v6 }
 0x31c   :  { %v1501_v30 = vpop.eup %1500  ;;  %1158 = vst [vmem:[%s2040_s7 + $0x28] sm:$0xff] %v1142_v37  ;;  %v1145_v0 = vadd.f32 %v1129_v25, %v1113_v27  ;;  %v1130_v10 = vmul.f32 %v1499_v7, %v1925_v34  ;;  %v1117_v34 = vmul.f32 %v1101_v3, %v1775_v4  ;;  %v1118_v4 = vmul.f32 %v1102_v9, %v1747_v59 }
 0x31d   :  { %v1503_v28 = vpop.eup %1502  ;;  %1160 = vst [vmem:[%s2040_s7 + $0x38] sm:$0xff] %v1144_v43  ;;  %v1147_v5 = vadd.f32 %v1131_v8, %v1115_v29  ;;  %v1132_v12 = vmul.f32 %v1501_v30, %v1927_v38 }
 0x31e   :  { %v1505_v13 = vpop.eup %1504  ;;  %1161 = vst [vmem:[%s2040_s7 + $0x40] sm:$0xff] %v1145_v0  ;;  %v1146_v58 = vadd.f32 %v1130_v10, %v1114_v14  ;;  %v1133_v31 = vmul.f32 %v1503_v28, %v1930_v40 }
 0x31f   :  { %v1507_v50 = vpop.eup %1506  ;;  %1163 = vst [vmem:[%s2040_s7 + $0x50] sm:$0xff] %v1147_v5  ;;  %v1148_v33 = vadd.f32 %v1132_v12, %v1116_v32  ;;  %v1135_v38 = vmul.f32 %v1505_v13, %v1933_v52 }
 0x320   :  { %v1509_v35 = vpop.eup %1508  ;;  %1162 = vst [vmem:[%s2040_s7 + $0x48] sm:$0xff] %v1146_v58  ;;  %v1149_v39 = vadd.f32 %v1133_v31, %v1117_v34  ;;  %v1134_v40 = vmul.f32 %v1507_v50, %v1936_v18 }
 0x321   :  { %1164 = vst [vmem:[%s2040_s7 + $0x58] sm:$0xff] %v1148_v33  ;;  %v1151_v41 = vadd.f32 %v1135_v38, %v1119_v60  ;;  %v1136_v6 = vmul.f32 %v1509_v35, %v1939_v24 }
 0x322   :  { %1165 = vst [vmem:[%s2040_s7 + $0x60] sm:$0xff] %v1149_v39  ;;  %v1150_v52 = vadd.f32 %v1134_v40, %v1118_v4 }
 0x323   :  { %1167 = vst [vmem:[%s2040_s7 + $0x70] sm:$0xff] %v1151_v41  ;;  %v1152_v59 = vadd.f32 %v1136_v6, %v1120_v56 }
 0x324   :  { %1166 = vst [vmem:[%s2040_s7 + $0x68] sm:$0xff] %v1150_v52 }
 0x325   :  { %1168 = vst [vmem:[%s2040_s7 + $0x78] sm:$0xff] %v1152_v59 }

// kernel: norm_conv2d_gru_forward.6
= control target key start
LH: loop header
LB: loop body
LE: loop exit
PB: predicated region body
PF: predicated region fallthrough
CT: control target
= control target key end

     0   :  { %v2739_v1 = vmov 0   ;;  %vm521_vm0 = vcmask 261120   ;;  %vm902_vm1 = vcmask 523264   ;;  %s2731_s0 = inlined_call_operand.vmem [shape: bf16[288,512], index: 0, kind: input, shape index: {}]   ;;  %s2732_s2 = inlined_call_operand.vmem [shape: bf16[32,288], index: 2, kind: input, shape index: {}]   ;;  %s2733_s3 = inlined_call_operand.vmem [shape: f32[32,1], index: 3, kind: input, shape index: {}]   ;;  %s2734_s6 = inlined_call_operand.vmem [shape: f32[96,1], index: 6, kind: input, shape index: {}]   ;;  %s2735_s4 = inlined_call_operand.vmem [shape: bf16[96,64], index: 4, kind: input, shape index: {}]   ;;  %s2736_s1 = inlined_call_operand.vmem [shape: f32[32,512], index: 1, kind: input, shape index: {}, may-alias: {1,7}]   ;;  %s2737_s5 = inlined_call_operand.vmem [shape: bf16[32,32], index: 5, kind: input, shape index: {}]   ;;  %s2738_s7 = inlined_call_operand.vmem [shape: f32[32,512], index: 7, kind: output, shape index: {}, may-alias: {1,7}]  }
   0x1   :  { %v1770_v0 = vld [vmem:[%s2731_s0 + $0x4] ss:$16 sps:$4 sm:$0xff]   ;;  %1768 = vset.pattern.permute.xlu0 %v2739_v1  ;;  %1769 = vset.pattern.permute.xlu1 %v2739_v1  ;;  %v1772_v2 = vld [vmem:[%s2731_s0 + $0xc] ss:$16 sps:$4 sm:$0xff]   ;;  %v1774_v3 = vld [vmem:[%s2731_s0] ss:$16 sps:$4 sm:$0xff]  }
   0x2   :  { %528 = vmatprep.subr.bf16.mxu0 %v1770_v0  ;;  %v1775_v4 = vld [vmem:[%s2731_s0 + $0x8] ss:$16 sps:$4 sm:$0xff]   ;;  %634 = vmatprep.subr.bf16.mxu1 %v1772_v2  ;;  %v1776_v5 = vld [vmem:[%s2731_s0 + $0x24] ss:$16 sps:$4 sm:$0xff]   ;;  %v1778_v6 = vld [vmem:[%s2731_s0 + $0x2c] ss:$16 sps:$4 sm:$0xff]  }
   0x3   :  { %529 = vmatpush1.bf16.msra.mxu0 %v1774_v3  ;;  %635 = vmatpush1.bf16.msra.mxu1 %v1775_v4  ;;  %v1780_v7 = vld [vmem:[%s2731_s0 + $0x20] ss:$16 sps:$4 sm:$0xff]   ;;  %v1781_v8 = vld [vmem:[%s2731_s0 + $0x28] ss:$16 sps:$4 sm:$0xff]   ;;  %v1782_v9 = vld [vmem:[%s2731_s0 + $0x44] ss:$16 sps:$4 sm:$0xff]  }
   0x4   :  { %530 = vmatprep.subr.bf16.mxu0 %v1776_v5  ;;  %636 = vmatprep.subr.bf16.mxu1 %v1778_v6  ;;  %v1784_v10 = vld [vmem:[%s2731_s0 + $0x4c] ss:$16 sps:$4 sm:$0xff]   ;;  %v1786_v11 = vld [vmem:[%s2731_s0 + $0x40] ss:$16 sps:$4 sm:$0xff]   ;;  %v1787_v12 = vld [vmem:[%s2731_s0 + $0x48] ss:$16 sps:$4 sm:$0xff]  }
   0x5   :  { %v1788_v13 = vld [vmem:[%s2731_s0 + $0x64] ss:$16 sps:$4 sm:$0xff]   ;;  %v1790_v14 = vld [vmem:[%s2731_s0 + $0x6c] ss:$16 sps:$4 sm:$0xff]   ;;  %v1792_v15 = vld [vmem:[%s2731_s0 + $0x60] ss:$16 sps:$4 sm:$0xff]  }
   0x6   :  { %v1793_v16 = vld [vmem:[%s2731_s0 + $0x68] ss:$16 sps:$4 sm:$0xff]   ;;  %v1794_v17 = vld [vmem:[%s2731_s0 + $0x84] ss:$16 sps:$4 sm:$0xff]   ;;  %v1796_v18 = vld [vmem:[%s2731_s0 + $0x8c] ss:$16 sps:$4 sm:$0xff]  }
   0x7   :  { %531 = vmatpush1.bf16.msra.mxu0 %v1780_v7  ;;  %637 = vmatpush1.bf16.msra.mxu1 %v1781_v8  ;;  %v1798_v19 = vld [vmem:[%s2731_s0 + $0x80] ss:$16 sps:$4 sm:$0xff]   ;;  %v1799_v20 = vld [vmem:[%s2731_s0 + $0x88] ss:$16 sps:$4 sm:$0xff]   ;;  %v1800_v21 = vld [vmem:[%s2731_s0 + $0xa4] ss:$16 sps:$4 sm:$0xff]  }
   0x8   :  { %532 = vmatprep.subr.bf16.mxu0 %v1782_v9  ;;  %638 = vmatprep.subr.bf16.mxu1 %v1784_v10  ;;  %v1802_v22 = vld [vmem:[%s2731_s0 + $0xac] ss:$16 sps:$4 sm:$0xff]   ;;  %v1804_v23 = vld [vmem:[%s2731_s0 + $0xa0] ss:$16 sps:$4 sm:$0xff]   ;;  %v1805_v24 = vld [vmem:[%s2731_s0 + $0xa8] ss:$16 sps:$4 sm:$0xff]  }
   0x9   :  { %v1806_v25 = vld [vmem:[%s2731_s0 + $0xc4] ss:$16 sps:$4 sm:$0xff]   ;;  %v1808_v26 = vld [vmem:[%s2731_s0 + $0xcc] ss:$16 sps:$4 sm:$0xff]   ;;  %v1810_v27 = vld [vmem:[%s2731_s0 + $0xc0] ss:$16 sps:$4 sm:$0xff]  }
   0xa   :  { %v1811_v28 = vld [vmem:[%s2731_s0 + $0xc8] ss:$16 sps:$4 sm:$0xff]   ;;  %v1812_v29 = vld [vmem:[%s2731_s0 + $0xe4] ss:$16 sps:$4 sm:$0xff]   ;;  %v1814_v30 = vld [vmem:[%s2731_s0 + $0xec] ss:$16 sps:$4 sm:$0xff]  }
   0xb   :  { %533 = vmatpush1.bf16.msra.mxu0 %v1786_v11  ;;  %639 = vmatpush1.bf16.msra.mxu1 %v1787_v12  ;;  %v1816_v31 = vld [vmem:[%s2731_s0 + $0xe0] ss:$16 sps:$4 sm:$0xff]   ;;  %v1817_v32 = vld [vmem:[%s2731_s0 + $0xe8] ss:$16 sps:$4 sm:$0xff]   ;;  %v1818_v33 = vld [vmem:[%s2731_s0 + $0x104] ss:$16 sps:$4 sm:$0xff]  }
   0xc   :  { %534 = vmatprep.subr.bf16.mxu0 %v1788_v13  ;;  %640 = vmatprep.subr.bf16.mxu1 %v1790_v14  ;;  %v1820_v34 = vld [vmem:[%s2731_s0 + $0x10c] ss:$16 sps:$4 sm:$0xff]   ;;  %v1822_v35 = vld [vmem:[%s2731_s0 + $0x100] ss:$16 sps:$4 sm:$0xff]   ;;  %v1823_v36 = vld [vmem:[%s2731_s0 + $0x108] ss:$16 sps:$4 sm:$0xff]  }
   0xd   :  { %v1824_v37 = vld [vmem:[%s2731_s0 + $0x124] ss:$16 sps:$4 sm:$0xff]   ;;  %v1826_v38 = vld [vmem:[%s2731_s0 + $0x12c] ss:$16 sps:$4 sm:$0xff]   ;;  %v1828_v39 = vld [vmem:[%s2731_s0 + $0x120] ss:$16 sps:$4 sm:$0xff]  }
   0xe   :  { %v1829_v40 = vld [vmem:[%s2731_s0 + $0x128] ss:$16 sps:$4 sm:$0xff]   ;;  %v1830_v41 = vld [vmem:[%s2731_s0 + $0x144] ss:$16 sps:$4 sm:$0xff]   ;;  %v1832_v42 = vld [vmem:[%s2731_s0 + $0x14c] ss:$16 sps:$4 sm:$0xff]  }
   0xf   :  { %535 = vmatpush1.bf16.msra.mxu0 %v1792_v15  ;;  %641 = vmatpush1.bf16.msra.mxu1 %v1793_v16  ;;  %v1834_v43 = vld [vmem:[%s2731_s0 + $0x140] ss:$16 sps:$4 sm:$0xff]   ;;  %v1835_v44 = vld [vmem:[%s2731_s0 + $0x148] ss:$16 sps:$4 sm:$0xff]   ;;  %v1836_v45 = vld [vmem:[%s2731_s0 + $0x164] ss:$16 sps:$4 sm:$0xff]  }
  0x10   :  { %536 = vmatprep.subr.bf16.mxu0 %v1794_v17  ;;  %642 = vmatprep.subr.bf16.mxu1 %v1796_v18  ;;  %v1838_v46 = vld [vmem:[%s2731_s0 + $0x16c] ss:$16 sps:$4 sm:$0xff]   ;;  %v1840_v47 = vld [vmem:[%s2731_s0 + $0x160] ss:$16 sps:$4 sm:$0xff]   ;;  %v1841_v48 = vld [vmem:[%s2731_s0 + $0x168] ss:$16 sps:$4 sm:$0xff]  }
  0x11   :  { %v1868_v49 = vld [vmem:[%s2732_s2 + $0x4] ss:$12 sps:$4 sm:$0xff]   ;;  %v1844_v51 = vld [vmem:[%s2731_s0 + $0x18c] ss:$16 sps:$4 sm:$0xff]   ;;  %v1847_v53 = vld [vmem:[%s2731_s0 + $0x188] ss:$16 sps:$4 sm:$0xff]  }
  0x12   :  { %v1842_v50 = vld [vmem:[%s2731_s0 + $0x184] ss:$16 sps:$4 sm:$0xff]   ;;  %560 = vmatprep.mubr.bf16.mxu0 %v1868_v49  ;;  %666 = vmatprep.mubr.bf16.mxu1 %v1868_v49  ;;  %v1846_v52 = vld [vmem:[%s2731_s0 + $0x180] ss:$16 sps:$4 sm:$0xff]   ;;  %v1850_v55 = vld [vmem:[%s2731_s0 + $0x1ac] ss:$16 sps:$4 sm:$0xff]  }
  0x13   :  { %537 = vmatpush1.bf16.msra.mxu0 %v1798_v19  ;;  %643 = vmatpush1.bf16.msra.mxu1 %v1799_v20  ;;  %v1848_v54 = vld [vmem:[%s2731_s0 + $0x1a4] ss:$16 sps:$4 sm:$0xff]   ;;  %v1852_v56 = vld [vmem:[%s2731_s0 + $0x1a0] ss:$16 sps:$4 sm:$0xff]   ;;  %v1853_v57 = vld [vmem:[%s2731_s0 + $0x1a8] ss:$16 sps:$4 sm:$0xff]  }
  0x14   :  { %538 = vmatprep.subr.bf16.mxu0 %v1800_v21  ;;  %644 = vmatprep.subr.bf16.mxu1 %v1802_v22  ;;  %v107_v58 = vld [vmem:[%s2733_s3] sm:$0xff]  ;;  %v1856_v60 = vld [vmem:[%s2731_s0 + $0x1cc] ss:$16 sps:$4 sm:$0xff]   ;;  %v109_v61 = vld [vmem:[%s2733_s3 + $0x10] sm:$0xff] }
  0x15   :  { %v1854_v59 = vld [vmem:[%s2731_s0 + $0x1c4] ss:$16 sps:$4 sm:$0xff]   ;;  %113 = vperm.xlu0 %1768, %v107_v58   ;;  %123 = vperm.xlu1 %1769, %v109_v61   ;;  %v108_v62 = vld [vmem:[%s2733_s3 + $0x8] sm:$0xff]  ;;  %v110_v63 = vld [vmem:[%s2733_s3 + $0x18] sm:$0xff] }
  0x16   :  { %v1858_v0 = vld [vmem:[%s2731_s0 + $0x1c0] ss:$16 sps:$4 sm:$0xff]   ;;  %v1859_v2 = vld [vmem:[%s2731_s0 + $0x1c8] ss:$16 sps:$4 sm:$0xff]   ;;  %v1860_v3 = vld [vmem:[%s2731_s0 + $0x1e4] ss:$16 sps:$4 sm:$0xff]  }
  0x17   :  { %539 = vmatpush1.bf16.msra.mxu0 %v1804_v23  ;;  %645 = vmatpush1.bf16.msra.mxu1 %v1805_v24  ;;  %v1862_v4 = vld [vmem:[%s2731_s0 + $0x1ec] ss:$16 sps:$4 sm:$0xff]   ;;  %v804_v5 = vld [vmem:[%s2734_s6 + $0x20] sm:$0xff]  ;;  %v1865_v8 = vld [vmem:[%s2731_s0 + $0x1e8] ss:$16 sps:$4 sm:$0xff]  }
  0x18   :  { %540 = vmatprep.subr.bf16.mxu0 %v1806_v25  ;;  %646 = vmatprep.subr.bf16.mxu1 %v1808_v26  ;;  %v805_v6 = vld [vmem:[%s2734_s6 + $0x28] sm:$0xff]  ;;  %v1864_v7 = vld [vmem:[%s2731_s0 + $0x1e0] ss:$16 sps:$4 sm:$0xff]   ;;  %v1874_v9 = vld [vmem:[%s2731_s0 + $0x204] ss:$16 sps:$4 sm:$0xff]  }
  0x19   :  { %118 = vperm.xlu0 %1768, %v108_v62   ;;  %128 = vperm.xlu1 %1769, %v110_v63   ;;  %v1877_v10 = vld [vmem:[%s2731_s0 + $0x20c] ss:$16 sps:$4 sm:$0xff]   ;;  %v806_v12 = vld [vmem:[%s2734_s6 + $0x30] sm:$0xff]  ;;  %v1875_v16 = vld [vmem:[%s2731_s0 + $0x208] ss:$16 sps:$4 sm:$0xff]  }
  0x1a   :  { %v1866_v11 = vld [vmem:[%s2732_s2] ss:$12 sps:$4 sm:$0xff]   ;;  %v807_v13 = vld [vmem:[%s2734_s6 + $0x38] sm:$0xff]  ;;  %v1880_v17 = vld [vmem:[%s2731_s0 + $0x224] ss:$16 sps:$4 sm:$0xff]  }
  0x1b   :  { %541 = vmatpush1.bf16.msra.mxu0 %v1810_v27  ;;  %647 = vmatpush1.bf16.msra.mxu1 %v1811_v28  ;;  %v1869_v14 = vld [vmem:[%s2732_s2 + $0x1c] ss:$12 sps:$4 sm:$0xff]   ;;  %v1872_v15 = vld [vmem:[%s2731_s0 + $0x200] ss:$16 sps:$4 sm:$0xff]   ;;  %v1871_v23 = vld [vmem:[%s2732_s2 + $0x18] ss:$12 sps:$4 sm:$0xff]  }
  0x1c   :  { %542 = vmatprep.subr.bf16.mxu0 %v1812_v29  ;;  %648 = vmatprep.subr.bf16.mxu1 %v1814_v30  ;;  %v1883_v18 = vld [vmem:[%s2731_s0 + $0x22c] ss:$16 sps:$4 sm:$0xff]   ;;  %v800_v19 = vld [vmem:[%s2734_s6] sm:$0xff]  ;;  %v1881_v22 = vld [vmem:[%s2731_s0 + $0x228] ss:$16 sps:$4 sm:$0xff]  }
  0x1d   :  { %834 = vperm.xlu0 %1768, %v804_v5   ;;  %839 = vperm.xlu1 %1769, %v805_v6   ;;  %v801_v20 = vld [vmem:[%s2734_s6 + $0x8] sm:$0xff]  ;;  %v1878_v21 = vld [vmem:[%s2731_s0 + $0x220] ss:$16 sps:$4 sm:$0xff]   ;;  %v803_v25 = vld [vmem:[%s2734_s6 + $0x18] sm:$0xff] }
  0x1e   :  { %v802_v24 = vld [vmem:[%s2734_s6 + $0x10] sm:$0xff]  ;;  %v808_v26 = vld [vmem:[%s2734_s6 + $0x40] sm:$0xff]  ;;  %v809_v27 = vld [vmem:[%s2734_s6 + $0x48] sm:$0xff] }
  0x1f   :  { %543 = vmatpush1.bf16.msra.mxu0 %v1816_v31  ;;  %649 = vmatpush1.bf16.msra.mxu1 %v1817_v32  ;;  %v1884_v28 = vld [vmem:[%s2732_s2 + $0x8] ss:$12 sps:$4 sm:$0xff]   ;;  %v811_v30 = vld [vmem:[%s2734_s6 + $0x58] sm:$0xff]  ;;  %v1885_v31 = vld [vmem:[%s2732_s2 + $0x20] ss:$12 sps:$4 sm:$0xff]  }
  0x20   :  { %544 = vmatprep.subr.bf16.mxu0 %v1818_v33  ;;  %650 = vmatprep.subr.bf16.mxu1 %v1820_v34  ;;  %v810_v29 = vld [vmem:[%s2734_s6 + $0x50] sm:$0xff] }
  0x21   :  { %844 = vperm.xlu0 %1768, %v806_v12   ;;  %849 = vperm.xlu1 %1769, %v807_v13  }
  0x23   :  { %545 = vmatpush1.bf16.msra.mxu0 %v1822_v35  ;;  %651 = vmatpush1.bf16.msra.mxu1 %v1823_v36 }
  0x24   :  { %546 = vmatprep.subr.bf16.mxu0 %v1824_v37  ;;  %652 = vmatprep.subr.bf16.mxu1 %v1826_v38 }
  0x25   :  { %814 = vperm.xlu0 %1768, %v800_v19   ;;  %819 = vperm.xlu1 %1769, %v801_v20  }
  0x27   :  { %547 = vmatpush1.bf16.msra.mxu0 %v1828_v39  ;;  %653 = vmatpush1.bf16.msra.mxu1 %v1829_v40 }
  0x28   :  { %548 = vmatprep.subr.bf16.mxu0 %v1830_v41  ;;  %654 = vmatprep.subr.bf16.mxu1 %v1832_v42 }
  0x29   :  { %824 = vperm.xlu0 %1768, %v802_v24   ;;  %829 = vperm.xlu1 %1769, %v803_v25   ;;  %v2407_v24 = vld [vmem:[%s2736_s1 + $0x38] sm:$0xff] }
  0x2b   :  { %549 = vmatpush1.bf16.msra.mxu0 %v1834_v43  ;;  %655 = vmatpush1.bf16.msra.mxu1 %v1835_v44 }
  0x2c   :  { %550 = vmatprep.subr.bf16.mxu0 %v1836_v45  ;;  %656 = vmatprep.subr.bf16.mxu1 %v1838_v46 }
  0x2d   :  { %854 = vperm.xlu0 %1768, %v808_v26   ;;  %859 = vperm.xlu1 %1769, %v809_v27  }
  0x2f   :  { %551 = vmatpush1.bf16.msra.mxu0 %v1840_v47  ;;  %657 = vmatpush1.bf16.msra.mxu1 %v1841_v48 }
  0x30   :  { %552 = vmatprep.subr.bf16.mxu0 %v1842_v50  ;;  %658 = vmatprep.subr.bf16.mxu1 %v1844_v51 }
  0x31   :  { %864 = vperm.xlu0 %1768, %v810_v29   ;;  %869 = vperm.xlu1 %1769, %v811_v30  }
  0x33   :  { %553 = vmatpush1.bf16.msra.mxu0 %v1846_v52  ;;  %659 = vmatpush1.bf16.msra.mxu1 %v1847_v53 }
  0x34   :  { %554 = vmatprep.subr.bf16.mxu0 %v1848_v54  ;;  %660 = vmatprep.subr.bf16.mxu1 %v1850_v55 }
  0x37   :  { %555 = vmatpush1.bf16.msra.mxu0 %v1852_v56  ;;  %661 = vmatpush1.bf16.msra.mxu1 %v1853_v57 }
  0x38   :  { %556 = vmatprep.subr.bf16.mxu0 %v1854_v59  ;;  %662 = vmatprep.subr.bf16.mxu1 %v1856_v60 }
  0x3b   :  { %557 = vmatpush1.bf16.msra.mxu0 %v1858_v0  ;;  %663 = vmatpush1.bf16.msra.mxu1 %v1859_v2 }
  0x3c   :  { %558 = vmatprep.subr.bf16.mxu0 %v1860_v3  ;;  %664 = vmatprep.subr.bf16.mxu1 %v1862_v4 }
  0x3f   :  { %559 = vmatpush1.bf16.msra.mxu0 %v1864_v7  ;;  %665 = vmatpush1.bf16.msra.mxu1 %v1865_v8 }
  0x40   :  { %581 = vmatprep.subr.bf16.mxu0 %v1874_v9  ;;  %687 = vmatprep.subr.bf16.mxu1 %v1877_v10 }
  0x42   :  { %561 = vmatmul.mubr.bf16.vlgmr.msra.gmra.mrb[0].mxu0 %v1866_v11  ;;  %667 = vmatmul.mubr.bf16.vlgmr.msra.gmra.mrb[0].mxu1 %v1866_v11 }
  0x43   :  { %570 = vmatprep.mubr.bf16.mxu0 %v1869_v14  ;;  %676 = vmatprep.mubr.bf16.mxu1 %v1869_v14 }
  0x44   :  { %582 = vmatpush1.bf16.msra.mxu0 %v1872_v15  ;;  %688 = vmatpush1.bf16.msra.mxu1 %v1875_v16 }
  0x45   :  { %583 = vmatprep.subr.bf16.mxu0 %v1880_v17  ;;  %689 = vmatprep.subr.bf16.mxu1 %v1883_v18  ;;  %v2392_v17 = vld [vmem:[%s2736_s1 + $0x8] sm:$0xff] }
  0x46   :  { %v2397_v18 = vld [vmem:[%s2736_s1 + $0x28] sm:$0xff] }
  0x48   :  { %584 = vmatpush1.bf16.msra.mxu0 %v1878_v21  ;;  %690 = vmatpush1.bf16.msra.mxu1 %v1881_v22 }
  0x4a   :  { %571 = vmatmul.mubr.bf16.gmra.mrb[4].mxu0 %v1871_v23  ;;  %677 = vmatmul.mubr.bf16.gmra.mrb[4].mxu1 %v1871_v23  ;;  %v2402_v23 = vld [vmem:[%s2736_s1 + $0x18] sm:$0xff] }
  0x4b   :  { %613 = vmatprep.mubr.bf16.mxu0 %v2739_v1  ;;  %719 = vmatprep.mubr.bf16.mxu1 %v2739_v1 }
  0x52   :  { %1643 = vmatmul.mubr.msk.bf16.vlgmr.msra.gmra.mrb[0].mxu0 %vm521_vm0, %v1884_v28  ;;  %1645 = vmatmul.mubr.msk.bf16.vlgmr.msra.gmra.mrb[0].mxu1 %vm521_vm0, %v1884_v28 }
  0x53   :  { %623 = vmatprep.mubr.bf16.mxu0 %v2739_v1  ;;  %729 = vmatprep.mubr.bf16.mxu1 %v2739_v1 }
  0x5a   :  { %1644 = vmatmul.mubr.msk.bf16.gmra.mrb[4].mxu0 %vm521_vm0, %v1885_v31  ;;  %1646 = vmatmul.mubr.msk.bf16.gmra.mrb[4].mxu1 %vm521_vm0, %v1885_v31  ;;  %v2412_v31 = vld [vmem:[%s2736_s1] sm:$0xff] }
  0x5b   :  { %953 = vmatprep.mubr.bf16.mxu0 %v2739_v1  ;;  %1046 = vmatprep.mubr.bf16.mxu1 %v2739_v1 }
  0x94   :  { %v114_v32 = vpop.permute.xlu0 %113  ;;  %v124_v33 = vpop.permute.xlu1 %123 }
  0x98   :  { %v119_v34 = vpop.permute.xlu0 %118  ;;  %v129_v59 = vpop.permute.xlu1 %128 }
 0x125   :  { %v615_v35 = vpop.f32.mrb[0].mxu0  ;;  %v721_v36 = vpop.f32.mrb[0].mxu1 }
 0x126   :  { %v1703_v37 = vadd.f32 %v615_v35, %v114_v32  ;;  %v1711_v38 = vadd.f32 %v721_v36, %v114_v32  ;;  %v617_v39 = vpop.f32.mrb[1].mxu0  ;;  %v723_v40 = vpop.f32.mrb[1].mxu1  ;;  %v781_v35 = vpack.c.bf16 %v2397_v18, %v2392_v17  ;;  %v783_v36 = vpack.c.bf16 %v2407_v24, %v2402_v23 }
 0x127   :  { %v1704_v41 = vadd.f32 %v617_v39, %v114_v32  ;;  %v1712_v42 = vadd.f32 %v723_v40, %v114_v32  ;;  %v619_v43 = vpop.f32.mrb[2].mxu0  ;;  %v725_v44 = vpop.f32.mrb[2].mxu1  ;;  %v2417_v32 = vld [vmem:[%s2736_s1 + $0x20] sm:$0xff]  ;;  %v2436_v39 = vld [vmem:[%s2736_s1 + $0x48] sm:$0xff] }
 0x128   :  { %v1705_v45 = vadd.f32 %v619_v43, %v119_v34  ;;  %v1713_v46 = vadd.f32 %v725_v44, %v119_v34  ;;  %v621_v47 = vpop.f32.mrb[3].mxu0  ;;  %v727_v48 = vpop.f32.mrb[3].mxu1  ;;  %v740_v51 = vmax.f32 %v1703_v37, 0.0  ;;  %v742_v52 = vmax.f32 %v1711_v38, 0.0  ;;  %v2426_v37 = vld [vmem:[%s2736_s1 + $0x10] sm:$0xff]  ;;  %v2441_v40 = vld [vmem:[%s2736_s1 + $0x68] sm:$0xff] }
 0x129   :  { %v1706_v49 = vadd.f32 %v621_v47, %v119_v34  ;;  %v1714_v50 = vadd.f32 %v727_v48, %v119_v34  ;;  %v741_v55 = vmax.f32 %v1704_v41, 0.0  ;;  %v743_v56 = vmax.f32 %v1712_v42, 0.0  ;;  %v2431_v38 = vld [vmem:[%s2736_s1 + $0x30] sm:$0xff]  ;;  %v2446_v41 = vld [vmem:[%s2736_s1 + $0x58] sm:$0xff]  ;;  %v2469_v48 = vld [vmem:[%s2736_s1 + $0x60] sm:$0xff] }
 0x12a   :  { %v744_v53 = vmax.f32 %v1705_v45, 0.0  ;;  %v746_v54 = vmax.f32 %v1713_v46, 0.0  ;;  %v2451_v42 = vld [vmem:[%s2736_s1 + $0x78] sm:$0xff]  ;;  %v780_v43 = vpack.c.bf16 %v2417_v32, %v2412_v31  ;;  %v782_v44 = vpack.c.bf16 %v2431_v38, %v2426_v37  ;;  %v2460_v45 = vld [vmem:[%s2736_s1 + $0x40] sm:$0xff] }
 0x12b   :  { %v745_v57 = vmax.f32 %v1706_v49, 0.0  ;;  %v747_v58 = vmax.f32 %v1714_v50, 0.0  ;;  %v785_v46 = vpack.c.bf16 %v2441_v40, %v2436_v39  ;;  %v787_v47 = vpack.c.bf16 %v2451_v42, %v2446_v41  ;;  %v2474_v49 = vld [vmem:[%s2736_s1 + $0x50] sm:$0xff] }
 0x12c   :  { %v772_v60 = vpack.c.bf16 %v744_v53, %v740_v51  ;;  %v774_v61 = vpack.c.bf16 %v746_v54, %v742_v52  ;;  %v2479_v50 = vld [vmem:[%s2736_s1 + $0x70] sm:$0xff]  ;;  %v784_v51 = vpack.c.bf16 %v2469_v48, %v2460_v45  ;;  %v1886_v53 = vld [vmem:[%s2735_s4] sm:$0xff]   ;;  %v1887_v54 = vld [vmem:[%s2735_s4 + $0x8] sm:$0xff]  }
 0x12d   :  { %v773_v62 = vpack.c.bf16 %v745_v57, %v741_v55  ;;  %v775_v63 = vpack.c.bf16 %v747_v58, %v743_v56  ;;  %v625_v0 = vpop.f32.mrb[4].mxu0  ;;  %v731_v2 = vpop.f32.mrb[4].mxu1  ;;  %v786_v52 = vpack.c.bf16 %v2479_v50, %v2474_v49  ;;  %v1888_v55 = vld [vmem:[%s2735_s4 + $0x10] sm:$0xff]   ;;  %v1889_v56 = vld [vmem:[%s2735_s4 + $0x18] sm:$0xff]   ;;  %v1890_v57 = vld [vmem:[%s2735_s4 + $0x20] sm:$0xff]  }
 0x12e   :  { %v1707_v3 = vadd.f32 %v625_v0, %v124_v33  ;;  %v1715_v4 = vadd.f32 %v731_v2, %v124_v33  ;;  %v627_v5 = vpop.f32.mrb[5].mxu0  ;;  %v733_v6 = vpop.f32.mrb[5].mxu1  ;;  %v1891_v58 = vld [vmem:[%s2735_s4 + $0x28] sm:$0xff]  }
 0x12f   :  { %v1708_v7 = vadd.f32 %v627_v5, %v124_v33  ;;  %v1716_v8 = vadd.f32 %v733_v6, %v124_v33  ;;  %v629_v9 = vpop.f32.mrb[6].mxu0  ;;  %v735_v10 = vpop.f32.mrb[6].mxu1  ;;  %921 = vmatprep.subr.bf16.mxu0 %v773_v62  ;;  %1014 = vmatprep.subr.bf16.mxu1 %v775_v63 }
 0x130   :  { %v1709_v11 = vadd.f32 %v629_v9, %v129_v59  ;;  %v1717_v12 = vadd.f32 %v735_v10, %v129_v59  ;;  %v631_v13 = vpop.f32.mrb[7].mxu0  ;;  %v737_v14 = vpop.f32.mrb[7].mxu1  ;;  %922 = vmatpush1.bf16.msra.mxu0 %v772_v60  ;;  %1015 = vmatpush1.bf16.msra.mxu1 %v774_v61  ;;  %v748_v19 = vmax.f32 %v1707_v3, 0.0  ;;  %v750_v20 = vmax.f32 %v1715_v4, 0.0 }
 0x131   :  { %v1710_v15 = vadd.f32 %v631_v13, %v129_v59  ;;  %v1718_v16 = vadd.f32 %v737_v14, %v129_v59  ;;  %v749_v25 = vmax.f32 %v1708_v7, 0.0  ;;  %v751_v26 = vmax.f32 %v1716_v8, 0.0 }
 0x132   :  { %v752_v21 = vmax.f32 %v1709_v11, 0.0  ;;  %v754_v22 = vmax.f32 %v1717_v12, 0.0 }
 0x133   :  { %v753_v27 = vmax.f32 %v1710_v15, 0.0  ;;  %v755_v28 = vmax.f32 %v1718_v16, 0.0 }
 0x134   :  { %v776_v29 = vpack.c.bf16 %v752_v21, %v748_v19  ;;  %v778_v30 = vpack.c.bf16 %v754_v22, %v750_v20  ;;  %v835_v22 = vpop.permute.xlu0 %834 }
 0x135   :  { %v777_v33 = vpack.c.bf16 %v753_v27, %v749_v25  ;;  %v779_v34 = vpack.c.bf16 %v755_v28, %v751_v26 }
 0x137   :  { %923 = vmatprep.subr.bf16.mxu0 %v777_v33  ;;  %1016 = vmatprep.subr.bf16.mxu1 %v779_v34 }
 0x138   :  { %924 = vmatpush1.bf16.msra.mxu0 %v776_v29  ;;  %1017 = vmatpush1.bf16.msra.mxu1 %v778_v30 }
 0x139   :  { %925 = vmatprep.subr.bf16.mxu0 %v781_v35  ;;  %1018 = vmatprep.subr.bf16.mxu1 %v783_v36 }
 0x13c   :  { %926 = vmatpush1.bf16.msra.mxu0 %v780_v43  ;;  %1019 = vmatpush1.bf16.msra.mxu1 %v782_v44  ;;  %v840_v44 = vpop.permute.xlu1 %839 }
 0x13d   :  { %927 = vmatprep.subr.bf16.mxu0 %v785_v46  ;;  %1020 = vmatprep.subr.bf16.mxu1 %v787_v47 }
 0x140   :  { %928 = vmatpush1.bf16.msra.mxu0 %v784_v51  ;;  %1021 = vmatpush1.bf16.msra.mxu1 %v786_v52 }
 0x143   :  { %1653 = vmatmul.mubr.msk.bf16.vlgmr.msra.gmra.mrb[8].mxu0 %vm902_vm1, %v1886_v53  ;;  %1659 = vmatmul.mubr.msk.bf16.vlgmr.msra.gmra.mrb[8].mxu1 %vm902_vm1, %v1886_v53 }
 0x144   :  { %963 = vmatprep.mubr.bf16.mxu0 %v2739_v1  ;;  %1056 = vmatprep.mubr.bf16.mxu1 %v2739_v1 }
 0x14b   :  { %1654 = vmatmul.mubr.msk.bf16.gmra.mrb[12].mxu0 %vm902_vm1, %v1887_v54  ;;  %1660 = vmatmul.mubr.msk.bf16.gmra.mrb[12].mxu1 %vm902_vm1, %v1887_v54 }
 0x14c   :  { %973 = vmatprep.mubr.bf16.mxu0 %v2739_v1  ;;  %1066 = vmatprep.mubr.bf16.mxu1 %v2739_v1 }
 0x153   :  { %1655 = vmatmul.mubr.msk.bf16.gmra.mrb[16].mxu0 %vm902_vm1, %v1888_v55  ;;  %1661 = vmatmul.mubr.msk.bf16.gmra.mrb[16].mxu1 %vm902_vm1, %v1888_v55 }
 0x154   :  { %983 = vmatprep.mubr.bf16.mxu0 %v2739_v1  ;;  %1076 = vmatprep.mubr.bf16.mxu1 %v2739_v1 }
 0x15b   :  { %1656 = vmatmul.mubr.msk.bf16.gmra.mrb[20].mxu0 %vm902_vm1, %v1889_v56  ;;  %1662 = vmatmul.mubr.msk.bf16.gmra.mrb[20].mxu1 %vm902_vm1, %v1889_v56 }
 0x15c   :  { %993 = vmatprep.mubr.bf16.mxu0 %v2739_v1  ;;  %1086 = vmatprep.mubr.bf16.mxu1 %v2739_v1 }
 0x163   :  { %1657 = vmatmul.mubr.msk.bf16.gmra.mrb[24].mxu0 %vm902_vm1, %v1890_v57  ;;  %1663 = vmatmul.mubr.msk.bf16.gmra.mrb[24].mxu1 %vm902_vm1, %v1890_v57 }
 0x164   :  { %1003 = vmatprep.mubr.bf16.mxu0 %v2739_v1  ;;  %1096 = vmatprep.mubr.bf16.mxu1 %v2739_v1 }
 0x16b   :  { %1658 = vmatmul.mubr.msk.bf16.gmra.mrb[28].mxu0 %vm902_vm1, %v1891_v58  ;;  %1664 = vmatmul.mubr.msk.bf16.gmra.mrb[28].mxu1 %vm902_vm1, %v1891_v58 }
 0x16c   :  { %1375 = vmatprep.mubr.bf16.mxu0 %v2739_v1  ;;  %1428 = vmatprep.mubr.bf16.mxu1 %v2739_v1  ;;  %v845_v1 = vpop.permute.xlu0 %844 }
 0x216   :  { %v2527_v59 = vpop.f32.mrb[8].mxu0  ;;  %v2529_v60 = vpop.f32.mrb[8].mxu1 }
 0x217   :  { %v2531_v61 = vpop.f32.mrb[9].mxu0  ;;  %v2533_v62 = vpop.f32.mrb[9].mxu1 }
 0x218   :  { %v2535_v63 = vpop.f32.mrb[10].mxu0  ;;  %v2537_v0 = vpop.f32.mrb[10].mxu1 }
 0x219   :  { %v2539_v2 = vpop.f32.mrb[11].mxu0  ;;  %v2541_v3 = vpop.f32.mrb[11].mxu1 }
 0x21e   :  { %v2543_v4 = vpop.f32.mrb[12].mxu0  ;;  %v2545_v5 = vpop.f32.mrb[12].mxu1 }
 0x21f   :  { %v2547_v6 = vpop.f32.mrb[13].mxu0  ;;  %v2549_v7 = vpop.f32.mrb[13].mxu1 }
 0x220   :  { %v2551_v8 = vpop.f32.mrb[14].mxu0  ;;  %v2553_v9 = vpop.f32.mrb[14].mxu1 }
 0x221   :  { %v2555_v10 = vpop.f32.mrb[15].mxu0  ;;  %v2557_v11 = vpop.f32.mrb[15].mxu1 }
 0x222   :  { %2741 = vst [vmem:[#allocation2_spill] sm:$0xff] %v2557_v11 }
 0x226   :  { %v975_v12 = vpop.f32.mrb[16].mxu0  ;;  %v1068_v13 = vpop.f32.mrb[16].mxu1 }
 0x227   :  { %v977_v14 = vpop.f32.mrb[17].mxu0  ;;  %v1070_v15 = vpop.f32.mrb[17].mxu1  ;;  %v976_v28 = vadd.f32 %v975_v12, %v835_v22  ;;  %v1069_v33 = vadd.f32 %v1068_v13, %v835_v22 }
 0x228   :  { %v979_v16 = vpop.f32.mrb[18].mxu0  ;;  %v1072_v19 = vpop.f32.mrb[18].mxu1  ;;  %v978_v36 = vadd.f32 %v977_v14, %v835_v22  ;;  %v1071_v46 = vadd.f32 %v1070_v15, %v835_v22 }
 0x229   :  { %v981_v20 = vpop.f32.mrb[19].mxu0  ;;  %v1074_v21 = vpop.f32.mrb[19].mxu1  ;;  %v1681_v47 = vmul.f32 -1.442695, %v976_v28  ;;  %v980_v51 = vadd.f32 %v979_v16, %v840_v44  ;;  %v1683_v52 = vmul.f32 -1.442695, %v1069_v33  ;;  %v1073_v53 = vadd.f32 %v1072_v19, %v840_v44 }
 0x22a   :  { %v1682_v54 = vmul.f32 -1.442695, %v978_v36  ;;  %v982_v55 = vadd.f32 %v981_v20, %v840_v44  ;;  %v1684_v56 = vmul.f32 -1.442695, %v1071_v46  ;;  %v1075_v57 = vadd.f32 %v1074_v21, %v840_v44 }
 0x22b   :  { %1894 = vpow2.f32 %v1681_v47  ;;  %v1685_v58 = vmul.f32 -1.442695, %v980_v51  ;;  %v1687_v12 = vmul.f32 -1.442695, %v1073_v53 }
 0x22c   :  { %1896 = vpow2.f32 %v1683_v52  ;;  %v1686_v13 = vmul.f32 -1.442695, %v982_v55  ;;  %v1688_v14 = vmul.f32 -1.442695, %v1075_v57 }
 0x22d   :  { %1898 = vpow2.f32 %v1682_v54 }
 0x22e   :  { %v985_v25 = vpop.f32.mrb[20].mxu0  ;;  %v1078_v26 = vpop.f32.mrb[20].mxu1  ;;  %1900 = vpow2.f32 %v1684_v56 }
 0x22f   :  { %v987_v27 = vpop.f32.mrb[21].mxu0  ;;  %v1080_v29 = vpop.f32.mrb[21].mxu1  ;;  %v986_v11 = vadd.f32 %v985_v25, %v845_v1  ;;  %1902 = vpow2.f32 %v1685_v58  ;;  %v1079_v15 = vadd.f32 %v1078_v26, %v845_v1 }
 0x230   :  { %v989_v30 = vpop.f32.mrb[22].mxu0  ;;  %v1082_v34 = vpop.f32.mrb[22].mxu1  ;;  %1904 = vpow2.f32 %v1687_v12  ;;  %v988_v51 = vadd.f32 %v987_v27, %v845_v1  ;;  %v1081_v54 = vadd.f32 %v1080_v29, %v845_v1 }
 0x231   :  { %v991_v35 = vpop.f32.mrb[23].mxu0  ;;  %v1084_v43 = vpop.f32.mrb[23].mxu1  ;;  %1906 = vpow2.f32 %v1686_v13  ;;  %v1689_v16 = vmul.f32 -1.442695, %v986_v11  ;;  %v1691_v19 = vmul.f32 -1.442695, %v1079_v15 }
 0x232   :  { %1908 = vpow2.f32 %v1688_v14  ;;  %v850_v11 = vpop.permute.xlu1 %849  ;;  %v1690_v13 = vmul.f32 -1.442695, %v988_v51  ;;  %v1692_v15 = vmul.f32 -1.442695, %v1081_v54 }
 0x233   :  { %1910 = vpow2.f32 %v1689_v16  ;;  %v990_v57 = vadd.f32 %v989_v30, %v850_v11  ;;  %v1083_v12 = vadd.f32 %v1082_v34, %v850_v11  ;;  %v992_v14 = vadd.f32 %v991_v35, %v850_v11 }
 0x234   :  { %1912 = vpow2.f32 %v1691_v19  ;;  %v1085_v16 = vadd.f32 %v1084_v43, %v850_v11 }
 0x235   :  { %v1895_v20 = vpop.eup %1894  ;;  %v1693_v27 = vmul.f32 -1.442695, %v990_v57  ;;  %v1694_v1 = vmul.f32 -1.442695, %v992_v14 }
 0x236   :  { %v1897_v22 = vpop.eup %1896  ;;  %v1251_v21 = vadd.f32 1.0, %v1895_v20 }
 0x237   :  { %v1899_v28 = vpop.eup %1898  ;;  %v1253_v33 = vadd.f32 1.0, %v1897_v22  ;;  %v1695_v22 = vmul.f32 -1.442695, %v1083_v12 }
 0x238   :  { %v1901_v36 = vpop.eup %1900  ;;  %1914 = vrcp.f32 %v1251_v21  ;;  %v1252_v44 = vadd.f32 1.0, %v1899_v28  ;;  %v1696_v28 = vmul.f32 -1.442695, %v1085_v16 }
 0x239   :  { %v1903_v46 = vpop.eup %1902  ;;  %1916 = vrcp.f32 %v1253_v33  ;;  %v1254_v25 = vadd.f32 1.0, %v1901_v36 }
 0x23a   :  { %v1905_v47 = vpop.eup %1904  ;;  %1918 = vrcp.f32 %v1252_v44  ;;  %v1255_v26 = vadd.f32 1.0, %v1903_v46 }
 0x23b   :  { %v1907_v52 = vpop.eup %1906  ;;  %1920 = vrcp.f32 %v1254_v25  ;;  %v1257_v53 = vadd.f32 1.0, %v1905_v47 }
 0x23c   :  { %v1909_v55 = vpop.eup %1908  ;;  %1922 = vrcp.f32 %v1255_v26  ;;  %v1256_v56 = vadd.f32 1.0, %v1907_v52 }
 0x23d   :  { %1924 = vrcp.f32 %v1257_v53  ;;  %v1258_v58 = vadd.f32 1.0, %v1909_v55  ;;  %v1911_v19 = vpop.eup %1910 }
 0x23e   :  { %1926 = vrcp.f32 %v1256_v56  ;;  %v1913_v20 = vpop.eup %1912  ;;  %v1259_v26 = vadd.f32 1.0, %v1911_v19 }
 0x23f   :  { %1928 = vrcp.f32 %v1258_v58  ;;  %v1261_v53 = vadd.f32 1.0, %v1913_v20 }
 0x240   :  { %1930 = vpow2.f32 %v1690_v13 }
 0x241   :  { %1932 = vpow2.f32 %v1692_v15 }
 0x242   :  { %v1915_v21 = vpop.eup %1914  ;;  %1934 = vpow2.f32 %v1693_v27 }
 0x243   :  { %v1917_v29 = vpop.eup %1916  ;;  %1936 = vpow2.f32 %v1695_v22  ;;  %v1303_v43 = vmul.f32 %v1915_v21, %v2412_v31 }
 0x244   :  { %v1919_v30 = vpop.eup %1918  ;;  %1938 = vpow2.f32 %v1694_v1  ;;  %v1305_v46 = vmul.f32 %v1917_v29, %v2426_v37 }
 0x245   :  { %v1921_v33 = vpop.eup %1920  ;;  %1940 = vpow2.f32 %v1696_v28  ;;  %v1304_v51 = vmul.f32 %v1919_v30, %v2392_v17 }
 0x246   :  { %v1923_v34 = vpop.eup %1922  ;;  %v1306_v54 = vmul.f32 %v1921_v33, %v2402_v23  ;;  %1942 = vrcp.f32 %v1259_v26 }
 0x247   :  { %v1925_v35 = vpop.eup %1924  ;;  %v1307_v36 = vmul.f32 %v1923_v34, %v2417_v32  ;;  %1944 = vrcp.f32 %v1261_v53 }
 0x248   :  { %v1927_v44 = vpop.eup %1926  ;;  %v1309_v25 = vmul.f32 %v1925_v35, %v2431_v38 }
 0x249   :  { %v1929_v47 = vpop.eup %1928  ;;  %v1308_v52 = vmul.f32 %v1927_v44, %v2397_v18  ;;  %v1319_v11 = vpack.c.bf16 %v1307_v36, %v1303_v43 }
 0x24a   :  { %v1310_v55 = vmul.f32 %v1929_v47, %v2407_v24  ;;  %v1321_v56 = vpack.c.bf16 %v1309_v25, %v1305_v46  ;;  %v1931_v58 = vpop.eup %1930 }
 0x24b   :  { %v1320_v57 = vpack.c.bf16 %v1308_v52, %v1304_v51  ;;  %v1933_v13 = vpop.eup %1932  ;;  %v1260_v14 = vadd.f32 1.0, %v1931_v58  ;;  %v1892_v58 = vld [vmem:[%s2737_s5] sm:$0xff]  }
 0x24c   :  { %v1322_v12 = vpack.c.bf16 %v1310_v55, %v1306_v54  ;;  %v1935_v15 = vpop.eup %1934  ;;  %v1262_v16 = vadd.f32 1.0, %v1933_v13  ;;  %v1893_v13 = vld [vmem:[%s2737_s5 + $0x8] sm:$0xff]  }
 0x24d   :  { %1343 = vmatprep.subr.bf16.mxu0 %v1320_v57  ;;  %v1937_v19 = vpop.eup %1936  ;;  %1946 = vrcp.f32 %v1260_v14  ;;  %v1263_v27 = vadd.f32 1.0, %v1935_v15  ;;  %v815_v14 = vpop.permute.xlu0 %814 }
 0x24e   :  { %1396 = vmatprep.subr.bf16.mxu1 %v1322_v12  ;;  %1344 = vmatpush1.bf16.msra.mxu0 %v1319_v11  ;;  %v1939_v20 = vpop.eup %1938  ;;  %1948 = vrcp.f32 %v1262_v16  ;;  %v1265_v22 = vadd.f32 1.0, %v1937_v19  ;;  %v2742_v12 = vmov 0   ;;  %v956_v15 = vadd.f32 %v2527_v59, %v815_v14 }
 0x24f   :  { %1397 = vmatpush1.bf16.msra.mxu1 %v1321_v56  ;;  %v1941_v21 = vpop.eup %1940  ;;  %1950 = vrcp.f32 %v1263_v27  ;;  %v1264_v1 = vadd.f32 1.0, %v1939_v20  ;;  %v1049_v16 = vadd.f32 %v2529_v60, %v815_v14  ;;  %v958_v19 = vadd.f32 %v2531_v61, %v815_v14  ;;  %v820_v27 = vpop.permute.xlu1 %819 }
 0x250   :  { %1952 = vrcp.f32 %v1265_v22  ;;  %v1266_v29 = vadd.f32 1.0, %v1941_v21  ;;  %v1943_v28 = vpop.eup %1942  ;;  %v1051_v20 = vadd.f32 %v2533_v62, %v815_v14  ;;  %v1665_v22 = vmul.f32 -1.442695, %v956_v15 }
 0x251   :  { %1954 = vrcp.f32 %v1264_v1  ;;  %v1945_v30 = vpop.eup %1944  ;;  %v1311_v36 = vmul.f32 %v1943_v28, %v2460_v45  ;;  %v960_v21 = vadd.f32 %v2535_v63, %v820_v27  ;;  %v1667_v1 = vmul.f32 -1.442695, %v1049_v16 }
 0x252   :  { %1956 = vrcp.f32 %v1266_v29  ;;  %v1313_v25 = vmul.f32 %v1945_v30, %v2474_v49  ;;  %v1053_v29 = vadd.f32 %v2537_v0, %v820_v27  ;;  %v1666_v28 = vmul.f32 -1.442695, %v958_v19 }
 0x253   :  { %v962_v30 = vadd.f32 %v2539_v2, %v820_v27  ;;  %v1055_v59 = vadd.f32 %v2541_v3, %v820_v27  ;;  %1958 = vpow2.f32 %v1665_v22  ;;  %v1669_v60 = vmul.f32 -1.442695, %v960_v21  ;;  %v830_v0 = vpop.permute.xlu1 %829 }
 0x254   :  { %1960 = vpow2.f32 %v1667_v1  ;;  %v970_v3 = vadd.f32 %v2551_v8, %v830_v0 }
 0x255   :  { %1962 = vpow2.f32 %v1666_v28  ;;  %v1670_v63 = vmul.f32 -1.442695, %v962_v30 }
 0x257   :  { %v1947_v33 = vpop.eup %1946 }
 0x258   :  { %v1949_v34 = vpop.eup %1948  ;;  %v1312_v51 = vmul.f32 %v1947_v33, %v2436_v39  ;;  %v825_v33 = vpop.permute.xlu0 %824 }
 0x259   :  { %v1951_v35 = vpop.eup %1950  ;;  %v1314_v53 = vmul.f32 %v1949_v34, %v2446_v41  ;;  %v1668_v34 = vmul.f32 -1.442695, %v1051_v20  ;;  %v966_v61 = vadd.f32 %v2543_v4, %v825_v33  ;;  %v1059_v62 = vadd.f32 %v2545_v5, %v825_v33 }
 0x25a   :  { %v1953_v43 = vpop.eup %1952  ;;  %v1315_v44 = vmul.f32 %v1951_v35, %v2469_v48  ;;  %v1671_v35 = vmul.f32 -1.442695, %v1053_v29  ;;  %v1061_v2 = vadd.f32 %v2549_v7, %v825_v33  ;;  %v1063_v4 = vadd.f32 %v2553_v9, %v830_v0 }
 0x25b   :  { %v1955_v46 = vpop.eup %1954  ;;  %v1317_v47 = vmul.f32 %v1953_v43, %v2479_v50  ;;  %v968_v43 = vadd.f32 %v2547_v6, %v825_v33  ;;  %1964 = vpow2.f32 %v1668_v34  ;;  %v972_v5 = vadd.f32 %v2555_v10, %v830_v0  ;;  %v2743_v6 = vld [vmem:[#allocation2_spill] sm:$0xff] }
 0x25c   :  { %v1957_v26 = vpop.eup %1956  ;;  %v1316_v52 = vmul.f32 %v1955_v46, %v2441_v40  ;;  %v1323_v11 = vpack.c.bf16 %v1315_v44, %v1311_v36  ;;  %v1672_v36 = vmul.f32 -1.442695, %v1055_v59  ;;  %1966 = vpow2.f32 %v1669_v60 }
 0x25d   :  { %v1318_v54 = vmul.f32 %v1957_v26, %v2451_v42  ;;  %v1325_v55 = vpack.c.bf16 %v1317_v47, %v1313_v25  ;;  %v1673_v44 = vmul.f32 -1.442695, %v966_v61  ;;  %1968 = vpow2.f32 %v1671_v35 }
 0x25e   :  { %v1324_v56 = vpack.c.bf16 %v1316_v52, %v1312_v51  ;;  %v1675_v46 = vmul.f32 -1.442695, %v1059_v62  ;;  %1970 = vpow2.f32 %v1670_v63  ;;  %v1674_v25 = vmul.f32 -1.442695, %v968_v43  ;;  %v1959_v52 = vpop.eup %1958 }
 0x25f   :  { %v1326_v57 = vpack.c.bf16 %v1318_v54, %v1314_v53  ;;  %1972 = vpow2.f32 %v1672_v36  ;;  %v1676_v47 = vmul.f32 -1.442695, %v1061_v2  ;;  %v1065_v26 = vadd.f32 %v2743_v6, %v830_v0  ;;  %v1961_v8 = vpop.eup %1960 }
 0x260   :  { %1345 = vmatprep.subr.bf16.mxu0 %v1324_v56  ;;  %1974 = vpow2.f32 %v1673_v44  ;;  %v1677_v51 = vmul.f32 -1.442695, %v970_v3  ;;  %v1679_v7 = vmul.f32 -1.442695, %v1063_v4  ;;  %v1963_v54 = vpop.eup %1962  ;;  %v1157_v56 = vadd.f32 1.0, %v1961_v8  ;;  %v855_v44 = vpop.permute.xlu0 %854 }
 0x261   :  { %1398 = vmatprep.subr.bf16.mxu1 %v1326_v57  ;;  %1346 = vmatpush1.bf16.msra.mxu0 %v1323_v11  ;;  %1976 = vpow2.f32 %v1675_v46  ;;  %v1678_v11 = vmul.f32 -1.442695, %v972_v5  ;;  %v1680_v53 = vmul.f32 -1.442695, %v1065_v26  ;;  %v860_v46 = vpop.permute.xlu1 %859 }
 0x262   :  { %1399 = vmatpush1.bf16.msra.mxu1 %v1325_v55  ;;  %1978 = vpow2.f32 %v1674_v25  ;;  %v1155_v55 = vadd.f32 1.0, %v1959_v52 }
 0x263   :  { %1980 = vpow2.f32 %v1676_v47 }
 0x264   :  { %1699 = vmatmul.mubr.msk.bf16.vlgmr.msra.gmra.mrb[24].mxu0 %vm521_vm0, %v1892_v58  ;;  %1982 = vpow2.f32 %v1677_v51 }
 0x265   :  { %1701 = vmatmul.mubr.msk.bf16.vlgmr.msra.gmra.mrb[24].mxu1 %vm521_vm0, %v1892_v58  ;;  %1385 = vmatprep.mubr.bf16.mxu0 %v2742_v12  ;;  %v1965_v9 = vpop.eup %1964  ;;  %1984 = vpow2.f32 %v1679_v7  ;;  %v1156_v58 = vadd.f32 1.0, %v1963_v54 }
 0x266   :  { %1438 = vmatprep.mubr.bf16.mxu1 %v2742_v12  ;;  %v1967_v10 = vpop.eup %1966  ;;  %1986 = vpow2.f32 %v1678_v11 }
 0x267   :  { %v1969_v57 = vpop.eup %1968  ;;  %1988 = vpow2.f32 %v1680_v53  ;;  %v1159_v15 = vadd.f32 1.0, %v1967_v10 }
 0x268   :  { %v1971_v12 = vpop.eup %1970  ;;  %1990 = vrcp.f32 %v1155_v55  ;;  %v1161_v19 = vadd.f32 1.0, %v1969_v57 }
 0x269   :  { %v1973_v14 = vpop.eup %1972  ;;  %1992 = vrcp.f32 %v1157_v56  ;;  %v1160_v20 = vadd.f32 1.0, %v1971_v12 }
 0x26a   :  { %v1975_v16 = vpop.eup %1974  ;;  %1994 = vrcp.f32 %v1156_v58  ;;  %v1162_v21 = vadd.f32 1.0, %v1973_v14 }
 0x26b   :  { %v1977_v27 = vpop.eup %1976  ;;  %v1163_v29 = vadd.f32 1.0, %v1975_v16  ;;  %v865_v16 = vpop.permute.xlu0 %864 }
 0x26c   :  { %1700 = vmatmul.mubr.msk.bf16.gmra.mrb[28].mxu0 %vm521_vm0, %v1893_v13  ;;  %v1979_v22 = vpop.eup %1978  ;;  %v1165_v30 = vadd.f32 1.0, %v1977_v27  ;;  %v870_v27 = vpop.permute.xlu1 %869 }
 0x26d   :  { %1702 = vmatmul.mubr.msk.bf16.gmra.mrb[28].mxu1 %vm521_vm0, %v1893_v13  ;;  %v1158_v13 = vadd.f32 1.0, %v1965_v9  ;;  %v1981_v1 = vpop.eup %1980  ;;  %v1164_v34 = vadd.f32 1.0, %v1979_v22 }
 0x26e   :  { %v1983_v28 = vpop.eup %1982  ;;  %v1166_v60 = vadd.f32 1.0, %v1981_v1 }
 0x26f   :  { %1996 = vrcp.f32 %v1158_v13  ;;  %v1985_v33 = vpop.eup %1984  ;;  %v1167_v35 = vadd.f32 1.0, %v1983_v28 }
 0x270   :  { %1998 = vrcp.f32 %v1159_v15  ;;  %v1987_v59 = vpop.eup %1986  ;;  %v1169_v62 = vadd.f32 1.0, %v1985_v33 }
 0x271   :  { %2000 = vrcp.f32 %v1161_v19  ;;  %v1989_v61 = vpop.eup %1988  ;;  %v1168_v43 = vadd.f32 1.0, %v1987_v59 }
 0x272   :  { %2002 = vrcp.f32 %v1160_v20  ;;  %v2603_v63 = vpop.eup %1990  ;;  %v1170_v36 = vadd.f32 1.0, %v1989_v61 }
 0x273   :  { %2004 = vrcp.f32 %v1162_v21  ;;  %v2605_v0 = vpop.eup %1992  ;;  %v1481_v20 = vsub.f32 1.0, %v2603_v63 }
 0x274   :  { %2006 = vrcp.f32 %v1163_v29  ;;  %v2607_v2 = vpop.eup %1994  ;;  %v1483_v1 = vsub.f32 1.0, %v2605_v0 }
 0x275   :  { %2008 = vrcp.f32 %v1165_v30 }
 0x276   :  { %2010 = vrcp.f32 %v1164_v34  ;;  %v1482_v34 = vsub.f32 1.0, %v2607_v2 }
 0x277   :  { %2012 = vrcp.f32 %v1166_v60 }
 0x278   :  { %2014 = vrcp.f32 %v1167_v35 }
 0x279   :  { %v2609_v3 = vpop.eup %1996  ;;  %2016 = vrcp.f32 %v1169_v62 }
 0x27a   :  { %v2611_v25 = vpop.eup %1998  ;;  %2018 = vrcp.f32 %v1168_v43  ;;  %v1484_v43 = vsub.f32 1.0, %v2609_v3 }
 0x27b   :  { %v2613_v26 = vpop.eup %2000  ;;  %2020 = vrcp.f32 %v1170_v36 }
 0x27c   :  { %v2615_v8 = vpop.eup %2002 }
 0x27d   :  { %v2617_v10 = vpop.eup %2004 }
 0x27e   :  { %v2619_v58 = vpop.eup %2006 }
 0x27f   :  { %v2621_v13 = vpop.eup %2008 }
 0x280   :  { %v2623_v15 = vpop.eup %2010 }
 0x281   :  { %v2625_v19 = vpop.eup %2012 }
 0x282   :  { %v2628_v21 = vpop.eup %2014 }
 0x283   :  { %v2631_v33 = vpop.eup %2016 }
 0x284   :  { %v2634_v62 = vpop.eup %2018 }
 0x337   :  { %v1377_v4 = vpop.f32.mrb[24].mxu0 }
 0x338   :  { %v1719_v5 = vadd.f32 %v1377_v4, %v855_v44  ;;  %v1430_v47 = vpop.f32.mrb[24].mxu1  ;;  %v1379_v6 = vpop.f32.mrb[25].mxu0 }
 0x339   :  { %v1727_v51 = vadd.f32 %v1430_v47, %v855_v44  ;;  %v1720_v7 = vadd.f32 %v1379_v6, %v855_v44  ;;  %v1432_v52 = vpop.f32.mrb[25].mxu1  ;;  %v1381_v11 = vpop.f32.mrb[26].mxu0  ;;  %v1485_v47 = vsub.f32 1.0, %v2611_v25  ;;  %v1497_v6 = vmul.f32 %v1481_v20, %v2412_v31 }
 0x33a   :  { %2022 = vtanh.f32 %v1719_v5  ;;  %v1728_v53 = vadd.f32 %v1432_v52, %v855_v44  ;;  %v1721_v54 = vadd.f32 %v1381_v11, %v860_v46  ;;  %v1434_v9 = vpop.f32.mrb[26].mxu1  ;;  %v1383_v55 = vpop.f32.mrb[27].mxu0  ;;  %v1487_v11 = vsub.f32 1.0, %v2613_v26 }
 0x33b   :  { %2024 = vtanh.f32 %v1727_v51  ;;  %v1729_v56 = vadd.f32 %v1434_v9, %v860_v46  ;;  %v1436_v57 = vpop.f32.mrb[27].mxu1  ;;  %v1722_v12 = vadd.f32 %v1383_v55, %v860_v46  ;;  %v2637_v5 = vpop.eup %2020  ;;  %v1486_v31 = vsub.f32 1.0, %v2615_v8 }
 0x33c   :  { %2026 = vtanh.f32 %v1720_v7  ;;  %v1730_v14 = vadd.f32 %v1436_v57, %v860_v46 }
 0x33d   :  { %2028 = vtanh.f32 %v1728_v53  ;;  %v1499_v53 = vmul.f32 %v1483_v1, %v2426_v37  ;;  %v1501_v1 = vmul.f32 %v1485_v47, %v2417_v32  ;;  %v1493_v47 = vsub.f32 1.0, %v2628_v21 }
 0x33e   :  { %2030 = vtanh.f32 %v1721_v54 }
 0x33f   :  { %2032 = vtanh.f32 %v1729_v56  ;;  %v1387_v22 = vpop.f32.mrb[28].mxu0  ;;  %v1498_v56 = vmul.f32 %v1482_v34, %v2392_v17  ;;  %v1488_v17 = vsub.f32 1.0, %v2617_v10  ;;  %v1503_v34 = vmul.f32 %v1487_v11, %v2431_v38 }
 0x340   :  { %2034 = vtanh.f32 %v1722_v12  ;;  %v1723_v29 = vadd.f32 %v1387_v22, %v865_v16  ;;  %v1440_v28 = vpop.f32.mrb[28].mxu1  ;;  %v1389_v30 = vpop.f32.mrb[29].mxu0 }
 0x341   :  { %2036 = vtanh.f32 %v1730_v14  ;;  %v1731_v59 = vadd.f32 %v1440_v28, %v865_v16  ;;  %v1724_v60 = vadd.f32 %v1389_v30, %v865_v16  ;;  %v1442_v61 = vpop.f32.mrb[29].mxu1  ;;  %v1391_v35 = vpop.f32.mrb[30].mxu0  ;;  %v1491_v30 = vsub.f32 1.0, %v2621_v13 }
 0x342   :  { %2038 = vtanh.f32 %v1723_v29  ;;  %v1732_v36 = vadd.f32 %v1442_v61, %v865_v16  ;;  %v1725_v44 = vadd.f32 %v1391_v35, %v870_v27  ;;  %v1444_v46 = vpop.f32.mrb[30].mxu1  ;;  %v1393_v4 = vpop.f32.mrb[31].mxu0  ;;  %v1500_v16 = vmul.f32 %v1484_v43, %v2402_v23 }
 0x343   :  { %2040 = vtanh.f32 %v1731_v59  ;;  %v1733_v51 = vadd.f32 %v1444_v46, %v870_v27  ;;  %v1446_v7 = vpop.f32.mrb[31].mxu1  ;;  %v1726_v54 = vadd.f32 %v1393_v4, %v870_v27  ;;  %v1490_v61 = vsub.f32 1.0, %v2623_v15 }
 0x344   :  { %v2023_v52 = vpop.eup %2022  ;;  %2042 = vtanh.f32 %v1724_v60  ;;  %v1734_v57 = vadd.f32 %v1446_v7, %v870_v27  ;;  %v1502_v35 = vmul.f32 %v1486_v31, %v2397_v18  ;;  %v1495_v7 = vsub.f32 1.0, %v2631_v33 }
 0x345   :  { %v2025_v9 = vpop.eup %2024  ;;  %v1513_v55 = vmul.f32 %v2023_v52, %v2603_v63  ;;  %2044 = vtanh.f32 %v1732_v36 }
 0x346   :  { %v2027_v12 = vpop.eup %2026  ;;  %v1515_v14 = vmul.f32 %v2025_v9, %v2605_v0  ;;  %2046 = vtanh.f32 %v1725_v44  ;;  %v1489_v0 = vsub.f32 1.0, %v2619_v58  ;;  %v1492_v44 = vsub.f32 1.0, %v2625_v19 }
 0x347   :  { %v2029_v20 = vpop.eup %2028  ;;  %v1529_v22 = vadd.f32 %v1513_v55, %v1497_v6  ;;  %v1514_v37 = vmul.f32 %v2027_v12, %v2607_v2  ;;  %2048 = vtanh.f32 %v1733_v51  ;;  %v1496_v55 = vsub.f32 1.0, %v2637_v5 }
 0x348   :  { %v2031_v63 = vpop.eup %2030  ;;  %v1531_v29 = vadd.f32 %v1515_v14, %v1499_v53  ;;  %v1516_v27 = vmul.f32 %v2029_v20, %v2609_v3  ;;  %2050 = vtanh.f32 %v1726_v54  ;;  %v1494_v53 = vsub.f32 1.0, %v2634_v62 }
 0x349   :  { %v2033_v28 = vpop.eup %2032  ;;  %1545 = vst [vmem:[%s2738_s7] sm:$0xff] %v1529_v22  ;;  %v1530_v23 = vadd.f32 %v1514_v37, %v1498_v56  ;;  %v1517_v2 = vmul.f32 %v2031_v63, %v2611_v25  ;;  %2052 = vtanh.f32 %v1734_v57  ;;  %v1512_v37 = vmul.f32 %v1496_v55, %v2451_v42 }
 0x34a   :  { %v2035_v32 = vpop.eup %2034  ;;  %1547 = vst [vmem:[%s2738_s7 + $0x10] sm:$0xff] %v1531_v29  ;;  %v1532_v3 = vadd.f32 %v1516_v27, %v1500_v16  ;;  %v1519_v59 = vmul.f32 %v2033_v28, %v2613_v26  ;;  %v1504_v26 = vmul.f32 %v1488_v17, %v2407_v24 }
 0x34b   :  { %v2037_v60 = vpop.eup %2036  ;;  %1546 = vst [vmem:[%s2738_s7 + $0x8] sm:$0xff] %v1530_v23  ;;  %v1533_v25 = vadd.f32 %v1517_v2, %v1501_v1  ;;  %v1518_v43 = vmul.f32 %v2035_v32, %v2615_v8  ;;  %v1505_v8 = vmul.f32 %v1489_v0, %v2460_v45 }
 0x34c   :  { %v2039_v36 = vpop.eup %2038  ;;  %1548 = vst [vmem:[%s2738_s7 + $0x18] sm:$0xff] %v1532_v3  ;;  %v1535_v38 = vadd.f32 %v1519_v59, %v1503_v34  ;;  %v1520_v46 = vmul.f32 %v2037_v60, %v2617_v10  ;;  %v1507_v10 = vmul.f32 %v1491_v30, %v2474_v49 }
 0x34d   :  { %v2041_v4 = vpop.eup %2040  ;;  %1549 = vst [vmem:[%s2738_s7 + $0x20] sm:$0xff] %v1533_v25  ;;  %v1534_v18 = vadd.f32 %v1518_v43, %v1502_v35  ;;  %v1521_v6 = vmul.f32 %v2039_v36, %v2619_v58  ;;  %v1506_v58 = vmul.f32 %v1490_v61, %v2436_v39 }
 0x34e   :  { %v2043_v51 = vpop.eup %2042  ;;  %1551 = vst [vmem:[%s2738_s7 + $0x30] sm:$0xff] %v1535_v38  ;;  %v1536_v24 = vadd.f32 %v1520_v46, %v1504_v26  ;;  %v1523_v52 = vmul.f32 %v2041_v4, %v2621_v13  ;;  %v1508_v13 = vmul.f32 %v1492_v44, %v2446_v41  ;;  %v1511_v41 = vmul.f32 %v1495_v7, %v2479_v50 }
 0x34f   :  { %v2045_v11 = vpop.eup %2044  ;;  %1550 = vst [vmem:[%s2738_s7 + $0x28] sm:$0xff] %v1534_v18  ;;  %v1537_v45 = vadd.f32 %v1521_v6, %v1505_v8  ;;  %v1522_v54 = vmul.f32 %v2043_v51, %v2623_v15  ;;  %v1509_v15 = vmul.f32 %v1493_v47, %v2469_v48  ;;  %v1510_v48 = vmul.f32 %v1494_v53, %v2441_v40 }
 0x350   :  { %v2047_v9 = vpop.eup %2046  ;;  %1552 = vst [vmem:[%s2738_s7 + $0x38] sm:$0xff] %v1536_v24  ;;  %v1539_v49 = vadd.f32 %v1523_v52, %v1507_v10  ;;  %v1524_v56 = vmul.f32 %v2045_v11, %v2625_v19 }
 0x351   :  { %v2049_v57 = vpop.eup %2048  ;;  %1553 = vst [vmem:[%s2738_s7 + $0x40] sm:$0xff] %v1537_v45  ;;  %v1538_v39 = vadd.f32 %v1522_v54, %v1506_v58  ;;  %v1525_v12 = vmul.f32 %v2047_v9, %v2628_v21 }
 0x352   :  { %v2051_v31 = vpop.eup %2050  ;;  %1555 = vst [vmem:[%s2738_s7 + $0x50] sm:$0xff] %v1539_v49  ;;  %v1540_v14 = vadd.f32 %v1524_v56, %v1508_v13  ;;  %v1527_v19 = vmul.f32 %v2049_v57, %v2631_v33 }
 0x353   :  { %v2053_v16 = vpop.eup %2052  ;;  %1554 = vst [vmem:[%s2738_s7 + $0x48] sm:$0xff] %v1538_v39  ;;  %v1541_v20 = vadd.f32 %v1525_v12, %v1509_v15  ;;  %v1526_v21 = vmul.f32 %v2051_v31, %v2634_v62 }
 0x354   :  { %1556 = vst [vmem:[%s2738_s7 + $0x58] sm:$0xff] %v1540_v14  ;;  %v1543_v22 = vadd.f32 %v1527_v19, %v1511_v41  ;;  %v1528_v50 = vmul.f32 %v2053_v16, %v2637_v5 }
 0x355   :  { %1557 = vst [vmem:[%s2738_s7 + $0x60] sm:$0xff] %v1541_v20  ;;  %v1542_v33 = vadd.f32 %v1526_v21, %v1510_v48 }
 0x356   :  { %1559 = vst [vmem:[%s2738_s7 + $0x70] sm:$0xff] %v1543_v22  ;;  %v1544_v40 = vadd.f32 %v1528_v50, %v1512_v37 }
 0x357   :  { %1558 = vst [vmem:[%s2738_s7 + $0x68] sm:$0xff] %v1542_v33 }
 0x358   :  { %1560 = vst [vmem:[%s2738_s7 + $0x78] sm:$0xff] %v1544_v40 }

// kernel: norm_conv2d_gru_forward.7
= control target key start
LH: loop header
LB: loop body
LE: loop exit
PB: predicated region body
PF: predicated region fallthrough
CT: control target
= control target key end

     0   :  { %v873_v36 = vmov 1983009808   ;;  %v96_v38 = vlaneseq  ;;  %vm470_vm0 = vcmask 261120   ;;  %s1146_s0 = inlined_call_operand.vmem [shape: bf16[288,512], index: 0, kind: input, shape index: {}]   ;;  %s1147_s3 = inlined_call_operand.vmem [shape: bf16[4,288], index: 3, kind: input, shape index: {}]   ;;  %s1148_s1 = inlined_call_operand.vmem [shape: f32[4,512], index: 1, kind: input, shape index: {}]   ;;  %s1149_s2 = inlined_call_operand.vmem [shape: f32[4,512], index: 2, kind: input, shape index: {}]   ;;  %s1150_s4 = inlined_call_operand.vmem [shape: f32[4,512], index: 4, kind: output, shape index: {}]  }
   0x1   :  { %v760_v0 = vld [vmem:[%s1146_s0 + $0x4] ss:$16 sps:$4 sm:$0xff]   ;;  %v762_v1 = vld [vmem:[%s1146_s0 + $0xc] ss:$16 sps:$4 sm:$0xff]   ;;  %v764_v2 = vld [vmem:[%s1146_s0] ss:$16 sps:$4 sm:$0xff]   ;;  %v94_v37 = vunpack.c.l.s4 %v873_v36 }
   0x2   :  { %474 = vmatprep.subr.bf16.mxu0 %v760_v0  ;;  %v765_v3 = vld [vmem:[%s1146_s0 + $0x8] ss:$16 sps:$4 sm:$0xff]   ;;  %556 = vmatprep.subr.bf16.mxu1 %v762_v1  ;;  %v766_v4 = vld [vmem:[%s1146_s0 + $0x24] ss:$16 sps:$4 sm:$0xff]   ;;  %v768_v5 = vld [vmem:[%s1146_s0 + $0x2c] ss:$16 sps:$4 sm:$0xff]  }
   0x3   :  { %475 = vmatpush1.bf16.msra.mxu0 %v764_v2  ;;  %557 = vmatpush1.bf16.msra.mxu1 %v765_v3  ;;  %v770_v6 = vld [vmem:[%s1146_s0 + $0x20] ss:$16 sps:$4 sm:$0xff]   ;;  %v771_v7 = vld [vmem:[%s1146_s0 + $0x28] ss:$16 sps:$4 sm:$0xff]   ;;  %v772_v8 = vld [vmem:[%s1146_s0 + $0x44] ss:$16 sps:$4 sm:$0xff]   ;;  %v95_v42 = vunpack.c.0.s8 %v94_v37 }
   0x4   :  { %476 = vmatprep.subr.bf16.mxu0 %v766_v4  ;;  %558 = vmatprep.subr.bf16.mxu1 %v768_v5  ;;  %v774_v9 = vld [vmem:[%s1146_s0 + $0x4c] ss:$16 sps:$4 sm:$0xff]   ;;  %v776_v10 = vld [vmem:[%s1146_s0 + $0x40] ss:$16 sps:$4 sm:$0xff]   ;;  %v777_v11 = vld [vmem:[%s1146_s0 + $0x48] ss:$16 sps:$4 sm:$0xff]  }
   0x5   :  { %v778_v12 = vld [vmem:[%s1146_s0 + $0x64] ss:$16 sps:$4 sm:$0xff]   ;;  %v780_v13 = vld [vmem:[%s1146_s0 + $0x6c] ss:$16 sps:$4 sm:$0xff]   ;;  %v782_v14 = vld [vmem:[%s1146_s0 + $0x60] ss:$16 sps:$4 sm:$0xff]  }
   0x6   :  { %v783_v15 = vld [vmem:[%s1146_s0 + $0x68] ss:$16 sps:$4 sm:$0xff]   ;;  %v784_v16 = vld [vmem:[%s1146_s0 + $0x84] ss:$16 sps:$4 sm:$0xff]   ;;  %v786_v17 = vld [vmem:[%s1146_s0 + $0x8c] ss:$16 sps:$4 sm:$0xff]  }
   0x7   :  { %477 = vmatpush1.bf16.msra.mxu0 %v770_v6  ;;  %559 = vmatpush1.bf16.msra.mxu1 %v771_v7  ;;  %v788_v18 = vld [vmem:[%s1146_s0 + $0x80] ss:$16 sps:$4 sm:$0xff]   ;;  %v789_v19 = vld [vmem:[%s1146_s0 + $0x88] ss:$16 sps:$4 sm:$0xff]   ;;  %v790_v20 = vld [vmem:[%s1146_s0 + $0xa4] ss:$16 sps:$4 sm:$0xff]  }
   0x8   :  { %478 = vmatprep.subr.bf16.mxu0 %v772_v8  ;;  %560 = vmatprep.subr.bf16.mxu1 %v774_v9  ;;  %v792_v21 = vld [vmem:[%s1146_s0 + $0xac] ss:$16 sps:$4 sm:$0xff]   ;;  %v794_v22 = vld [vmem:[%s1146_s0 + $0xa0] ss:$16 sps:$4 sm:$0xff]   ;;  %v795_v23 = vld [vmem:[%s1146_s0 + $0xa8] ss:$16 sps:$4 sm:$0xff]  }
   0x9   :  { %v796_v24 = vld [vmem:[%s1146_s0 + $0xc4] ss:$16 sps:$4 sm:$0xff]   ;;  %v798_v25 = vld [vmem:[%s1146_s0 + $0xcc] ss:$16 sps:$4 sm:$0xff]   ;;  %v800_v26 = vld [vmem:[%s1146_s0 + $0xc0] ss:$16 sps:$4 sm:$0xff]  }
   0xa   :  { %v801_v27 = vld [vmem:[%s1146_s0 + $0xc8] ss:$16 sps:$4 sm:$0xff]   ;;  %v802_v28 = vld [vmem:[%s1146_s0 + $0xe4] ss:$16 sps:$4 sm:$0xff]   ;;  %v804_v29 = vld [vmem:[%s1146_s0 + $0xec] ss:$16 sps:$4 sm:$0xff]  }
   0xb   :  { %479 = vmatpush1.bf16.msra.mxu0 %v776_v10  ;;  %561 = vmatpush1.bf16.msra.mxu1 %v777_v11  ;;  %v806_v30 = vld [vmem:[%s1146_s0 + $0xe0] ss:$16 sps:$4 sm:$0xff]   ;;  %v807_v31 = vld [vmem:[%s1146_s0 + $0xe8] ss:$16 sps:$4 sm:$0xff]   ;;  %v808_v32 = vld [vmem:[%s1146_s0 + $0x104] ss:$16 sps:$4 sm:$0xff]  }
   0xc   :  { %480 = vmatprep.subr.bf16.mxu0 %v778_v12  ;;  %562 = vmatprep.subr.bf16.mxu1 %v780_v13  ;;  %v810_v33 = vld [vmem:[%s1146_s0 + $0x10c] ss:$16 sps:$4 sm:$0xff]   ;;  %v812_v34 = vld [vmem:[%s1146_s0 + $0x100] ss:$16 sps:$4 sm:$0xff]   ;;  %v813_v35 = vld [vmem:[%s1146_s0 + $0x108] ss:$16 sps:$4 sm:$0xff]  }
   0xd   :  { %v814_v39 = vld [vmem:[%s1146_s0 + $0x124] ss:$16 sps:$4 sm:$0xff]   ;;  %v816_v40 = vld [vmem:[%s1146_s0 + $0x12c] ss:$16 sps:$4 sm:$0xff]   ;;  %v818_v41 = vld [vmem:[%s1146_s0 + $0x120] ss:$16 sps:$4 sm:$0xff]  }
   0xe   :  { %v97_v43 = vshrl.u32 %v96_v38, 7  ;;  %v819_v44 = vld [vmem:[%s1146_s0 + $0x128] ss:$16 sps:$4 sm:$0xff]   ;;  %v820_v45 = vld [vmem:[%s1146_s0 + $0x144] ss:$16 sps:$4 sm:$0xff]  }
   0xf   :  { %481 = vmatpush1.bf16.msra.mxu0 %v782_v14  ;;  %563 = vmatpush1.bf16.msra.mxu1 %v783_v15  ;;  %v822_v46 = vld [vmem:[%s1146_s0 + $0x14c] ss:$16 sps:$4 sm:$0xff]   ;;  %v824_v47 = vld [vmem:[%s1146_s0 + $0x140] ss:$16 sps:$4 sm:$0xff]   ;;  %v825_v48 = vld [vmem:[%s1146_s0 + $0x148] ss:$16 sps:$4 sm:$0xff]  }
  0x10   :  { %482 = vmatprep.subr.bf16.mxu0 %v784_v16  ;;  %564 = vmatprep.subr.bf16.mxu1 %v786_v17  ;;  %v1032_v49 = vsub.s32 %v95_v42, %v97_v43  ;;  %v826_v50 = vld [vmem:[%s1146_s0 + $0x164] ss:$16 sps:$4 sm:$0xff]   ;;  %v828_v51 = vld [vmem:[%s1146_s0 + $0x16c] ss:$16 sps:$4 sm:$0xff]   ;;  %v830_v53 = vld [vmem:[%s1146_s0 + $0x160] ss:$16 sps:$4 sm:$0xff]  }
  0x11   :  { %v1043_v52 = vld [vmem:[%s1147_s3] sm:$0x3f]  ;;  %v831_v55 = vld [vmem:[%s1146_s0 + $0x168] ss:$16 sps:$4 sm:$0xff]   ;;  %v834_v57 = vld [vmem:[%s1146_s0 + $0x18c] ss:$16 sps:$4 sm:$0xff]  }
  0x12   :  { %v99_v54 = vrot.slane %v1043_v52, %v1032_v49  ;;  %v832_v56 = vld [vmem:[%s1146_s0 + $0x184] ss:$16 sps:$4 sm:$0xff]   ;;  %v836_v59 = vld [vmem:[%s1146_s0 + $0x180] ss:$16 sps:$4 sm:$0xff]   ;;  %v837_v60 = vld [vmem:[%s1146_s0 + $0x188] ss:$16 sps:$4 sm:$0xff]  }
  0x13   :  { %483 = vmatpush1.bf16.msra.mxu0 %v788_v18  ;;  %565 = vmatpush1.bf16.msra.mxu1 %v789_v19  ;;  %v838_v61 = vld [vmem:[%s1146_s0 + $0x1a4] ss:$16 sps:$4 sm:$0xff]   ;;  %v840_v62 = vld [vmem:[%s1146_s0 + $0x1ac] ss:$16 sps:$4 sm:$0xff]   ;;  %v842_v63 = vld [vmem:[%s1146_s0 + $0x1a0] ss:$16 sps:$4 sm:$0xff]   ;;  %v92_v18 = vcombine.high %v1043_v52, %v1043_v52 }
  0x14   :  { %484 = vmatprep.subr.bf16.mxu0 %v790_v20  ;;  %566 = vmatprep.subr.bf16.mxu1 %v792_v21  ;;  %v107_v58 = vcombine.high %v99_v54, %v99_v54  ;;  %v843_v0 = vld [vmem:[%s1146_s0 + $0x1a8] ss:$16 sps:$4 sm:$0xff]   ;;  %v844_v1 = vld [vmem:[%s1146_s0 + $0x1c4] ss:$16 sps:$4 sm:$0xff]   ;;  %v846_v2 = vld [vmem:[%s1146_s0 + $0x1cc] ss:$16 sps:$4 sm:$0xff]  }
  0x15   :  { %v848_v3 = vld [vmem:[%s1146_s0 + $0x1c0] ss:$16 sps:$4 sm:$0xff]   ;;  %v849_v4 = vld [vmem:[%s1146_s0 + $0x1c8] ss:$16 sps:$4 sm:$0xff]   ;;  %v850_v5 = vld [vmem:[%s1146_s0 + $0x1e4] ss:$16 sps:$4 sm:$0xff]   ;;  %v106_v19 = vrot.slane %v92_v18, %v1032_v49 }
  0x16   :  { %506 = vmatprep.mubr.bf16.mxu0 %v107_v58  ;;  %588 = vmatprep.mubr.bf16.mxu1 %v107_v58  ;;  %v852_v6 = vld [vmem:[%s1146_s0 + $0x1ec] ss:$16 sps:$4 sm:$0xff]   ;;  %v854_v7 = vld [vmem:[%s1146_s0 + $0x1e0] ss:$16 sps:$4 sm:$0xff]   ;;  %v855_v8 = vld [vmem:[%s1146_s0 + $0x1e8] ss:$16 sps:$4 sm:$0xff]  }
  0x17   :  { %485 = vmatpush1.bf16.msra.mxu0 %v794_v22  ;;  %567 = vmatpush1.bf16.msra.mxu1 %v795_v23  ;;  %v859_v9 = vld [vmem:[%s1146_s0 + $0x204] ss:$16 sps:$4 sm:$0xff]   ;;  %v862_v10 = vld [vmem:[%s1146_s0 + $0x20c] ss:$16 sps:$4 sm:$0xff]   ;;  %v857_v11 = vld [vmem:[%s1146_s0 + $0x200] ss:$16 sps:$4 sm:$0xff]  }
  0x18   :  { %486 = vmatprep.subr.bf16.mxu0 %v796_v24  ;;  %568 = vmatprep.subr.bf16.mxu1 %v798_v25  ;;  %v860_v12 = vld [vmem:[%s1146_s0 + $0x208] ss:$16 sps:$4 sm:$0xff]   ;;  %v865_v13 = vld [vmem:[%s1146_s0 + $0x224] ss:$16 sps:$4 sm:$0xff]   ;;  %v868_v14 = vld [vmem:[%s1146_s0 + $0x22c] ss:$16 sps:$4 sm:$0xff]  }
  0x19   :  { %v863_v15 = vld [vmem:[%s1146_s0 + $0x220] ss:$16 sps:$4 sm:$0xff]   ;;  %v866_v16 = vld [vmem:[%s1146_s0 + $0x228] ss:$16 sps:$4 sm:$0xff]   ;;  %v874_v17 = vmov 0  }
  0x1a   :  { %v638_v20 = vld [vmem:[%s1148_s1] sm:$0xff]  ;;  %v639_v21 = vld [vmem:[%s1148_s1 + $0x8] sm:$0xff] }
  0x1b   :  { %487 = vmatpush1.bf16.msra.mxu0 %v800_v26  ;;  %569 = vmatpush1.bf16.msra.mxu1 %v801_v27  ;;  %v650_v22 = vld [vmem:[%s1149_s2] sm:$0xff]  ;;  %v651_v23 = vld [vmem:[%s1149_s2 + $0x8] sm:$0xff]  ;;  %v642_v24 = vcombine.high %v638_v20, %v638_v20  ;;  %v643_v25 = vcombine.high %v639_v21, %v639_v21 }
  0x1c   :  { %488 = vmatprep.subr.bf16.mxu0 %v802_v28  ;;  %570 = vmatprep.subr.bf16.mxu1 %v804_v29  ;;  %v654_v28 = vcombine.high %v650_v22, %v650_v22  ;;  %v655_v29 = vcombine.high %v651_v23, %v651_v23 }
  0x1f   :  { %489 = vmatpush1.bf16.msra.mxu0 %v806_v30  ;;  %571 = vmatpush1.bf16.msra.mxu1 %v807_v31 }
  0x20   :  { %490 = vmatprep.subr.bf16.mxu0 %v808_v32  ;;  %572 = vmatprep.subr.bf16.mxu1 %v810_v33 }
  0x23   :  { %491 = vmatpush1.bf16.msra.mxu0 %v812_v34  ;;  %573 = vmatpush1.bf16.msra.mxu1 %v813_v35 }
  0x24   :  { %492 = vmatprep.subr.bf16.mxu0 %v814_v39  ;;  %574 = vmatprep.subr.bf16.mxu1 %v816_v40 }
  0x27   :  { %493 = vmatpush1.bf16.msra.mxu0 %v818_v41  ;;  %575 = vmatpush1.bf16.msra.mxu1 %v819_v44 }
  0x28   :  { %494 = vmatprep.subr.bf16.mxu0 %v820_v45  ;;  %576 = vmatprep.subr.bf16.mxu1 %v822_v46 }
  0x2b   :  { %495 = vmatpush1.bf16.msra.mxu0 %v824_v47  ;;  %577 = vmatpush1.bf16.msra.mxu1 %v825_v48 }
  0x2c   :  { %496 = vmatprep.subr.bf16.mxu0 %v826_v50  ;;  %578 = vmatprep.subr.bf16.mxu1 %v828_v51 }
  0x2f   :  { %497 = vmatpush1.bf16.msra.mxu0 %v830_v53  ;;  %579 = vmatpush1.bf16.msra.mxu1 %v831_v55 }
  0x30   :  { %498 = vmatprep.subr.bf16.mxu0 %v832_v56  ;;  %580 = vmatprep.subr.bf16.mxu1 %v834_v57 }
  0x33   :  { %499 = vmatpush1.bf16.msra.mxu0 %v836_v59  ;;  %581 = vmatpush1.bf16.msra.mxu1 %v837_v60 }
  0x34   :  { %500 = vmatprep.subr.bf16.mxu0 %v838_v61  ;;  %582 = vmatprep.subr.bf16.mxu1 %v840_v62 }
  0x37   :  { %501 = vmatpush1.bf16.msra.mxu0 %v842_v63  ;;  %583 = vmatpush1.bf16.msra.mxu1 %v843_v0 }
  0x38   :  { %502 = vmatprep.subr.bf16.mxu0 %v844_v1  ;;  %584 = vmatprep.subr.bf16.mxu1 %v846_v2 }
  0x3b   :  { %503 = vmatpush1.bf16.msra.mxu0 %v848_v3  ;;  %585 = vmatpush1.bf16.msra.mxu1 %v849_v4 }
  0x3c   :  { %504 = vmatprep.subr.bf16.mxu0 %v850_v5  ;;  %586 = vmatprep.subr.bf16.mxu1 %v852_v6 }
  0x3f   :  { %505 = vmatpush1.bf16.msra.mxu0 %v854_v7  ;;  %587 = vmatpush1.bf16.msra.mxu1 %v855_v8 }
  0x40   :  { %515 = vmatprep.subr.bf16.mxu0 %v859_v9  ;;  %597 = vmatprep.subr.bf16.mxu1 %v862_v10 }
  0x42   :  { %507 = vmatmul.mubr.bf16.vlgmr.msra.gmra.mrb[0].mxu0 %v99_v54  ;;  %589 = vmatmul.mubr.bf16.vlgmr.msra.gmra.mrb[0].mxu1 %v99_v54 }
  0x43   :  { %516 = vmatpush1.bf16.msra.mxu0 %v857_v11  ;;  %598 = vmatpush1.bf16.msra.mxu1 %v860_v12 }
  0x44   :  { %517 = vmatprep.subr.bf16.mxu0 %v865_v13  ;;  %599 = vmatprep.subr.bf16.mxu1 %v868_v14 }
  0x45   :  { %547 = vmatprep.mubr.bf16.mxu0 %v874_v17  ;;  %629 = vmatprep.mubr.bf16.mxu1 %v874_v17 }
  0x47   :  { %518 = vmatpush1.bf16.msra.mxu0 %v863_v15  ;;  %600 = vmatpush1.bf16.msra.mxu1 %v866_v16 }
  0x4e   :  { %748 = vmatmul.mubr.msk.bf16.vlgmr.msra.gmra.mrb[0].mxu0 %vm470_vm0, %v106_v19  ;;  %749 = vmatmul.mubr.msk.bf16.vlgmr.msra.gmra.mrb[0].mxu1 %vm470_vm0, %v106_v19 }
 0x121   :  { %v549_v26 = vpop.f32.mrb[0].mxu0  ;;  %v631_v27 = vpop.f32.mrb[0].mxu1 }
 0x122   :  { %v646_v30 = vmul.f32 %v638_v20, %v549_v26  ;;  %v648_v31 = vmul.f32 %v639_v21, %v631_v27  ;;  %v551_v32 = vpop.f32.mrb[1].mxu0  ;;  %v633_v33 = vpop.f32.mrb[1].mxu1 }
 0x123   :  { %v647_v34 = vmul.f32 %v642_v24, %v551_v32  ;;  %v649_v35 = vmul.f32 %v643_v25, %v633_v33  ;;  %v553_v36 = vpop.f32.mrb[2].mxu0  ;;  %v635_v37 = vpop.f32.mrb[2].mxu1 }
 0x124   :  { %v658_v38 = vadd.f32 %v650_v22, %v646_v30  ;;  %v660_v39 = vadd.f32 %v651_v23, %v648_v31  ;;  %v554_v40 = vpop.f32.mrb[3].mxu0  ;;  %v636_v41 = vpop.f32.mrb[3].mxu1 }
 0x125   :  { %v659_v42 = vadd.f32 %v654_v28, %v647_v34  ;;  %v661_v43 = vadd.f32 %v655_v29, %v649_v35 }
 0x127   :  { %v666_v44 = vcombine.low %v658_v38, %v659_v42  ;;  %v667_v45 = vcombine.low %v660_v39, %v661_v43 }
 0x129   :  { %670 = vst [vmem:[%s1150_s4] sm:$0xff] %v666_v44  ;;  %671 = vst [vmem:[%s1150_s4 + $0x8] sm:$0xff] %v667_v45 }

</bundles_post_ra>
